<compile_context>
chip_gen: v6e
topology: v6e:2x2x1
jax: 0.10.0
libtpu: 0.0.40
codegen_flags: <defaults>
</compile_context>

<pallas_src>
import jax
import jax.numpy as jnp
from jax.experimental import pallas as pl
from jax.experimental.pallas import tpu as pltpu


# ---------------------------------------------------------------------------
# Model hyperparameters (match NeuralLM defaults)
# ---------------------------------------------------------------------------
MIN_LAYER_UNITS = 16
LANE = 128  # TPU lane width; hidden/vocab dims are padded to a multiple.


def output_size(input_size: int) -> int:
    return max(MIN_LAYER_UNITS, int(input_size / 2))


def _round_up(x: int, m: int) -> int:
    return ((x + m - 1) // m) * m


def _num_tensorcores() -> int:
    """Best-effort guess of TensorCores per chip (v7x has 2)."""
    try:
        dev = jax.devices()[0]
        n = int(getattr(dev, "num_cores", 1) or 1)
        kind = str(getattr(dev, "device_kind", "")).lower()
        if "v7" in kind or "7x" in kind:
            n = max(n, 2)
        return max(1, n)
    except Exception:
        return 1


# ---------------------------------------------------------------------------
# Pallas kernel: one deep-K one-hot matmul (layer 1) + 2-layer padded MLP
# ---------------------------------------------------------------------------
def ffnlm_kernel(ids_ref, t1_ref, w2_ref, b2_ref, w3_ref, b3_ref, out_ref):
    ids = ids_ref[...]                       # (TB, W) int32 token ids
    tb, window = ids.shape
    k_dim, _ = t1_ref.shape                  # (W * Vp, H1_pad)
    vp = k_dim // window                     # lane-padded vocab

    # Single (TB, W*Vp) one-hot: segment w holds onehot(ids[:, w]).
    # One-hot values are exact in bf16; segments are disjoint so sum == concat.
    # TODO(synk): for large vocab sizes replace the one-hot matmul with a real
    # row gather (scalar-prefetched ids + pl.Element embedding BlockSpec) and
    # tile the vocab axis of t1/w3/out with a second grid dimension.
    col = jax.lax.broadcasted_iota(jnp.int32, (tb, k_dim), 1)
    onehot = (col == ids[:, 0:1]).astype(jnp.bfloat16)
    for w in range(1, window):               # static unroll (W = 5), VPU-only
        onehot = onehot + (col == (ids[:, w:w + 1] + w * vp)).astype(jnp.bfloat16)

    # Layer 1: one K = W*Vp matmul against the fused (E@W1 + b1-folded) table.
    h1 = jnp.dot(onehot, t1_ref[...], preferred_element_type=jnp.float32)
    h1 = jnp.maximum(h1, 0.0)                                      # (TB, H1p)

    # Layer 2 (padded 128 -> 128) + ReLU
    h2 = jnp.dot(h1.astype(jnp.bfloat16), w2_ref[...],
                 preferred_element_type=jnp.float32) + b2_ref[...]
    h2 = jnp.maximum(h2, 0.0)

    # Layer 3 (padded 128 -> Vp), logits in f32, lane-dense store
    out_ref[...] = jnp.dot(h2.astype(jnp.bfloat16), w3_ref[...],
                           preferred_element_type=jnp.float32) + b3_ref[...]


# ---------------------------------------------------------------------------
# Host-side parameter prep: fold E@W1 (+b1) per window, lane-pad, cast bf16
# ---------------------------------------------------------------------------
def prepare_params(params, window_size: int, dims_embedding: int):
    emb, w1, b1, w2, b2, w3, b3 = params      # w*: (in, out), b*: (1, out), f32
    vocab, dims = emb.shape
    assert dims == dims_embedding
    h1 = w1.shape[1]
    h2 = w2.shape[1]
    h1p = _round_up(h1, LANE)                 # 80  -> 128
    h2p = _round_up(h2, LANE)                 # 40  -> 128
    vp = _round_up(vocab, LANE)               # 128 -> 128 (no-op here)

    # T[w] = E @ W1[w*D:(w+1)*D, :]  -> (W, V, H1); summing the one-hot
    # selections over w reproduces view(-1, W*D) @ W1 exactly.
    t1 = jnp.einsum("vd,wdh->wvh", emb,
                    w1.reshape(window_size, dims_embedding, h1))
    # Fold b1 into the window-0 slice: window-0 one-hot selects exactly one row.
    t1 = t1.at[0].add(b1)
    # Pad vocab + hidden axes, flatten to (W*Vp, H1p), cast bf16.
    t1 = jnp.pad(t1, ((0, 0), (0, vp - vocab), (0, h1p - h1)))
    t1 = t1.reshape(window_size * vp, h1p).astype(jnp.bfloat16)

    w2p = jnp.pad(w2, ((0, h1p - h1), (0, h2p - h2))).astype(jnp.bfloat16)
    b2p = jnp.pad(b2, ((0, 0), (0, h2p - h2)))                      # f32
    w3p = jnp.pad(w3, ((0, h2p - h2), (0, vp - vocab))).astype(jnp.bfloat16)
    b3p = jnp.pad(b3, ((0, 0), (0, vp - vocab)))                    # f32
    return (t1, w2p, b2p, w3p, b3p)


# ---------------------------------------------------------------------------
# Forward wrapper: batch-tiled pallas_call
# ---------------------------------------------------------------------------
def neural_lm_forward(ids, prepared, vocab_size, *, block_b: int = 256,
                      min_grid: int | None = None):
    """ids: (B, W) int32 token indices. Returns (B, V) float32 logits.

    The batch tile is chosen to (a) keep each tile <= block_b rows,
    (b) minimize padded rows, and (c) give at least `min_grid` grid steps
    so multi-TensorCore chips (v7x) get work on every core.
    """
    t1, w2, b2, w3, b3 = prepared
    batch, window = ids.shape
    h1p = t1.shape[1]
    h2p = w2.shape[1]
    vp = w3.shape[1]

    if min_grid is None:
        min_grid = _num_tensorcores()

    # Number of grid steps, then the smallest multiple-of-8 tile covering it.
    n_steps = max(min_grid, pl.cdiv(_round_up(batch, 8), block_b))
    tb = _round_up(pl.cdiv(batch, n_steps), 8)
    bp = _round_up(batch, tb)
    if bp != batch:
        # Padded rows use token id 0; their logits are sliced off below.
        ids = jnp.pad(ids, ((0, bp - batch), (0, 0)))
    grid = (bp // tb,)

    cost = pl.CostEstimate(
        flops=2 * bp * (window * vp * h1p + h1p * h2p + h2p * vp),
        transcendentals=0,
        bytes_accessed=(ids.size * 4 + (t1.size + w2.size + w3.size) * 2
                        + (b2.size + b3.size) * 4 + bp * vp * 4),
    )

    # TODO(synk): for large vocab on v7x (64 MiB VMEM), single-buffer the
    # constant weight specs (pipeline_mode=pl.Buffered(1)) or tile the vocab
    # axis; irrelevant at this vocab size.
    out = pl.pallas_call(
        ffnlm_kernel,
        out_shape=jax.ShapeDtypeStruct((bp, vp), jnp.float32),
        grid=grid,
        in_specs=[
            pl.BlockSpec((tb, window), lambda i: (i, 0)),         # ids (tiled)
            pl.BlockSpec(t1.shape, lambda i: (0, 0)),             # fused E@W1+b1
            pl.BlockSpec(w2.shape, lambda i: (0, 0)),
            pl.BlockSpec(b2.shape, lambda i: (0, 0)),
            pl.BlockSpec(w3.shape, lambda i: (0, 0)),
            pl.BlockSpec(b3.shape, lambda i: (0, 0)),
        ],
        out_specs=pl.BlockSpec((tb, vp), lambda i: (i, 0)),       # logits
        compiler_params=pltpu.CompilerParams(
            dimension_semantics=("parallel",),
            vmem_limit_bytes=32 * 1024 * 1024),
        cost_estimate=cost,
    )(ids, t1, w2, b2, w3, b3)
    return out[:batch, :vocab_size]


# ---------------------------------------------------------------------------
# Deterministic parameter initialization (shapes from NeuralLM.__init__)
# ---------------------------------------------------------------------------
def init_params(vocab_size, dims_embedding=32, num_layers=3, window_size=5):
    key = jax.random.PRNGKey(0)
    k_emb, *k_lin = jax.random.split(key, 1 + 2 * num_layers)

    # nn.Embedding default: N(0, 1)
    emb = jax.random.normal(k_emb, (vocab_size, dims_embedding), jnp.float32)

    sizes = []
    in_size = window_size * dims_embedding
    for _ in range(1, num_layers):
        out = output_size(in_size)
        sizes.append((in_size, out))
        in_size = out
    sizes.append((in_size, vocab_size))

    linears = []
    for i, (fan_in, fan_out) in enumerate(sizes):
        bound = 1.0 / (fan_in ** 0.5)
        # store weight already transposed: (in, out)  (PyTorch keeps (out, in))
        w = jax.random.uniform(k_lin[2 * i], (fan_in, fan_out), jnp.float32,
                               minval=-bound, maxval=bound)
        b = jax.random.uniform(k_lin[2 * i + 1], (1, fan_out), jnp.float32,
                               minval=-bound, maxval=bound)
        linears.extend([w, b])

    return (emb, *linears)


# ---------------------------------------------------------------------------
# Pure-JAX f32 reference for correctness check
# ---------------------------------------------------------------------------
def neural_lm_reference(ids, params):
    emb, w1, b1, w2, b2, w3, b3 = params
    batch, window = ids.shape
    x = jnp.take(emb, ids.reshape(-1), axis=0).reshape(batch,
                                                       window * emb.shape[1])
    h = jnp.maximum(x @ w1 + b1, 0.0)
    h = jnp.maximum(h @ w2 + b2, 0.0)
    return h @ w3 + b3


if __name__ == "__main__":
    vocab_size = 128
    dims_embedding = 32
    window_size = 5
    batch = 200   # not a power-of-two tile: exercises padding-minimizing tb

    params = init_params(vocab_size, dims_embedding, num_layers=3,
                         window_size=window_size)
    prepared = prepare_params(params, window_size, dims_embedding)

    key = jax.random.PRNGKey(0)
    ids = jax.random.randint(key, (batch, window_size), 0, vocab_size,
                             dtype=jnp.int32)

    logits = neural_lm_forward(ids, prepared, vocab_size)
    logits = jax.block_until_ready(logits)

    ref = neural_lm_reference(ids, params)
    assert logits.shape == (batch, vocab_size)
    max_err = float(jnp.max(jnp.abs(logits - ref)))
    # bf16 MXU operands -> small drift vs the f32 reference.
    assert jnp.allclose(logits, ref, atol=2e-2, rtol=2e-2), (
        f"mismatch vs reference (max abs err {max_err})")

    print("KERNEL_OK")
</pallas_src>

<mosaic_0001>
module attributes {stable_mosaic.version = 11 : i64} {
  func.func @ffnlm_kernel(%arg0: i32, %arg1: memref<200x5xi32, #tpu.memory_space<vmem>>, %arg2: memref<640x128xbf16, #tpu.memory_space<vmem>>, %arg3: memref<128x128xbf16, #tpu.memory_space<vmem>>, %arg4: memref<1x128xf32, #tpu.memory_space<vmem>>, %arg5: memref<128x128xbf16, #tpu.memory_space<vmem>>, %arg6: memref<1x128xf32, #tpu.memory_space<vmem>>, %arg7: memref<200x128xf32, #tpu.memory_space<vmem>>) attributes {dimension_semantics = [#tpu.dimension_semantics<parallel>], iteration_bounds = array<i64: 1>, scalar_prefetch = 0 : i64, scratch_operands = 0 : i64, tpu.core_type = #tpu.core_type<tc>, window_params = [{transform_indices = @transform_0, window_bounds = array<i64: 200, 5>}, {pipeline_mode = #tpu.pipeline_mode<synchronous>, transform_indices = @transform_1, window_bounds = array<i64: 640, 128>}, {pipeline_mode = #tpu.pipeline_mode<synchronous>, transform_indices = @transform_2, window_bounds = array<i64: 128, 128>}, {pipeline_mode = #tpu.pipeline_mode<synchronous>, transform_indices = @transform_3, window_bounds = array<i64: 1, 128>}, {pipeline_mode = #tpu.pipeline_mode<synchronous>, transform_indices = @transform_4, window_bounds = array<i64: 128, 128>}, {pipeline_mode = #tpu.pipeline_mode<synchronous>, transform_indices = @transform_5, window_bounds = array<i64: 1, 128>}, {transform_indices = @transform_6, window_bounds = array<i64: 200, 128>}]} {
    %c0 = arith.constant 0 : index
    %c0_0 = arith.constant 0 : index
    %0 = vector.load %arg1[%c0, %c0_0] : memref<200x5xi32, #tpu.memory_space<vmem>>, vector<200x5xi32>
    %1 = tpu.iota {dimensions = array<i32: 1>} : vector<200x640xi32>
    %2 = vector.extract_strided_slice %0 {offsets = [0, 0], sizes = [200, 1], strides = [1, 1]} : vector<200x5xi32> to vector<200x1xi32>
    %3 = vector.broadcast %2 : vector<200x1xi32> to vector<200x640xi32>
    %4 = arith.cmpi eq, %1, %3 : vector<200x640xi32>
    %5 = arith.extui %4 : vector<200x640xi1> to vector<200x640xi32>
    %6 = arith.sitofp %5 : vector<200x640xi32> to vector<200x640xf32>
    %7 = arith.truncf %6 : vector<200x640xf32> to vector<200x640xbf16>
    %8 = vector.extract_strided_slice %0 {offsets = [0, 1], sizes = [200, 1], strides = [1, 1]} : vector<200x5xi32> to vector<200x1xi32>
    %c128_i32 = arith.constant 128 : i32
    %9 = vector.broadcast %c128_i32 : i32 to vector<200x1xi32>
    %10 = arith.addi %8, %9 : vector<200x1xi32>
    %11 = vector.broadcast %10 : vector<200x1xi32> to vector<200x640xi32>
    %12 = arith.cmpi eq, %1, %11 : vector<200x640xi32>
    %13 = arith.extui %12 : vector<200x640xi1> to vector<200x640xi32>
    %14 = arith.sitofp %13 : vector<200x640xi32> to vector<200x640xf32>
    %15 = arith.truncf %14 : vector<200x640xf32> to vector<200x640xbf16>
    %16 = arith.addf %7, %15 : vector<200x640xbf16>
    %17 = vector.extract_strided_slice %0 {offsets = [0, 2], sizes = [200, 1], strides = [1, 1]} : vector<200x5xi32> to vector<200x1xi32>
    %c256_i32 = arith.constant 256 : i32
    %18 = vector.broadcast %c256_i32 : i32 to vector<200x1xi32>
    %19 = arith.addi %17, %18 : vector<200x1xi32>
    %20 = vector.broadcast %19 : vector<200x1xi32> to vector<200x640xi32>
    %21 = arith.cmpi eq, %1, %20 : vector<200x640xi32>
    %22 = arith.extui %21 : vector<200x640xi1> to vector<200x640xi32>
    %23 = arith.sitofp %22 : vector<200x640xi32> to vector<200x640xf32>
    %24 = arith.truncf %23 : vector<200x640xf32> to vector<200x640xbf16>
    %25 = arith.addf %16, %24 : vector<200x640xbf16>
    %26 = vector.extract_strided_slice %0 {offsets = [0, 3], sizes = [200, 1], strides = [1, 1]} : vector<200x5xi32> to vector<200x1xi32>
    %c384_i32 = arith.constant 384 : i32
    %27 = vector.broadcast %c384_i32 : i32 to vector<200x1xi32>
    %28 = arith.addi %26, %27 : vector<200x1xi32>
    %29 = vector.broadcast %28 : vector<200x1xi32> to vector<200x640xi32>
    %30 = arith.cmpi eq, %1, %29 : vector<200x640xi32>
    %31 = arith.extui %30 : vector<200x640xi1> to vector<200x640xi32>
    %32 = arith.sitofp %31 : vector<200x640xi32> to vector<200x640xf32>
    %33 = arith.truncf %32 : vector<200x640xf32> to vector<200x640xbf16>
    %34 = arith.addf %25, %33 : vector<200x640xbf16>
    %35 = vector.extract_strided_slice %0 {offsets = [0, 4], sizes = [200, 1], strides = [1, 1]} : vector<200x5xi32> to vector<200x1xi32>
    %c512_i32 = arith.constant 512 : i32
    %36 = vector.broadcast %c512_i32 : i32 to vector<200x1xi32>
    %37 = arith.addi %35, %36 : vector<200x1xi32>
    %38 = vector.broadcast %37 : vector<200x1xi32> to vector<200x640xi32>
    %39 = arith.cmpi eq, %1, %38 : vector<200x640xi32>
    %40 = arith.extui %39 : vector<200x640xi1> to vector<200x640xi32>
    %41 = arith.sitofp %40 : vector<200x640xi32> to vector<200x640xf32>
    %42 = arith.truncf %41 : vector<200x640xf32> to vector<200x640xbf16>
    %43 = arith.addf %34, %42 : vector<200x640xbf16>
    %c0_1 = arith.constant 0 : index
    %c0_2 = arith.constant 0 : index
    %44 = vector.load %arg2[%c0_1, %c0_2] : memref<640x128xbf16, #tpu.memory_space<vmem>>, vector<640x128xbf16>
    %cst = arith.constant dense<0.000000e+00> : vector<200x128xf32>
    %45 = tpu.matmul %43, %44, %cst {dimension_numbers = #tpu.dot_dimension_numbers<[1], [0], [0], [1], [0, 0, 1, 1], [], []>} : vector<200x640xbf16>, vector<640x128xbf16>, vector<200x128xf32> -> vector<200x128xf32>
    %cst_3 = arith.constant 0.000000e+00 : f32
    %46 = vector.broadcast %cst_3 : f32 to vector<200x128xf32>
    %47 = arith.maximumf %45, %46 : vector<200x128xf32>
    %48 = arith.truncf %47 : vector<200x128xf32> to vector<200x128xbf16>
    %c0_4 = arith.constant 0 : index
    %c0_5 = arith.constant 0 : index
    %49 = vector.load %arg3[%c0_4, %c0_5] : memref<128x128xbf16, #tpu.memory_space<vmem>>, vector<128x128xbf16>
    %cst_6 = arith.constant dense<0.000000e+00> : vector<200x128xf32>
    %50 = tpu.matmul %48, %49, %cst_6 {dimension_numbers = #tpu.dot_dimension_numbers<[1], [0], [0], [1], [0, 0, 1, 1], [], []>} : vector<200x128xbf16>, vector<128x128xbf16>, vector<200x128xf32> -> vector<200x128xf32>
    %c0_7 = arith.constant 0 : index
    %c0_8 = arith.constant 0 : index
    %51 = vector.load %arg4[%c0_7, %c0_8] : memref<1x128xf32, #tpu.memory_space<vmem>>, vector<1x128xf32>
    %52 = vector.broadcast %51 : vector<1x128xf32> to vector<200x128xf32>
    %53 = arith.addf %50, %52 : vector<200x128xf32>
    %cst_9 = arith.constant 0.000000e+00 : f32
    %54 = vector.broadcast %cst_9 : f32 to vector<200x128xf32>
    %55 = arith.maximumf %53, %54 : vector<200x128xf32>
    %56 = arith.truncf %55 : vector<200x128xf32> to vector<200x128xbf16>
    %c0_10 = arith.constant 0 : index
    %c0_11 = arith.constant 0 : index
    %57 = vector.load %arg5[%c0_10, %c0_11] : memref<128x128xbf16, #tpu.memory_space<vmem>>, vector<128x128xbf16>
    %cst_12 = arith.constant dense<0.000000e+00> : vector<200x128xf32>
    %58 = tpu.matmul %56, %57, %cst_12 {dimension_numbers = #tpu.dot_dimension_numbers<[1], [0], [0], [1], [0, 0, 1, 1], [], []>} : vector<200x128xbf16>, vector<128x128xbf16>, vector<200x128xf32> -> vector<200x128xf32>
    %c0_13 = arith.constant 0 : index
    %c0_14 = arith.constant 0 : index
    %59 = vector.load %arg6[%c0_13, %c0_14] : memref<1x128xf32, #tpu.memory_space<vmem>>, vector<1x128xf32>
    %60 = vector.broadcast %59 : vector<1x128xf32> to vector<200x128xf32>
    %61 = arith.addf %58, %60 : vector<200x128xf32>
    %c0_15 = arith.constant 0 : index
    %c0_16 = arith.constant 0 : index
    %62 = vector.load %arg7[%c0_15, %c0_16] : memref<200x128xf32, #tpu.memory_space<vmem>>, vector<200x128xf32>
    tpu.vector_store %arg7[%c0_15, %c0_16], %61 {strides = array<i32>} : memref<200x128xf32, #tpu.memory_space<vmem>>, vector<200x128xf32>,
    return
  }
  func.func @transform_0(%arg0: i32) -> (i32, i32) {
    %c0_i32 = arith.constant 0 : i32
    %c0_i32_0 = arith.constant 0 : i32
    return %arg0, %c0_i32 : i32, i32
  }
  func.func @transform_1(%arg0: i32) -> (i32, i32) {
    %c0_i32 = arith.constant 0 : i32
    %c0_i32_0 = arith.constant 0 : i32
    %c0_i32_1 = arith.constant 0 : i32
    return %c0_i32, %c0_i32_0 : i32, i32
  }
  func.func @transform_2(%arg0: i32) -> (i32, i32) {
    %c0_i32 = arith.constant 0 : i32
    %c0_i32_0 = arith.constant 0 : i32
    %c0_i32_1 = arith.constant 0 : i32
    return %c0_i32, %c0_i32_0 : i32, i32
  }
  func.func @transform_3(%arg0: i32) -> (i32, i32) {
    %c0_i32 = arith.constant 0 : i32
    %c0_i32_0 = arith.constant 0 : i32
    %c0_i32_1 = arith.constant 0 : i32
    return %c0_i32, %c0_i32_0 : i32, i32
  }
  func.func @transform_4(%arg0: i32) -> (i32, i32) {
    %c0_i32 = arith.constant 0 : i32
    %c0_i32_0 = arith.constant 0 : i32
    %c0_i32_1 = arith.constant 0 : i32
    return %c0_i32, %c0_i32_0 : i32, i32
  }
  func.func @transform_5(%arg0: i32) -> (i32, i32) {
    %c0_i32 = arith.constant 0 : i32
    %c0_i32_0 = arith.constant 0 : i32
    %c0_i32_1 = arith.constant 0 : i32
    return %c0_i32, %c0_i32_0 : i32, i32
  }
  func.func @transform_6(%arg0: i32) -> (i32, i32) {
    %c0_i32 = arith.constant 0 : i32
    %c0_i32_0 = arith.constant 0 : i32
    return %arg0, %c0_i32 : i32, i32
  }
}

</mosaic_0001>

<bundles_post_ra>
// kernel: tpu_custom_call.1
= control target key start
LH: loop header
LB: loop body
LE: loop exit
PB: predicated region body
PF: predicated region fallthrough
CT: control target
= control target key end

     0   :  { %11 = vsyncpa [#allocation3], 0  ;;  %s10764_s0 = inlined_call_operand.vmem [shape: s32[200,5], index: 0, kind: input, shape index: {}]   ;;  %s10765_s1 = inlined_call_operand.hbm [shape: bf16[640,128], index: 1, kind: input, shape index: {}]   ;;  %s10766_s2 = inlined_call_operand.vmem [shape: bf16[128,128], index: 2, kind: input, shape index: {}]   ;;  %s10767_s3 = inlined_call_operand.vmem [shape: f32[1,128], index: 3, kind: input, shape index: {}]   ;;  %s10768_s4 = inlined_call_operand.vmem [shape: bf16[128,128], index: 4, kind: input, shape index: {}]   ;;  %s10769_s5 = inlined_call_operand.vmem [shape: f32[1,128], index: 5, kind: input, shape index: {}]   ;;  %s10770_s6 = inlined_call_operand.hbm [shape: f32[200,128], index: 6, kind: output, shape index: {}]  }
   0x1   :  { %12 = vsyncpa [#allocation4], 0  ;;  %s5595_s21 = smov [#allocation2]  }
   0x2   :  { %s20_s22 = sshll.u32 %s5595_s21, 4  ;;  %s21_s22 = int_to_ptr.vmem [resolvable:$true] %s20_s22 }
   0x3   :  { %s5559_s23 = scalar_lea.vmem %s21_s22, 5120  ;;  %p5564_p1 = scmp.lt.s32.totalorder %s21_s22, %s21_s22 }
   0x4   :  { %p5560_p0 = scmp.ne.s32.totalorder %s21_s22, %s5559_s23  ;;  %p5565_p2 = scmp.lt.s32.totalorder %s5559_s23, %s5559_s23 }
   0x6   :  { %p5566_p3 = por %p5565_p2, %p5564_p1 }
   0x8   :  { %p5567_p4 = pnand %p5566_p3, %p5560_p0 }
   0xa   :  { %5570 = shalt.err (!%p5567_p4)
}
   0xb   :  { %s5596_s24 = smov 64   ;;  %s5597_s25 = smov 4  }
   0xc   :  { %26 = dma.hbm_to_vmem [thread:$0]  %s10765_s1, 5120, %s21_s22, [#allocation3], %s5596_s24, %s5596_s24, %s5597_s25  }
   0xd   :  { %5591 = dma.done.wait [#allocation3], 5120  }
   0xe   :  { %5592 = vsyncadd [#allocation3], 4294962176  ;;  %v10779_v0 = vmov 0   ;;  %v10777_v1 = vmov 1   ;;  %v5651_v2 = vld [vmem:[%s10764_s0 + $0x78] sm:$0xff]  ;;  %v5656_v3 = vld [vmem:[%s10764_s0 + $0x70] sm:$0xff] }
   0xf   :  { %5432 = vset.pattern.permute.xlu1 %v10779_v0  ;;  %5434 = vset.pattern.permute.xlu0 %v10777_v1  ;;  %v5661_v4 = vld [vmem:[%s10764_s0] sm:$0xff]  ;;  %v599_v5 = vadd.s32 128, %v5656_v3  ;;  %v5668_v6 = vld [vmem:[%s10764_s0 + $0x10] sm:$0xff]  ;;  %v5675_v9 = vld [vmem:[%s10764_s0 + $0x8] sm:$0xff]  ;;  %v600_v15 = vadd.s32 128, %v5651_v2  ;;  %v1204_v22 = vadd.s32 256, %v5656_v3 }
  0x10   :  { %116 = vperm.xlu1 %5432, %v5651_v2   ;;  %v585_v7 = vadd.s32 128, %v5661_v4  ;;  %v587_v8 = vadd.s32 128, %v5668_v6  ;;  %v5680_v10 = vld [vmem:[%s10764_s0 + $0x80] sm:$0xff]  ;;  %v586_v11 = vadd.s32 128, %v5675_v9  ;;  %v5693_v14 = vld [vmem:[%s10764_s0 + $0x90] sm:$0xff]  ;;  %v1190_v20 = vadd.s32 256, %v5661_v4 }
  0x11   :  { %653 = vperm.xlu0 %5434, %v599_v5   ;;  %v601_v12 = vadd.s32 128, %v5680_v10  ;;  %v5688_v13 = vld [vmem:[%s10764_s0 + $0x20] sm:$0xff]  ;;  %v5699_v16 = vld [vmem:[%s10764_s0 + $0x30] sm:$0xff]  ;;  %v603_v19 = vadd.s32 128, %v5693_v14  ;;  %v1205_v24 = vadd.s32 256, %v5651_v2  ;;  %v1796_v26 = vadd.s32 384, %v5675_v9 }
  0x12   :  { %v5704_v17 = vld [vmem:[%s10764_s0 + $0xa0] sm:$0xff]  ;;  %v589_v18 = vadd.s32 128, %v5688_v13  ;;  %v591_v21 = vadd.s32 128, %v5699_v16  ;;  %v5722_v27 = vld [vmem:[%s10764_s0 + $0xb0] sm:$0xff]  ;;  %v1809_v28 = vadd.s32 384, %v5656_v3  ;;  %v10773_v29 = vmov 2  }
  0x13   :  { %v605_v23 = vadd.s32 128, %v5704_v17  ;;  %v5716_v25 = vld [vmem:[%s10764_s0 + $0x40] sm:$0xff]  ;;  %v607_v31 = vadd.s32 128, %v5722_v27  ;;  %v5731_v32 = vld [vmem:[%s10764_s0 + $0x50] sm:$0xff]  ;;  %v2400_v33 = vadd.s32 512, %v5661_v4  ;;  %v1191_v34 = vadd.s32 256, %v5675_v9 }
  0x14   :  { %5433 = vset.pattern.permute.xlu1 %v10777_v1  ;;  %v593_v30 = vadd.s32 128, %v5716_v25  ;;  %v595_v35 = vadd.s32 128, %v5731_v32  ;;  %v42_v36 = vld [vmem:[%s10764_s0 + $0x18] sm:$0xff]  ;;  %v5742_v37 = vld [vmem:[%s10764_s0 + $0x28] sm:$0xff]  ;;  %v10771_v38 = vmov 3   ;;  %v10775_v41 = vmov 4  }
  0x15   :  { %611 = vperm.xlu1 %5433, %v585_v7   ;;  %617 = vperm.xlu0 %5434, %v587_v8   ;;  %v1193_v39 = vadd.s32 256, %v42_v36  ;;  %v1195_v40 = vadd.s32 256, %v5742_v37  ;;  %v588_v42 = vadd.s32 128, %v42_v36  ;;  %v5753_v43 = vld [vmem:[%s10764_s0 + $0x38] sm:$0xff]  ;;  %v5759_v45 = vld [vmem:[%s10764_s0 + $0x48] sm:$0xff]  ;;  %v2414_v47 = vadd.s32 512, %v5656_v3 }
  0x16   :  { %v1197_v44 = vadd.s32 256, %v5753_v43  ;;  %v1199_v46 = vadd.s32 256, %v5759_v45  ;;  %v1200_v48 = vadd.s32 256, %v5731_v32  ;;  %v5771_v49 = vld [vmem:[%s10764_s0 + $0x88] sm:$0xff]  ;;  %v1192_v51 = vadd.s32 256, %v5668_v6  ;;  %v5798_v63 = vld [vmem:[%s10764_s0 + $0x98] sm:$0xff] }
  0x17   :  { %v602_v50 = vadd.s32 128, %v5771_v49  ;;  %v52_v52 = vld [vmem:[%s10764_s0 + $0x68] sm:$0xff]  ;;  %v1206_v53 = vadd.s32 256, %v5680_v10  ;;  %v2401_v54 = vadd.s32 512, %v5675_v9  ;;  %v1207_v55 = vadd.s32 256, %v5771_v49  ;;  %v5488_v8 = vld [vmem:[#allocation2 + $0x78] sm:$0xff]  }
  0x18   :  { %v2415_v56 = vadd.s32 512, %v5651_v2  ;;  %v1798_v57 = vadd.s32 384, %v42_v36  ;;  %v2403_v58 = vadd.s32 512, %v42_v36  ;;  %v1811_v59 = vadd.s32 384, %v5680_v10  ;;  %v5808_v7 = vld [vmem:[%s10764_s0 + $0xa8] sm:$0xff]  ;;  %4948 = vmatprep.subr.bf16.mxu0 %v5488_v8  ;;  %5403 = vmatprep.subr.bf16.mxu1 %v5488_v8 }
  0x19   :  { %614 = vperm.xlu1 %5433, %v586_v11   ;;  %659 = vperm.xlu0 %5434, %v601_v12   ;;  %v2417_v60 = vadd.s32 512, %v5771_v49  ;;  %v2402_v61 = vadd.s32 512, %v5668_v6  ;;  %v2405_v62 = vadd.s32 512, %v5742_v37  ;;  %v2407_v5 = vadd.s32 512, %v5753_v43 }
  0x1a   :  { %v2421_v11 = vadd.s32 512, %v5808_v7  ;;  %v590_v12 = vadd.s32 128, %v5742_v37  ;;  %v10809_v8 = vmov 0.0  }
  0x1d   :  { %656 = vperm.xlu1 %5433, %v600_v15   ;;  %623 = vperm.xlu0 %5434, %v589_v18   ;;  %v5490_v15 = vld [vmem:[#allocation2 + $0x70] sm:$0xff]  }
  0x1e   :  { %v5491_v18 = vld [vmem:[#allocation2 + $0x30] sm:$0xff]  }
  0x21   :  { %5435 = vset.pattern.permute.xlu1 %v10773_v29  ;;  %665 = vperm.xlu0 %5434, %v603_v19   ;;  %v2409_v19 = vadd.s32 512, %v5759_v45 }
  0x22   :  { %1216 = vperm.xlu1 %5435, %v1190_v20   ;;  %v5818_v20 = vld [vmem:[%s10764_s0 + $0xb8] sm:$0xff] }
  0x25   :  { %629 = vperm.xlu0 %5434, %v591_v21   ;;  %v5492_v21 = vld [vmem:[#allocation2 + $0x68] sm:$0xff]  }
  0x26   :  { %1258 = vperm.xlu1 %5435, %v1204_v22   ;;  %v2416_v22 = vadd.s32 512, %v5680_v10 }
  0x29   :  { %671 = vperm.xlu0 %5434, %v605_v23   ;;  %v5493_v23 = vld [vmem:[#allocation2 + $0x28] sm:$0xff]  }
  0x2a   :  { %1261 = vperm.xlu1 %5435, %v1205_v24   ;;  %v2423_v24 = vadd.s32 512, %v5818_v20 }
  0x2d   :  { %635 = vperm.xlu0 %5434, %v593_v30   ;;  %v5495_v30 = vld [vmem:[#allocation2 + $0x20] sm:$0xff]  }
  0x2e   :  { %5436 = vset.pattern.permute.xlu1 %v10771_v38 }
  0x2f   :  { %1824 = vperm.xlu1 %5436, %v1796_v26   ;;  %v5494_v26 = vld [vmem:[#allocation2 + $0x60] sm:$0xff]  }
  0x31   :  { %677 = vperm.xlu0 %5434, %v607_v31   ;;  %v5496_v31 = vld [vmem:[#allocation2 + $0x58] sm:$0xff]  }
  0x33   :  { %1863 = vperm.xlu1 %5436, %v1809_v28   ;;  %v2410_v28 = vadd.s32 512, %v5731_v32  ;;  %v5497_v32 = vld [vmem:[#allocation2 + $0x18] sm:$0xff]  }
  0x35   :  { %641 = vperm.xlu0 %5434, %v595_v35  }
  0x37   :  { %5437 = vset.pattern.permute.xlu1 %v10775_v41 }
  0x38   :  { %2426 = vperm.xlu1 %5437, %v2400_v33  }
  0x39   :  { %5471 = vset.pattern.permute.xlu0 %v10773_v29 }
  0x3a   :  { %1219 = vperm.xlu0 %5471, %v1191_v34  }
  0x3c   :  { %5438 = vset.pattern.permute.xlu1 %v10779_v0 }
  0x3d   :  { %77 = vperm.xlu1 %5438, %v5668_v6  }
  0x3e   :  { %1225 = vperm.xlu0 %5471, %v1193_v39  }
  0x41   :  { %80 = vperm.xlu1 %5438, %v42_v36   ;;  %v5498_v36 = vld [vmem:[#allocation2 + $0x50] sm:$0xff]  }
  0x42   :  { %1231 = vperm.xlu0 %5471, %v1195_v40  }
  0x45   :  { %5439 = vset.pattern.permute.xlu1 %v10777_v1 }
  0x46   :  { %620 = vperm.xlu1 %5439, %v588_v42   ;;  %1237 = vperm.xlu0 %5471, %v1197_v44   ;;  %v604_v42 = vadd.s32 128, %v5798_v63  ;;  %v1795_v44 = vadd.s32 384, %v5661_v4 }
  0x4a   :  { %5440 = vset.pattern.permute.xlu1 %v10775_v41  ;;  %1243 = vperm.xlu0 %5471, %v1199_v46   ;;  %v5499_v46 = vld [vmem:[#allocation2 + $0x10] sm:$0xff]  }
  0x4b   :  { %2468 = vperm.xlu1 %5440, %v2414_v47  }
  0x4e   :  { %1246 = vperm.xlu0 %5471, %v1200_v48  }
  0x4f   :  { %5441 = vset.pattern.permute.xlu1 %v10779_v0 }
  0x50   :  { %119 = vperm.xlu1 %5441, %v5680_v10   ;;  %v63_v10 = vld [vmem:[%s10764_s0 + $0xc0] sm:$0xff] }
  0x51   :  { %v2424_v35 = vadd.s32 512, %v63_v10  ;;  %v5900_v10 = vadd.s32 256, %v5699_v16 }
  0x52   :  { %5476 = vset.pattern.permute.xlu0 %v10779_v0 }
  0x53   :  { %71 = vperm.xlu0 %5476, %v5661_v4  }
  0x54   :  { %122 = vperm.xlu1 %5441, %v5771_v49  }
  0x57   :  { %74 = vperm.xlu0 %5476, %v5675_v9   ;;  %v5489_v9 = vld [vmem:[#allocation2 + $0x38] sm:$0xff]  }
  0x58   :  { %5442 = vset.pattern.permute.xlu1 %v10777_v1  ;;  %4949 = vmatpush3.bf16.msra.mxu0 %v5489_v9 }
  0x59   :  { %662 = vperm.xlu1 %5442, %v602_v50   ;;  %5411 = vmatpush3.bf16.msra.mxu1 %v5489_v9  ;;  %v1810_v50 = vadd.s32 384, %v5651_v2  ;;  %v1208_v2 = vadd.s32 256, %v5693_v14  ;;  %v1799_v9 = vadd.s32 384, %v5688_v13 }
  0x5a   :  { %4950 = vmatprep.subr.bf16.mxu0 %v5490_v15  ;;  %5404 = vmatprep.subr.bf16.mxu1 %v5490_v15 }
  0x5b   :  { %113 = vperm.xlu0 %5476, %v5656_v3   ;;  %v2419_v3 = vadd.s32 512, %v5798_v63 }
  0x5c   :  { %4951 = vmatpush3.bf16.msra.mxu0 %v5491_v18 }
  0x5d   :  { %5443 = vset.pattern.permute.xlu1 %v10773_v29  ;;  %4952 = vmatprep.subr.bf16.mxu0 %v5492_v21 }
  0x5e   :  { %1222 = vperm.xlu1 %5443, %v1192_v51   ;;  %5412 = vmatpush3.bf16.msra.mxu1 %v5491_v18  ;;  %v1194_v51 = vadd.s32 256, %v5688_v13 }
  0x5f   :  { %110 = vperm.xlu0 %5476, %v52_v52   ;;  %5405 = vmatprep.subr.bf16.mxu1 %v5492_v21  ;;  %v5500_v52 = vld [vmem:[#allocation2 + $0x48] sm:$0xff]  }
  0x60   :  { %4953 = vmatpush3.bf16.msra.mxu0 %v5493_v23 }
  0x61   :  { %4954 = vmatprep.subr.bf16.mxu0 %v5494_v26 }
  0x62   :  { %1264 = vperm.xlu1 %5443, %v1206_v53   ;;  %5413 = vmatpush3.bf16.msra.mxu1 %v5493_v23  ;;  %v5501_v53 = vld [vmem:[#allocation2 + $0x8] sm:$0xff]   ;;  %v2404_v23 = vadd.s32 512, %v5688_v13 }
  0x63   :  { %5481 = vset.pattern.permute.xlu0 %v10775_v41  ;;  %5406 = vmatprep.subr.bf16.mxu1 %v5494_v26  ;;  %v5894_v26 = vadd.s32 512, %v5693_v14 }
  0x64   :  { %2429 = vperm.xlu0 %5481, %v2401_v54   ;;  %4955 = vmatpush3.bf16.msra.mxu0 %v5495_v30 }
  0x65   :  { %4956 = vmatprep.subr.bf16.mxu0 %v5496_v31 }
  0x66   :  { %1267 = vperm.xlu1 %5443, %v1207_v55   ;;  %5414 = vmatpush3.bf16.msra.mxu1 %v5495_v30  ;;  %v5502_v55 = vld [vmem:[#allocation2 + $0x40] sm:$0xff]   ;;  %v5906_v30 = vadd.s32 256, %v5808_v7 }
  0x67   :  { %5407 = vmatprep.subr.bf16.mxu1 %v5496_v31  ;;  %v5914_v31 = vadd.s32 384, %v5753_v43 }
  0x68   :  { %2471 = vperm.xlu0 %5481, %v2415_v56   ;;  %4957 = vmatpush3.bf16.msra.mxu0 %v5497_v32  ;;  %v1797_v56 = vadd.s32 384, %v5668_v6  ;;  %v1209_v6 = vadd.s32 256, %v5798_v63 }
  0x69   :  { %4958 = vmatprep.subr.bf16.mxu0 %v5498_v36 }
  0x6a   :  { %5444 = vset.pattern.permute.xlu1 %v10771_v38  ;;  %5415 = vmatpush3.bf16.msra.mxu1 %v5497_v32  ;;  %v5918_v32 = vadd.s32 384, %v5704_v17 }
  0x6b   :  { %1830 = vperm.xlu1 %5444, %v1798_v57   ;;  %5408 = vmatprep.subr.bf16.mxu1 %v5498_v36  ;;  %v5503_v57 = vld [vmem:[#allocation2] sm:$0xff]  }
  0x6c   :  { %2435 = vperm.xlu0 %5481, %v2403_v58   ;;  %4959 = vmatpush3.bf16.msra.mxu0 %v5499_v46  ;;  %v64_v58 = vlaneseq }
  0x6d   :  { %4960 = vmatprep.subr.bf16.mxu0 %v5500_v52 }
  0x6e   :  { %5416 = vmatpush3.bf16.msra.mxu1 %v5499_v46  ;;  %v5939_v46 = vadd.s32 512, %v5704_v17 }
  0x6f   :  { %1869 = vperm.xlu1 %5444, %v1811_v59   ;;  %5409 = vmatprep.subr.bf16.mxu1 %v5500_v52 }
  0x70   :  { %2477 = vperm.xlu0 %5481, %v2417_v60   ;;  %4961 = vmatpush3.bf16.msra.mxu0 %v5501_v53 }
  0x71   :  { %4962 = vmatprep.subr.bf16.mxu0 %v5502_v55 }
  0x72   :  { %5417 = vmatpush3.bf16.msra.mxu1 %v5501_v53 }
  0x73   :  { %5445 = vset.pattern.permute.xlu1 %v10775_v41  ;;  %5410 = vmatprep.subr.bf16.mxu1 %v5502_v55 }
  0x74   :  { %2432 = vperm.xlu1 %5445, %v2402_v61   ;;  %2441 = vperm.xlu0 %5481, %v2405_v62   ;;  %v1812_v61 = vadd.s32 384, %v5771_v49  ;;  %v5861_v62 = vand.u32 127, %v64_v58 }
  0x75   :  { %4963 = vmatpush3.bf16.msra.mxu0 %v5503_v57 }
  0x76   :  { %5418 = vmatpush3.bf16.msra.mxu1 %v5503_v57  ;;  %5199 = vmatprep.subr.bf16.mxu0 %v10809_v8  ;;  %v5871_v49 = vadd.s32 256, %v5861_v62  ;;  %v5884_v21 = vadd.s32 128, %v5861_v62 }
  0x78   :  { %5446 = vset.pattern.permute.xlu1 %v10779_v0  ;;  %2483 = vperm.xlu0 %5481, %v2419_v3  }
  0x79   :  { %83 = vperm.xlu1 %5446, %v5688_v13   ;;  %v1801_v13 = vadd.s32 384, %v5699_v16 }
  0x7c   :  { %2447 = vperm.xlu0 %5481, %v2407_v5  }
  0x7d   :  { %86 = vperm.xlu1 %5446, %v5742_v37  }
  0x80   :  { %2489 = vperm.xlu0 %5481, %v2421_v11   ;;  %v1800_v11 = vadd.s32 384, %v5742_v37  ;;  %v1814_v37 = vadd.s32 384, %v5798_v63 }
  0x81   :  { %5447 = vset.pattern.permute.xlu1 %v10777_v1 }
  0x82   :  { %626 = vperm.xlu1 %5447, %v590_v12   ;;  %v5874_v12 = vadd.s32 384, %v5861_v62 }
  0x84   :  { %2453 = vperm.xlu0 %5481, %v2409_v19   ;;  %10997 = vst [vmem:[#allocation11_spill] sm:$0xff] %v5874_v12  ;;  %v5881_v19 = vadd.s32 512, %v5861_v62 }
  0x86   :  { %5448 = vset.pattern.permute.xlu1 %v10775_v41  ;;  %10999 = vst [vmem:[#allocation13_spill] sm:$0xff] %v5881_v19 }
  0x87   :  { %2474 = vperm.xlu1 %5448, %v2416_v22   ;;  %v1813_v22 = vadd.s32 384, %v5693_v14 }
  0x88   :  { %2495 = vperm.xlu0 %5481, %v2423_v24   ;;  %v5891_v24 = vadd.s32 128, %v5753_v43 }
  0x8b   :  { %v5827_v33 = vpop.permute.xlu1 %116  ;;  %5449 = vset.pattern.permute.xlu1 %v10779_v0 }
  0x8c   :  { %125 = vperm.xlu1 %5449, %v5693_v14   ;;  %2456 = vperm.xlu0 %5481, %v2410_v28   ;;  %v5831_v34 = vpop.permute.xlu0 %653  ;;  %v5897_v28 = vadd.s32 128, %v5808_v7  ;;  %vm220_vm0 = vcmp.eq.s32.totalorder %v5861_v62, %v5827_v33  ;;  %vm222_vm1 = vcmp.eq.s32.totalorder %v5871_v49, %v5827_v33  ;;  %vm223_vm2 = vcmp.eq.s32.totalorder %v5874_v12, %v5827_v33 }
  0x8d   :  { %vm224_vm3 = vcmp.eq.s32.totalorder %v5881_v19, %v5827_v33  ;;  %vm755_vm4 = vcmp.eq.s32.totalorder %v5861_v62, %v5831_v34  ;;  %vm757_vm5 = vcmp.eq.s32.totalorder %v5871_v49, %v5831_v34  ;;  %vm756_vm6 = vcmp.eq.s32.totalorder %v5884_v21, %v5831_v34 }
  0x8e   :  { %vm758_vm7 = vcmp.eq.s32.totalorder %v5874_v12, %v5831_v34  ;;  %vm759_vm8 = vcmp.eq.s32.totalorder %v5881_v19, %v5831_v34  ;;  %v5967_v52 = vsel %vm223_vm2, 1.0, %v10809_v8  ;;  %v5973_v53 = vsel %vm224_vm3, 1.0, %v10809_v8 }
  0x8f   :  { %11002 = vst [vmem:[#allocation16_spill] sm:$0xff] %v5967_v52  ;;  %11003 = vst [vmem:[#allocation17_spill] sm:$0xff] %v5973_v53  ;;  %v5976_v55 = vsel %vm755_vm4, 1.0, %v10809_v8  ;;  %v5988_v57 = vsel %vm758_vm7, 1.0, %v10809_v8  ;;  %v5991_v58 = vsel %vm759_vm8, 1.0, %v10809_v8 }
  0x90   :  { %128 = vperm.xlu1 %5449, %v5798_v63   ;;  %v5834_v39 = vpop.permute.xlu1 %611  ;;  %2498 = vperm.xlu0 %5481, %v2424_v35   ;;  %v5836_v40 = vpop.permute.xlu0 %617  ;;  %v5903_v63 = vadd.s32 256, %v5704_v17  ;;  %v1816_v35 = vadd.s32 384, %v5808_v7  ;;  %11004 = vst [vmem:[#allocation18_spill] sm:$0xff] %v5976_v55  ;;  %11007 = vst [vmem:[#allocation21_spill] sm:$0xff] %v5988_v57  ;;  %v6315_v55 = vadd.s32 256, %v5722_v27 }
  0x91   :  { %vm685_vm9 = vcmp.eq.s32.totalorder %v5861_v62, %v5834_v39  ;;  %vm687_vm10 = vcmp.eq.s32.totalorder %v5871_v49, %v5834_v39  ;;  %vm688_vm11 = vcmp.eq.s32.totalorder %v5874_v12, %v5834_v39  ;;  %11008 = vst [vmem:[#allocation22_spill] sm:$0xff] %v5991_v58  ;;  %vm689_vm12 = vcmp.eq.s32.totalorder %v5881_v19, %v5834_v39 }
  0x92   :  { %vm695_vm13 = vcmp.eq.s32.totalorder %v5861_v62, %v5836_v40  ;;  %v6016_v34 = vsel %vm687_vm10, 1.0, %v10809_v8  ;;  %vm696_vm15 = vcmp.eq.s32.totalorder %v5884_v21, %v5836_v40  ;;  %vm698_vm2 = vcmp.eq.s32.totalorder %v5874_v12, %v5836_v40  ;;  %11059 = vst [vmem:[#allocation70_spill] sm:$0xff] %v6315_v55 }
  0x93   :  { %vm699_vm3 = vcmp.eq.s32.totalorder %v5881_v19, %v5836_v40  ;;  %v11017_v58 = vmov 0  }
  0x94   :  { %5450 = vset.pattern.permute.xlu1 %v10777_v1  ;;  %v5841_v47 = vpop.permute.xlu1 %614  ;;  %5483 = vset.pattern.permute.xlu0 %v10771_v38  ;;  %v5844_v48 = vpop.permute.xlu0 %659  ;;  %v6062_v1 = vsel %vm698_vm2, 1.0, %v10809_v8 }
  0x95   :  { %668 = vperm.xlu1 %5450, %v604_v42   ;;  %1821 = vperm.xlu0 %5483, %v1795_v44   ;;  %v5929_v42 = vadd.s32 512, %v5699_v16  ;;  %v5936_v44 = vadd.s32 128, %v5759_v45  ;;  %vm692_vm14 = vcmp.eq.s32.totalorder %v5871_v49, %v5841_v47  ;;  %vm690_vm4 = vcmp.eq.s32.totalorder %v5861_v62, %v5841_v47  ;;  %11015 = vst [vmem:[#allocation29_spill] sm:$0xff] %v6062_v1 }
  0x96   :  { %vm766_vm7 = vcmp.eq.s32.totalorder %v5884_v21, %v5844_v48  ;;  %v6068_v0 = vsel %vm690_vm4, 1.0, %v10809_v8  ;;  %vm767_vm8 = vcmp.eq.s32.totalorder %v5871_v49, %v5844_v48  ;;  %vm769_vm10 = vcmp.eq.s32.totalorder %v5881_v19, %v5844_v48 }
  0x97   :  { %v6091_v57 = vsel %vm766_vm7, 1.0, %v10809_v8 }
  0x98   :  { %v5848_v4 = vpop.permute.xlu1 %656  ;;  %v5851_v54 = vpop.permute.xlu0 %623  ;;  %11020 = vst [vmem:[#allocation33_spill] sm:$0xff] %v6091_v57 }
  0x99   :  { %10994 = vst [vmem:[#allocation8_spill] sm:$0xff] %v5848_v4  ;;  %5451 = vset.pattern.permute.xlu1 %v10773_v29  ;;  %1866 = vperm.xlu0 %5483, %v1810_v50   ;;  %v5951_v50 = vsel %vm220_vm0, 1.0, %v10809_v8  ;;  %vm694_vm0 = vcmp.eq.s32.totalorder %v5881_v19, %v5841_v47  ;;  %vm708_vm2 = vcmp.eq.s32.totalorder %v5874_v12, %v5851_v54 }
  0x9a   :  { %1228 = vperm.xlu1 %5451, %v1194_v51   ;;  %v5961_v51 = vsel %vm222_vm1, 1.0, %v10809_v8  ;;  %vm697_vm1 = vcmp.eq.s32.totalorder %v5871_v49, %v5836_v40  ;;  %v6049_v40 = vsel %vm696_vm15, 1.0, %v10809_v8  ;;  %v6052_v29 = vsel %vm694_vm0, 1.0, %v10809_v8 }
  0x9b   :  { %11001 = vst [vmem:[#allocation15_spill] sm:$0xff] %v5961_v51  ;;  %vm705_vm15 = vcmp.eq.s32.totalorder %v5861_v62, %v5851_v54  ;;  %vm706_vm0 = vcmp.eq.s32.totalorder %v5884_v21, %v5851_v54 }
  0x9c   :  { %v5857_v60 = vpop.permute.xlu0 %665  ;;  %v6138_v57 = vsel %vm705_vm15, 1.0, %v10809_v8 }
  0x9d   :  { %v5855_v59 = vpop.permute.xlu1 %1216  ;;  %1827 = vperm.xlu0 %5483, %v1797_v56   ;;  %v5979_v56 = vsel %vm757_vm5, 1.0, %v10809_v8  ;;  %vm693_vm5 = vcmp.eq.s32.totalorder %v5874_v12, %v5841_v47  ;;  %11028 = vst [vmem:[#allocation41_spill] sm:$0xff] %v6138_v57  ;;  %vm775_vm4 = vcmp.eq.s32.totalorder %v5861_v62, %v5857_v60 }
  0x9e   :  { %10995 = vst [vmem:[#allocation9_spill] sm:$0xff] %v5855_v59  ;;  %1270 = vperm.xlu1 %5451, %v1208_v2   ;;  %11005 = vst [vmem:[#allocation19_spill] sm:$0xff] %v5979_v56  ;;  %v6072_v56 = vsel %vm693_vm5, 1.0, %v10809_v8  ;;  %vm776_vm5 = vcmp.eq.s32.totalorder %v5884_v21, %v5857_v60  ;;  %vm1292_vm7 = vcmp.eq.s32.totalorder %v5871_v49, %v5855_v59 }
  0x9f   :  { %11018 = vst [vmem:[#allocation31_spill] sm:$0xff] %v6072_v56  ;;  %v6114_v56 = vsel %vm769_vm10, 1.0, %v10809_v8  ;;  %vm779_vm10 = vcmp.eq.s32.totalorder %v5881_v19, %v5857_v60  ;;  %v6175_v57 = vsel %vm776_vm5, 1.0, %v10809_v8 }
  0xa0   :  { %v5865_v5 = vpop.permute.xlu0 %629  ;;  %11023 = vst [vmem:[#allocation36_spill] sm:$0xff] %v6114_v56  ;;  %11035 = vst [vmem:[#allocation47_spill] sm:$0xff] %v6175_v57  ;;  %v6195_v57 = vsel %vm779_vm10, 1.0, %v10809_v8  ;;  %v11160_v53 = vld [vmem:[#allocation8_spill] sm:$0xff] }
  0xa1   :  { %v5863_v3 = vpop.permute.xlu1 %1258  ;;  %1872 = vperm.xlu0 %5483, %v1812_v61   ;;  %v5994_v61 = vadd.s32 128, %v5818_v20  ;;  %vm719_vm15 = vcmp.eq.s32.totalorder %v5881_v19, %v5865_v5  ;;  %11038 = vst [vmem:[#allocation50_spill] sm:$0xff] %v6195_v57 }
  0xa2   :  { %10996 = vst [vmem:[#allocation10_spill] sm:$0xff] %v5863_v3  ;;  %1273 = vperm.xlu1 %5451, %v1209_v6   ;;  %v6000_v6 = vsel %vm756_vm6, 1.0, %v10809_v8  ;;  %vm765_vm6 = vcmp.eq.s32.totalorder %v5861_v62, %v5844_v48 }
  0xa3   :  { %11009 = vst [vmem:[#allocation23_spill] sm:$0xff] %v5994_v61  ;;  %11010 = vst [vmem:[#allocation24_spill] sm:$0xff] %v6000_v6  ;;  %v6088_v1 = vsel %vm765_vm6, 1.0, %v10809_v8  ;;  %vm777_vm6 = vcmp.eq.s32.totalorder %v5871_v49, %v5857_v60  ;;  %v6222_v61 = vsel %vm719_vm15, 1.0, %v10809_v8  ;;  %v11079_v6 = vmov 2  }
  0xa4   :  { %v5878_v18 = vpop.permute.xlu0 %671  ;;  %11019 = vst [vmem:[#allocation32_spill] sm:$0xff] %v6088_v1  ;;  %11043 = vst [vmem:[#allocation55_spill] sm:$0xff] %v6222_v61 }
  0xa5   :  { %v5876_v15 = vpop.permute.xlu1 %1261  ;;  %1833 = vperm.xlu0 %5483, %v1799_v9   ;;  %v6008_v9 = vsel %vm685_vm9, 1.0, %v10809_v8  ;;  %vm768_vm9 = vcmp.eq.s32.totalorder %v5874_v12, %v5844_v48  ;;  %v6104_v48 = vsel %vm767_vm8, 1.0, %v10809_v8  ;;  %vm1294_vm8 = vcmp.eq.s32.totalorder %v5881_v19, %v5855_v59 }
  0xa6   :  { %10998 = vst [vmem:[#allocation12_spill] sm:$0xff] %v5876_v15  ;;  %5452 = vset.pattern.permute.xlu1 %v10771_v38  ;;  %11011 = vst [vmem:[#allocation25_spill] sm:$0xff] %v6008_v9  ;;  %v11103_v9 = vmov 3  }
  0xa7   :  { %1836 = vperm.xlu1 %5452, %v1800_v11   ;;  %v6019_v11 = vsel %vm688_vm11, 1.0, %v10809_v8  ;;  %vm760_vm11 = vcmp.eq.s32.totalorder %v5861_v62, %v5848_v4  ;;  %11021 = vst [vmem:[#allocation34_spill] sm:$0xff] %v6104_v48 }
  0xa8   :  { %v5911_v14 = vpop.permute.xlu0 %635  ;;  %11012 = vst [vmem:[#allocation26_spill] sm:$0xff] %v6019_v11 }
  0xa9   :  { %1878 = vperm.xlu0 %5483, %v1814_v37   ;;  %vm725_vm5 = vcmp.eq.s32.totalorder %v5861_v62, %v5911_v14  ;;  %vm728_vm10 = vcmp.eq.s32.totalorder %v5874_v12, %v5911_v14 }
  0xaa   :  { %v5926_v36 = vpop.permute.xlu1 %1824 }
  0xab   :  { %11000 = vst [vmem:[#allocation14_spill] sm:$0xff] %v5926_v36  ;;  %1875 = vperm.xlu1 %5452, %v1813_v22   ;;  %v6036_v22 = vsel %vm689_vm12, 1.0, %v10809_v8  ;;  %vm762_vm12 = vcmp.eq.s32.totalorder %v5871_v49, %v5848_v4 }
  0xac   :  { %v5955_v45 = vpop.permute.xlu0 %677  ;;  %v6129_v11 = vsel %vm762_vm12, 1.0, %v10809_v8  ;;  %vm716_vm12 = vcmp.eq.s32.totalorder %v5884_v21, %v5865_v5 }
  0xad   :  { %1839 = vperm.xlu0 %5483, %v1801_v13   ;;  %v6039_v13 = vsel %vm695_vm13, 1.0, %v10809_v8  ;;  %vm763_vm13 = vcmp.eq.s32.totalorder %v5874_v12, %v5848_v4  ;;  %11025 = vst [vmem:[#allocation38_spill] sm:$0xff] %v6129_v11  ;;  %vm798_vm15 = vcmp.eq.s32.totalorder %v5874_v12, %v5955_v45  ;;  %v11162_v52 = vld [vmem:[#allocation25_spill] sm:$0xff] }
  0xae   :  { %v5985_v2 = vpop.permute.xlu1 %1863  ;;  %v6132_v56 = vsel %vm763_vm13, 1.0, %v10809_v8  ;;  %vm717_vm13 = vcmp.eq.s32.totalorder %v5871_v49, %v5865_v5  ;;  %v6333_v27 = vsel %vm798_vm15, 1.0, %v10809_v8 }
  0xaf   :  { %11006 = vst [vmem:[#allocation20_spill] sm:$0xff] %v5985_v2  ;;  %5453 = vset.pattern.permute.xlu1 %v10775_v41  ;;  %v6059_v41 = vsel %vm697_vm1, 1.0, %v10809_v8  ;;  %vm707_vm1 = vcmp.eq.s32.totalorder %v5871_v49, %v5851_v54  ;;  %11026 = vst [vmem:[#allocation39_spill] sm:$0xff] %v6132_v56  ;;  %v6153_v56 = vsel %vm708_vm2, 1.0, %v10809_v8  ;;  %vm787_vm2 = vcmp.eq.s32.totalorder %v5871_v49, %v5878_v18 }
  0xb0   :  { %2438 = vperm.xlu1 %5453, %v2404_v23   ;;  %v6025_v37 = vpop.permute.xlu0 %641  ;;  %v6044_v23 = vsel %vm692_vm14, 1.0, %v10809_v8  ;;  %11014 = vst [vmem:[#allocation28_spill] sm:$0xff] %v6059_v41  ;;  %vm764_vm14 = vcmp.eq.s32.totalorder %v5881_v19, %v5848_v4  ;;  %v6107_v41 = vsel %vm768_vm9, 1.0, %v10809_v8  ;;  %v6150_v11 = vsel %vm707_vm1, 1.0, %v10809_v8  ;;  %11031 = vst [vmem:[#allocation44_spill] sm:$0xff] %v6153_v56 }
  0xb1   :  { %1884 = vperm.xlu0 %5483, %v1816_v35   ;;  %v6065_v35 = vsel %vm699_vm3, 1.0, %v10809_v8  ;;  %11022 = vst [vmem:[#allocation35_spill] sm:$0xff] %v6107_v41  ;;  %vm709_vm3 = vcmp.eq.s32.totalorder %v5881_v19, %v5851_v54  ;;  %v6126_v41 = vsel %vm760_vm11, 1.0, %v10809_v8  ;;  %v6135_v1 = vsel %vm764_vm14, 1.0, %v10809_v8  ;;  %11030 = vst [vmem:[#allocation43_spill] sm:$0xff] %v6150_v11 }
  0xb2   :  { %11016 = vst [vmem:[#allocation30_spill] sm:$0xff] %v6065_v35  ;;  %11024 = vst [vmem:[#allocation37_spill] sm:$0xff] %v6126_v41  ;;  %v6141_v54 = vsel %vm706_vm0, 1.0, %v10809_v8  ;;  %vm778_vm9 = vcmp.eq.s32.totalorder %v5874_v12, %v5857_v60  ;;  %v11033_v11 = vmov 1   ;;  %vm715_vm11 = vcmp.eq.s32.totalorder %v5861_v62, %v5865_v5 }
  0xb3   :  { %v6046_v38 = vpop.permute.xlu1 %2426  ;;  %11027 = vst [vmem:[#allocation40_spill] sm:$0xff] %v6135_v1  ;;  %11029 = vst [vmem:[#allocation42_spill] sm:$0xff] %v6141_v54  ;;  %v6156_v1 = vsel %vm709_vm3, 1.0, %v10809_v8  ;;  %v6183_v60 = vsel %vm777_vm6, 1.0, %v10809_v8  ;;  %vm718_vm14 = vcmp.eq.s32.totalorder %v5874_v12, %v5865_v5  ;;  %vm785_vm0 = vcmp.eq.s32.totalorder %v5861_v62, %v5878_v18 }
  0xb4   :  { %11013 = vst [vmem:[#allocation27_spill] sm:$0xff] %v6046_v38  ;;  %5454 = vset.pattern.permute.xlu1 %v11017_v58  ;;  %11032 = vst [vmem:[#allocation45_spill] sm:$0xff] %v6156_v1  ;;  %v6172_v1 = vsel %vm775_vm4, 1.0, %v10809_v8  ;;  %vm786_vm1 = vcmp.eq.s32.totalorder %v5884_v21, %v5878_v18  ;;  %v6207_v54 = vsel %vm716_vm12, 1.0, %v10809_v8  ;;  %vm788_vm3 = vcmp.eq.s32.totalorder %v5874_v12, %v5878_v18 }
  0xb5   :  { %89 = vperm.xlu1 %5454, %v5699_v16   ;;  %v6081_v35 = vpop.permute.xlu0 %1219  ;;  %11034 = vst [vmem:[#allocation46_spill] sm:$0xff] %v6172_v1  ;;  %11036 = vst [vmem:[#allocation48_spill] sm:$0xff] %v6183_v60  ;;  %v6192_v1 = vsel %vm778_vm9, 1.0, %v10809_v8  ;;  %v6204_v60 = vsel %vm715_vm11, 1.0, %v10809_v8  ;;  %v6216_v57 = vsel %vm717_vm13, 1.0, %v10809_v8  ;;  %vm789_vm4 = vcmp.eq.s32.totalorder %v5881_v19, %v5878_v18 }
  0xb6   :  { %11037 = vst [vmem:[#allocation49_spill] sm:$0xff] %v6192_v1  ;;  %11039 = vst [vmem:[#allocation51_spill] sm:$0xff] %v6204_v60  ;;  %v6219_v1 = vsel %vm718_vm14, 1.0, %v10809_v8  ;;  %v11044_v60 = vmov 4   ;;  %v6231_v41 = vsel %vm786_vm1, 1.0, %v10809_v8  ;;  %vm726_vm6 = vcmp.eq.s32.totalorder %v5884_v21, %v5911_v14 }
  0xb7   :  { %11040 = vst [vmem:[#allocation52_spill] sm:$0xff] %v6207_v54  ;;  %11041 = vst [vmem:[#allocation53_spill] sm:$0xff] %v6216_v57  ;;  %v6228_v54 = vsel %vm785_vm0, 1.0, %v10809_v8  ;;  %v6239_v61 = vsel %vm787_vm2, 1.0, %v10809_v8  ;;  %v6242_v18 = vsel %vm788_vm3, 1.0, %v10809_v8  ;;  %vm727_vm9 = vcmp.eq.s32.totalorder %v5871_v49, %v5911_v14 }
  0xb8   :  { %v6101_v16 = vpop.permute.xlu1 %77  ;;  %11042 = vst [vmem:[#allocation54_spill] sm:$0xff] %v6219_v1  ;;  %11045 = vst [vmem:[#allocation56_spill] sm:$0xff] %v6228_v54  ;;  %vm729_vm11 = vcmp.eq.s32.totalorder %v5881_v19, %v5911_v14  ;;  %vm1902_vm12 = vcmp.eq.s32.totalorder %v5871_v49, %v5926_v36  ;;  %vm1904_vm13 = vcmp.eq.s32.totalorder %v5881_v19, %v5926_v36  ;;  %v6277_v14 = vsel %vm1294_vm8, 1.0, %v10809_v8 }
  0xb9   :  { %92 = vperm.xlu1 %5454, %v5753_v43   ;;  %v6123_v48 = vpop.permute.xlu0 %1225  ;;  %11046 = vst [vmem:[#allocation57_spill] sm:$0xff] %v6231_v41  ;;  %11047 = vst [vmem:[#allocation58_spill] sm:$0xff] %v6239_v61  ;;  %v6249_v41 = vsel %vm789_vm4, 1.0, %v10809_v8  ;;  %v6266_v61 = vsel %vm725_vm5, 1.0, %v10809_v8  ;;  %v6280_v1 = vsel %vm727_vm9, 1.0, %v10809_v8  ;;  %v6283_v57 = vsel %vm728_vm10, 1.0, %v10809_v8 }
  0xba   :  { %11048 = vst [vmem:[#allocation59_spill] sm:$0xff] %v6242_v18  ;;  %11049 = vst [vmem:[#allocation60_spill] sm:$0xff] %v6249_v41  ;;  %v6269_v41 = vsel %vm726_vm6, 1.0, %v10809_v8  ;;  %vm796_vm14 = vcmp.eq.s32.totalorder %v5884_v21, %v5955_v45  ;;  %vm797_vm8 = vcmp.eq.s32.totalorder %v5871_v49, %v5955_v45  ;;  %vm799_vm0 = vcmp.eq.s32.totalorder %v5881_v19, %v5955_v45 }
  0xbb   :  { %11051 = vst [vmem:[#allocation62_spill] sm:$0xff] %v6266_v61  ;;  %11052 = vst [vmem:[#allocation63_spill] sm:$0xff] %v6269_v41  ;;  %v6291_v41 = vsel %vm729_vm11, 1.0, %v10809_v8  ;;  %v6302_v61 = vsel %vm1902_vm12, 1.0, %v10809_v8  ;;  %vm686_vm1 = vcmp.eq.s32.totalorder %v5884_v21, %v5834_v39  ;;  %vm691_vm2 = vcmp.eq.s32.totalorder %v5884_v21, %v5841_v47 }
  0xbc   :  { %v6147_v43 = vpop.permute.xlu1 %80  ;;  %11053 = vst [vmem:[#allocation64_spill] sm:$0xff] %v6280_v1  ;;  %11054 = vst [vmem:[#allocation65_spill] sm:$0xff] %v6283_v57  ;;  %v6312_v1 = vadd.s32 256, %v5716_v25  ;;  %v6330_v25 = vsel %vm797_vm8, 1.0, %v10809_v8  ;;  %vm735_vm3 = vcmp.eq.s32.totalorder %v5861_v62, %v6025_v37  ;;  %vm736_vm4 = vcmp.eq.s32.totalorder %v5884_v21, %v6025_v37 }
  0xbd   :  { %5455 = vset.pattern.permute.xlu1 %v11033_v11  ;;  %v6169_v56 = vpop.permute.xlu0 %1231  ;;  %11055 = vst [vmem:[#allocation66_spill] sm:$0xff] %v6291_v41  ;;  %11056 = vst [vmem:[#allocation67_spill] sm:$0xff] %v6302_v61  ;;  %v6309_v41 = vsel %vm1904_vm13, 1.0, %v10809_v8  ;;  %vm737_vm5 = vcmp.eq.s32.totalorder %v5871_v49, %v6025_v37  ;;  %vm738_vm6 = vcmp.eq.s32.totalorder %v5874_v12, %v6025_v37  ;;  %v6352_v39 = vsel %vm799_vm0, 1.0, %v10809_v8 }
  0xbe   :  { %632 = vperm.xlu1 %5455, %v5891_v24   ;;  %11057 = vst [vmem:[#allocation68_spill] sm:$0xff] %v6309_v41  ;;  %11058 = vst [vmem:[#allocation69_spill] sm:$0xff] %v6312_v1  ;;  %vm739_vm9 = vcmp.eq.s32.totalorder %v5881_v19, %v6025_v37  ;;  %vm2502_vm10 = vcmp.eq.s32.totalorder %v5871_v49, %v6046_v38  ;;  %v6355_v47 = vsel %vm686_vm1, 1.0, %v10809_v8  ;;  %v6363_v37 = vsel %vm735_vm3, 1.0, %v10809_v8 }
  0xbf   :  { %11062 = vst [vmem:[#allocation73_spill] sm:$0xff] %v6330_v25  ;;  %11063 = vst [vmem:[#allocation74_spill] sm:$0xff] %v6333_v27  ;;  %vm1291_vm11 = vcmp.eq.s32.totalorder %v5884_v21, %v5855_v59  ;;  %vm2504_vm12 = vcmp.eq.s32.totalorder %v5881_v19, %v6046_v38  ;;  %vm1901_vm13 = vcmp.eq.s32.totalorder %v5884_v21, %v5926_v36  ;;  %v6380_v27 = vsel %vm738_vm6, 1.0, %v10809_v8 }
  0xc0   :  { %11064 = vst [vmem:[#allocation75_spill] sm:$0xff] %v6352_v39  ;;  %11065 = vst [vmem:[#allocation76_spill] sm:$0xff] %v6355_v47  ;;  %v6377_v39 = vsel %vm737_vm5, 1.0, %v10809_v8  ;;  %vm1299_vm0 = vcmp.eq.s32.totalorder %v5881_v19, %v6081_v35  ;;  %vm1295_vm1 = vcmp.eq.s32.totalorder %v5861_v62, %v6081_v35  ;;  %vm155_vm6 = vcmp.eq.s32.totalorder %v5861_v62, %v6101_v16 }
  0xc1   :  { %v6201_v24 = vpop.permute.xlu1 %620  ;;  %v6213_v5 = vpop.permute.xlu0 %1237  ;;  %11067 = vst [vmem:[#allocation78_spill] sm:$0xff] %v6363_v37  ;;  %11069 = vst [vmem:[#allocation80_spill] sm:$0xff] %v6377_v39  ;;  %v6383_v37 = vsel %vm739_vm9, 1.0, %v10809_v8  ;;  %v6409_v39 = vsel %vm1291_vm11, 1.0, %v10809_v8  ;;  %v6441_v2 = vsel %vm1299_vm0, 1.0, %v10809_v8  ;;  %vm156_vm9 = vcmp.eq.s32.totalorder %v5884_v21, %v6101_v16 }
  0xc2   :  { %5456 = vset.pattern.permute.xlu1 %v11044_v60  ;;  %11070 = vst [vmem:[#allocation81_spill] sm:$0xff] %v6380_v27  ;;  %11071 = vst [vmem:[#allocation82_spill] sm:$0xff] %v6383_v37  ;;  %v6401_v37 = vsel %vm2504_vm12, 1.0, %v10809_v8  ;;  %v6424_v27 = vadd.s32 256, %v5818_v20  ;;  %v6470_v4 = vsel %vm1295_vm1, 1.0, %v10809_v8  ;;  %vm158_vm11 = vcmp.eq.s32.totalorder %v5874_v12, %v6101_v16 }
  0xc3   :  { %2480 = vperm.xlu1 %5456, %v5894_v26   ;;  %v6259_v26 = vsel %vm1292_vm7, 1.0, %v10809_v8  ;;  %vm795_vm7 = vcmp.eq.s32.totalorder %v5861_v62, %v5955_v45  ;;  %11073 = vst [vmem:[#allocation84_spill] sm:$0xff] %v6401_v37  ;;  %11074 = vst [vmem:[#allocation85_spill] sm:$0xff] %v6409_v39  ;;  %vm159_vm12 = vcmp.eq.s32.totalorder %v5881_v19, %v6101_v16  ;;  %v6496_v39 = vsel %vm155_vm6, 1.0, %v10809_v8 }
  0xc4   :  { %11076 = vst [vmem:[#allocation87_spill] sm:$0xff] %v6424_v27  ;;  %11080 = vst [vmem:[#allocation90_spill] sm:$0xff] %v6470_v4  ;;  %vm160_vm0 = vcmp.eq.s32.totalorder %v5861_v62, %v6147_v43  ;;  %vm161_vm1 = vcmp.eq.s32.totalorder %v5884_v21, %v6147_v43  ;;  %vm1316_vm6 = vcmp.eq.s32.totalorder %v5884_v21, %v6169_v56 }
  0xc5   :  { %v6263_v18 = vpop.permute.xlu0 %1243 }
  0xc6   :  { %v6261_v54 = vpop.permute.xlu1 %2468 }
  0xc7   :  { %11050 = vst [vmem:[#allocation61_spill] sm:$0xff] %v6261_v54  ;;  %5457 = vset.pattern.permute.xlu1 %v11017_v58  ;;  %v6321_v54 = vsel %vm796_vm14, 1.0, %v10809_v8 }
  0xc8   :  { %131 = vperm.xlu1 %5457, %v5704_v17   ;;  %v6318_v17 = vsel %vm795_vm7, 1.0, %v10809_v8  ;;  %11061 = vst [vmem:[#allocation72_spill] sm:$0xff] %v6321_v54  ;;  %v6358_v54 = vsel %vm691_vm2, 1.0, %v10809_v8  ;;  %vm1297_vm7 = vcmp.eq.s32.totalorder %v5871_v49, %v6081_v35  ;;  %vm1298_vm2 = vcmp.eq.s32.totalorder %v5874_v12, %v6081_v35 }
  0xc9   :  { %v6306_v57 = vpop.permute.xlu0 %1246  ;;  %11060 = vst [vmem:[#allocation71_spill] sm:$0xff] %v6318_v17  ;;  %11066 = vst [vmem:[#allocation77_spill] sm:$0xff] %v6358_v54  ;;  %v6427_v37 = vsel %vm1297_vm7, 1.0, %v10809_v8  ;;  %vm1306_vm7 = vcmp.eq.s32.totalorder %v5884_v21, %v6123_v48 }
  0xcb   :  { %v6323_v61 = vpop.permute.xlu1 %119 }
  0xcc   :  { %134 = vperm.xlu1 %5457, %v5808_v7   ;;  %v6366_v7 = vsel %vm736_vm4, 1.0, %v10809_v8 }
  0xcd   :  { %11068 = vst [vmem:[#allocation79_spill] sm:$0xff] %v6366_v7  ;;  %v6386_v7 = vsel %vm2502_vm10, 1.0, %v10809_v8  ;;  %vm157_vm10 = vcmp.eq.s32.totalorder %v5871_v49, %v6101_v16 }
  0xce   :  { %v6370_v45 = vpop.permute.xlu0 %71  ;;  %11072 = vst [vmem:[#allocation83_spill] sm:$0xff] %v6386_v7 }
  0xcf   :  { %v6372_v17 = vpop.permute.xlu1 %122  ;;  %vm147_vm14 = vcmp.eq.s32.totalorder %v5871_v49, %v6370_v45  ;;  %vm148_vm8 = vcmp.eq.s32.totalorder %v5874_v12, %v6370_v45  ;;  %vm149_vm15 = vcmp.eq.s32.totalorder %v5881_v19, %v6370_v45 }
  0xd0   :  { %5458 = vset.pattern.permute.xlu1 %v11033_v11  ;;  %v6430_v7 = vsel %vm147_vm14, 1.0, %v10809_v8  ;;  %v6433_v55 = vsel %vm148_vm8, 1.0, %v10809_v8  ;;  %v6436_v41 = vsel %vm149_vm15, 1.0, %v10809_v8  ;;  %vm1307_vm14 = vcmp.eq.s32.totalorder %v5871_v49, %v6123_v48 }
  0xd1   :  { %674 = vperm.xlu1 %5458, %v5897_v28   ;;  %v6421_v28 = vsel %vm1901_vm13, 1.0, %v10809_v8  ;;  %11077 = vst [vmem:[#allocation88_spill] sm:$0xff] %v6433_v55  ;;  %vm1305_vm13 = vcmp.eq.s32.totalorder %v5861_v62, %v6123_v48  ;;  %vm1308_vm8 = vcmp.eq.s32.totalorder %v5874_v12, %v6123_v48  ;;  %vm1309_vm15 = vcmp.eq.s32.totalorder %v5881_v19, %v6123_v48 }
  0xd2   :  { %v6415_v25 = vpop.permute.xlu0 %74  ;;  %11075 = vst [vmem:[#allocation86_spill] sm:$0xff] %v6421_v28  ;;  %v6539_v48 = vsel %vm1306_vm7, 1.0, %v10809_v8  ;;  %v6546_v55 = vsel %vm1307_vm14, 1.0, %v10809_v8  ;;  %v6556_v16 = vsel %vm1309_vm15, 1.0, %v10809_v8  ;;  %vm702_vm7 = vcmp.eq.s32.totalorder %v5871_v49, %v6201_v24 }
  0xd3   :  { %vm152_vm3 = vcmp.eq.s32.totalorder %v5871_v49, %v6415_v25  ;;  %vm153_vm4 = vcmp.eq.s32.totalorder %v5874_v12, %v6415_v25  ;;  %vm154_vm5 = vcmp.eq.s32.totalorder %v5881_v19, %v6415_v25  ;;  %11088 = vst [vmem:[#allocation98_spill] sm:$0xff] %v6546_v55  ;;  %11090 = vst [vmem:[#allocation100_spill] sm:$0xff] %v6556_v16 }
  0xd4   :  { %v6438_v1 = vpop.permute.xlu1 %662  ;;  %v4272_v20 = vsel %vm152_vm3, 1.0, %v10809_v8  ;;  %v6453_v27 = vsel %vm153_vm4, 1.0, %v10809_v8  ;;  %v4274_v28 = vsel %vm154_vm5, 1.0, %v10809_v8  ;;  %vm163_vm3 = vcmp.eq.s32.totalorder %v5874_v12, %v6147_v43 }
  0xd5   :  { %11078 = vst [vmem:[#allocation89_spill] sm:$0xff] %v6453_v27  ;;  %5459 = vset.pattern.permute.xlu1 %v11079_v6  ;;  %v522_v36 = vpack.c.bf16 %v4272_v20, %v6430_v7  ;;  %v524_v47 = vpack.c.bf16 %v4274_v28, %v6436_v41  ;;  %v6482_v41 = vsel %vm1298_vm2, 1.0, %v10809_v8  ;;  %v6502_v7 = vsel %vm156_vm9, 1.0, %v10809_v8 }
  0xd6   :  { %1234 = vperm.xlu1 %5459, %v5900_v10   ;;  %v6464_v54 = vpop.permute.xlu0 %113  ;;  %11081 = vst [vmem:[#allocation91_spill] sm:$0xff] %v6482_v41  ;;  %v6509_v28 = vsel %vm157_vm10, 1.0, %v10809_v8  ;;  %v6512_v10 = vsel %vm158_vm11, 1.0, %v10809_v8  ;;  %vm162_vm2 = vcmp.eq.s32.totalorder %v5871_v49, %v6147_v43  ;;  %v6549_v27 = vsel %vm1308_vm8, 1.0, %v10809_v8 }
  0xd7   :  { %11083 = vst [vmem:[#allocation93_spill] sm:$0xff] %v6509_v28  ;;  %11084 = vst [vmem:[#allocation94_spill] sm:$0xff] %v6512_v10  ;;  %v6533_v28 = vsel %vm159_vm12, 1.0, %v10809_v8  ;;  %vm164_vm4 = vcmp.eq.s32.totalorder %v5881_v19, %v6147_v43  ;;  %vm1315_vm5 = vcmp.eq.s32.totalorder %v5861_v62, %v6169_v56  ;;  %v6562_v6 = vsel %vm161_vm1, 1.0, %v10809_v8 }
  0xd8   :  { %11086 = vst [vmem:[#allocation96_spill] sm:$0xff] %v6533_v28  ;;  %11089 = vst [vmem:[#allocation99_spill] sm:$0xff] %v6549_v27  ;;  %v6559_v28 = vsel %vm160_vm0, 1.0, %v10809_v8  ;;  %v6565_v55 = vsel %vm162_vm2, 1.0, %v10809_v8  ;;  %v6569_v27 = vsel %vm163_vm3, 1.0, %v10809_v8  ;;  %vm1317_vm9 = vcmp.eq.s32.totalorder %v5871_v49, %v6169_v56 }
  0xd9   :  { %v6490_v20 = vpop.permute.xlu1 %1222  ;;  %11091 = vst [vmem:[#allocation101_spill] sm:$0xff] %v6565_v55  ;;  %11092 = vst [vmem:[#allocation102_spill] sm:$0xff] %v6569_v27  ;;  %vm1318_vm10 = vcmp.eq.s32.totalorder %v5874_v12, %v6169_v56  ;;  %v6580_v16 = vsel %vm164_vm4, 1.0, %v10809_v8  ;;  %vm1319_vm11 = vcmp.eq.s32.totalorder %v5881_v19, %v6169_v56  ;;  %vm700_vm12 = vcmp.eq.s32.totalorder %v5861_v62, %v6201_v24 }
  0xda   :  { %11082 = vst [vmem:[#allocation92_spill] sm:$0xff] %v6490_v20  ;;  %1276 = vperm.xlu1 %5459, %v5903_v63   ;;  %v6519_v41 = vpop.permute.xlu0 %110  ;;  %v6536_v63 = vsel %vm1305_vm13, 1.0, %v10809_v8  ;;  %11094 = vst [vmem:[#allocation104_spill] sm:$0xff] %v6580_v16  ;;  %vm701_vm13 = vcmp.eq.s32.totalorder %v5884_v21, %v6201_v24  ;;  %v11097_v16 = vpack.c.bf16 %v6044_v23, %v6016_v34 }
  0xdb   :  { %11085 = vst [vmem:[#allocation95_spill] sm:$0xff] %v6519_v41  ;;  %v11098_v56 = vpack.c.bf16 %v6052_v29, %v6036_v22  ;;  %vm703_vm14 = vcmp.eq.s32.totalorder %v5874_v12, %v6201_v24  ;;  %vm704_vm8 = vcmp.eq.s32.totalorder %v5881_v19, %v6201_v24  ;;  %vm1325_vm15 = vcmp.eq.s32.totalorder %v5861_v62, %v6213_v5 }
  0xdc   :  { %v1127_v27 = vadd.bf16 %v11097_v16, %v522_v36  ;;  %vm1326_vm0 = vcmp.eq.s32.totalorder %v5884_v21, %v6213_v5  ;;  %vm1327_vm1 = vcmp.eq.s32.totalorder %v5871_v49, %v6213_v5  ;;  %vm1328_vm2 = vcmp.eq.s32.totalorder %v5874_v12, %v6213_v5 }
  0xdd   :  { %v6543_v10 = vpop.permute.xlu1 %1264  ;;  %v11109_v16 = vpack.c.bf16 %v6427_v37, %v6259_v26  ;;  %v11110_v24 = vpack.c.bf16 %v6441_v2, %v6277_v14  ;;  %vm1329_vm3 = vcmp.eq.s32.totalorder %v5881_v19, %v6213_v5  ;;  %vm1335_vm4 = vcmp.eq.s32.totalorder %v5861_v62, %v6263_v18 }
  0xde   :  { %11087 = vst [vmem:[#allocation97_spill] sm:$0xff] %v6543_v10  ;;  %1279 = vperm.xlu1 %5459, %v5906_v30   ;;  %v6585_v30 = vsel %vm1315_vm5, 1.0, %v10809_v8  ;;  %v1129_v8 = vadd.bf16 %v11098_v56, %v524_v47  ;;  %vm1336_vm5 = vcmp.eq.s32.totalorder %v5884_v21, %v6263_v18 }
  0xdf   :  { %v6577_v43 = vpop.permute.xlu0 %2429  ;;  %11095 = vst [vmem:[#allocation105_spill] sm:$0xff] %v6585_v30  ;;  %v11099_v30 = vmov 0.0   ;;  %v6655_v56 = vadd.bf16 %v11109_v16, %v1127_v27 }
  0xe0   :  { %11093 = vst [vmem:[#allocation103_spill] sm:$0xff] %v6577_v43  ;;  %v6602_v10 = vsel %vm1316_vm6, 1.0, %v11099_v30  ;;  %v6605_v4 = vsel %vm1317_vm9, 1.0, %v11099_v30  ;;  %v6614_v36 = vsel %vm1319_vm11, 1.0, %v11099_v30  ;;  %v6629_v34 = vsel %vm700_vm12, 1.0, %v11099_v30 }
  0xe1   :  { %v6589_v55 = vpop.permute.xlu1 %1267  ;;  %11100 = vst [vmem:[#allocation107_spill] sm:$0xff] %v6602_v10  ;;  %11101 = vst [vmem:[#allocation108_spill] sm:$0xff] %v6605_v4  ;;  %v6635_v22 = vsel %vm701_vm13, 1.0, %v11099_v30  ;;  %v6641_v23 = vsel %vm702_vm7, 1.0, %v11099_v30  ;;  %v6663_v4 = vsel %vm704_vm8, 1.0, %v11099_v30  ;;  %v6674_v26 = vsel %vm1327_vm1, 1.0, %v11099_v30 }
  0xe2   :  { %11096 = vst [vmem:[#allocation106_spill] sm:$0xff] %v6589_v55  ;;  %v6608_v55 = vsel %vm1318_vm10, 1.0, %v11099_v30  ;;  %5460 = vset.pattern.permute.xlu1 %v11103_v9  ;;  %11104 = vst [vmem:[#allocation110_spill] sm:$0xff] %v6614_v36  ;;  %v6660_v36 = vadd.bf16 %v11110_v24, %v1129_v8  ;;  %vm1337_vm6 = vcmp.eq.s32.totalorder %v5871_v49, %v6263_v18  ;;  %v6686_v2 = vsel %vm1328_vm2, 1.0, %v11099_v30 }
  0xe3   :  { %11102 = vst [vmem:[#allocation109_spill] sm:$0xff] %v6608_v55  ;;  %1842 = vperm.xlu1 %5460, %v5914_v31   ;;  %v6623_v29 = vpop.permute.xlu0 %2471  ;;  %11106 = vst [vmem:[#allocation112_spill] sm:$0xff] %v6641_v23  ;;  %v6646_v31 = vsel %vm703_vm14, 1.0, %v11099_v30  ;;  %v6668_v55 = vsel %vm1325_vm15, 1.0, %v11099_v30  ;;  %v6671_v23 = vsel %vm1326_vm0, 1.0, %v11099_v30  ;;  %vm1338_vm9 = vcmp.eq.s32.totalorder %v5874_v12, %v6263_v18 }
  0xe4   :  { %11105 = vst [vmem:[#allocation111_spill] sm:$0xff] %v6623_v29  ;;  %11107 = vst [vmem:[#allocation113_spill] sm:$0xff] %v6646_v31  ;;  %vm1339_vm10 = vcmp.eq.s32.totalorder %v5881_v19, %v6263_v18  ;;  %vm1340_vm11 = vcmp.eq.s32.totalorder %v5861_v62, %v6306_v57  ;;  %vm1341_vm12 = vcmp.eq.s32.totalorder %v5884_v21, %v6306_v57  ;;  %v6708_v18 = vsel %vm1329_vm3, 1.0, %v11099_v30 }
  0xe5   :  { %11111 = vst [vmem:[#allocation115_spill] sm:$0xff] %v6663_v4  ;;  %11112 = vst [vmem:[#allocation116_spill] sm:$0xff] %v6668_v55  ;;  %vm1342_vm13 = vcmp.eq.s32.totalorder %v5871_v49, %v6306_v57  ;;  %vm1343_vm7 = vcmp.eq.s32.totalorder %v5874_v12, %v6306_v57  ;;  %vm1344_vm14 = vcmp.eq.s32.totalorder %v5881_v19, %v6306_v57  ;;  %v6711_v14 = vsel %vm1335_vm4, 1.0, %v11099_v30 }
  0xe6   :  { %v6650_v47 = vpop.permute.xlu1 %1830  ;;  %11113 = vst [vmem:[#allocation117_spill] sm:$0xff] %v6671_v23  ;;  %11114 = vst [vmem:[#allocation118_spill] sm:$0xff] %v6674_v26  ;;  %v6714_v27 = vsel %vm1336_vm5, 1.0, %v11099_v30  ;;  %v6717_v37 = vsel %vm1337_vm6, 1.0, %v11099_v30  ;;  %v6720_v16 = vsel %vm1338_vm9, 1.0, %v11099_v30  ;;  %v6723_v57 = vsel %vm1339_vm10, 1.0, %v11099_v30 }
  0xe7   :  { %11108 = vst [vmem:[#allocation114_spill] sm:$0xff] %v6650_v47  ;;  %1881 = vperm.xlu1 %5460, %v5918_v32   ;;  %v6683_v8 = vpop.permute.xlu0 %2435  ;;  %11116 = vst [vmem:[#allocation120_spill] sm:$0xff] %v6686_v2  ;;  %v6726_v24 = vsel %vm1340_vm11, 1.0, %v11099_v30  ;;  %vm225_vm8 = vcmp.eq.s32.totalorder %v5861_v62, %v6323_v61  ;;  %v6737_v4 = vsel %vm1342_vm13, 1.0, %v11099_v30  ;;  %vm226_vm15 = vcmp.eq.s32.totalorder %v5884_v21, %v6323_v61 }
  0xe8   :  { %11115 = vst [vmem:[#allocation119_spill] sm:$0xff] %v6683_v8  ;;  %11118 = vst [vmem:[#allocation122_spill] sm:$0xff] %v6708_v18  ;;  %v6734_v18 = vsel %vm1341_vm12, 1.0, %v11099_v30  ;;  %vm227_vm0 = vcmp.eq.s32.totalorder %v5871_v49, %v6323_v61  ;;  %vm228_vm1 = vcmp.eq.s32.totalorder %v5874_v12, %v6323_v61  ;;  %vm229_vm2 = vcmp.eq.s32.totalorder %v5881_v19, %v6323_v61 }
  0xe9   :  { %11119 = vst [vmem:[#allocation123_spill] sm:$0xff] %v6711_v14  ;;  %11120 = vst [vmem:[#allocation124_spill] sm:$0xff] %v6714_v27  ;;  %vm145_vm3 = vcmp.eq.s32.totalorder %v5861_v62, %v6370_v45  ;;  %vm230_vm4 = vcmp.eq.s32.totalorder %v5861_v62, %v6372_v17  ;;  %vm231_vm5 = vcmp.eq.s32.totalorder %v5884_v21, %v6372_v17  ;;  %v6780_v26 = vsel %vm226_vm15, 1.0, %v11099_v30 }
  0xea   :  { %v6702_v32 = vpop.permute.xlu1 %1869  ;;  %11121 = vst [vmem:[#allocation125_spill] sm:$0xff] %v6717_v37  ;;  %11122 = vst [vmem:[#allocation126_spill] sm:$0xff] %v6720_v16  ;;  %v6740_v37 = vsel %vm1343_vm7, 1.0, %v11099_v30  ;;  %vm232_vm6 = vcmp.eq.s32.totalorder %v5871_v49, %v6372_v17  ;;  %vm233_vm9 = vcmp.eq.s32.totalorder %v5874_v12, %v6372_v17  ;;  %vm150_vm10 = vcmp.eq.s32.totalorder %v5861_v62, %v6415_v25 }
  0xeb   :  { %11117 = vst [vmem:[#allocation121_spill] sm:$0xff] %v6702_v32  ;;  %11123 = vst [vmem:[#allocation127_spill] sm:$0xff] %v6723_v57  ;;  %5461 = vset.pattern.permute.xlu1 %v11044_v60  ;;  %v6731_v5 = vpop.permute.xlu0 %2477  ;;  %v6743_v57 = vsel %vm1344_vm14, 1.0, %v11099_v30  ;;  %vm234_vm11 = vcmp.eq.s32.totalorder %v5881_v19, %v6372_v17  ;;  %v6795_v2 = vsel %vm229_vm2, 1.0, %v11099_v30  ;;  %vm146_vm12 = vcmp.eq.s32.totalorder %v5884_v21, %v6370_v45 }
  0xec   :  { %11124 = vst [vmem:[#allocation128_spill] sm:$0xff] %v6726_v24  ;;  %11125 = vst [vmem:[#allocation129_spill] sm:$0xff] %v6731_v5  ;;  %2444 = vperm.xlu1 %5461, %v5929_v42   ;;  %v6783_v24 = vsel %vm227_vm0, 1.0, %v11099_v30  ;;  %v6816_v61 = vsel %vm231_vm5, 1.0, %v11099_v30  ;;  %v6828_v31 = vsel %vm233_vm9, 1.0, %v11099_v30  ;;  %v6837_v14 = vsel %vm234_vm11, 1.0, %v11099_v30 }
  0xed   :  { %11126 = vst [vmem:[#allocation130_spill] sm:$0xff] %v6734_v18  ;;  %11127 = vst [vmem:[#allocation131_spill] sm:$0xff] %v6737_v4  ;;  %v6755_v4 = vsel %vm225_vm8, 1.0, %v11099_v30  ;;  %v6786_v18 = vsel %vm228_vm1, 1.0, %v11099_v30  ;;  %vm151_vm13 = vcmp.eq.s32.totalorder %v5884_v21, %v6415_v25  ;;  %vm215_vm7 = vcmp.eq.s32.totalorder %v5861_v62, %v6464_v54 }
  0xee   :  { %11128 = vst [vmem:[#allocation132_spill] sm:$0xff] %v6740_v37  ;;  %11129 = vst [vmem:[#allocation133_spill] sm:$0xff] %v6743_v57  ;;  %v6776_v37 = vld [vmem:[%s10764_s0 + $0x40] sm:$0xff]  ;;  %vm217_vm14 = vcmp.eq.s32.totalorder %v5871_v49, %v6464_v54  ;;  %vm770_vm8 = vcmp.eq.s32.totalorder %v5861_v62, %v6438_v1  ;;  %vm771_vm15 = vcmp.eq.s32.totalorder %v5884_v21, %v6438_v1 }
  0xef   :  { %v6763_v42 = vpop.permute.xlu1 %2432  ;;  %v6771_v57 = vpop.permute.xlu0 %2441  ;;  %11132 = vst [vmem:[#allocation136_spill] sm:$0xff] %v6776_v37  ;;  %v1803_v16 = vadd.s32 384, %v6776_v37  ;;  %11133 = vst [vmem:[#allocation137_spill] sm:$0xff] %v6783_v24  ;;  %v6803_v24 = vsel %vm145_vm3, 1.0, %v11099_v30  ;;  %vm218_vm0 = vcmp.eq.s32.totalorder %v5874_v12, %v6464_v54  ;;  %vm1301_vm1 = vcmp.eq.s32.totalorder %v5884_v21, %v6490_v20 }
  0xf0   :  { %11130 = vst [vmem:[#allocation134_spill] sm:$0xff] %v6763_v42  ;;  %11131 = vst [vmem:[#allocation135_spill] sm:$0xff] %v6771_v57  ;;  %5462 = vset.pattern.permute.xlu1 %v11017_v58  ;;  %vm772_vm2 = vcmp.eq.s32.totalorder %v5871_v49, %v6438_v1  ;;  %vm773_vm3 = vcmp.eq.s32.totalorder %v5874_v12, %v6438_v1  ;;  %vm219_vm5 = vcmp.eq.s32.totalorder %v5881_v19, %v6464_v54 }
  0xf1   :  { %11134 = vst [vmem:[#allocation138_spill] sm:$0xff] %v6786_v18  ;;  %11135 = vst [vmem:[#allocation139_spill] sm:$0xff] %v6795_v2  ;;  %v6809_v18 = vsel %vm230_vm4, 1.0, %v11099_v30  ;;  %95 = vperm.xlu1 %5462, %v6776_v37   ;;  %1845 = vperm.xlu0 %5483, %v1803_v16   ;;  %v6822_v2 = vsel %vm232_vm6, 1.0, %v11099_v30  ;;  %v6834_v16 = vsel %vm150_vm10, 1.0, %v11099_v30  ;;  %vm774_vm4 = vcmp.eq.s32.totalorder %v5881_v19, %v6438_v1 }
  0xf2   :  { %11136 = vst [vmem:[#allocation140_spill] sm:$0xff] %v6822_v2  ;;  %11137 = vst [vmem:[#allocation141_spill] sm:$0xff] %v6828_v31  ;;  %v6868_v31 = vld [vmem:[%s10764_s0 + $0x48] sm:$0xff]  ;;  %v6877_v27 = vsel %vm217_vm14, 1.0, %v11099_v30  ;;  %v1066_v55 = vpack.c.bf16 %v6635_v22, %v6049_v40  ;;  %vm1290_vm6 = vcmp.eq.s32.totalorder %v5861_v62, %v5855_v59  ;;  %v6884_v23 = vsel %vm770_vm8, 1.0, %v11099_v30 }
  0xf3   :  { %11138 = vst [vmem:[#allocation142_spill] sm:$0xff] %v6837_v14  ;;  %v6847_v2 = vpop.permute.xlu0 %2483  ;;  %v6874_v14 = vsel %vm215_vm7, 1.0, %v11099_v30  ;;  %11141 = vst [vmem:[#allocation145_spill] sm:$0xff] %v6877_v27  ;;  %v6890_v10 = vsel %vm218_vm0, 1.0, %v11099_v30  ;;  %vm2501_vm9 = vcmp.eq.s32.totalorder %v5884_v21, %v6046_v38  ;;  %v4526_v40 = vsel %vm1301_vm1, 1.0, %v11099_v30 }
  0xf4   :  { %v6845_v17 = vpop.permute.xlu1 %83  ;;  %11140 = vst [vmem:[#allocation144_spill] sm:$0xff] %v6847_v2  ;;  %11142 = vst [vmem:[#allocation146_spill] sm:$0xff] %v6884_v23  ;;  %v6887_v2 = vsel %vm771_vm15, 1.0, %v11099_v30  ;;  %v6906_v22 = vsel %vm772_vm2, 1.0, %v11099_v30  ;;  %v6912_v9 = vsel %vm773_vm3, 1.0, %v11099_v30  ;;  %v526_v23 = vpack.c.bf16 %v6562_v6, %v6502_v7  ;;  %v6954_v6 = vld [vmem:[%s10764_s0 + $0xb8] sm:$0xff] }
  0xf5   :  { %11139 = vst [vmem:[#allocation143_spill] sm:$0xff] %v6845_v17  ;;  %98 = vperm.xlu1 %5462, %v6868_v31   ;;  %11143 = vst [vmem:[#allocation147_spill] sm:$0xff] %v6890_v10  ;;  %vm216_vm10 = vcmp.eq.s32.totalorder %v5884_v21, %v6464_v54  ;;  %vm221_vm11 = vcmp.eq.s32.totalorder %v5884_v21, %v5827_v33  ;;  %vm1300_vm7 = vcmp.eq.s32.totalorder %v5861_v62, %v6490_v20  ;;  %v11169_v54 = vld [vmem:[#allocation85_spill] sm:$0xff]  ;;  %v11176_v20 = vld [vmem:[#allocation18_spill] sm:$0xff] }
  0xf6   :  { %11146 = vst [vmem:[#allocation150_spill] sm:$0xff] %v6906_v22  ;;  %11147 = vst [vmem:[#allocation151_spill] sm:$0xff] %v6912_v9  ;;  %v6928_v22 = vsel %vm219_vm5, 1.0, %v11099_v30  ;;  %v1131_v7 = vadd.bf16 %v1066_v55, %v526_v23  ;;  %vm210_vm14 = vcmp.eq.s32.totalorder %v5861_v62, %v6519_v41  ;;  %vm211_vm8 = vcmp.eq.s32.totalorder %v5884_v21, %v6519_v41 }
  0xf7   :  { %v6894_v37 = vpop.permute.xlu0 %2447  ;;  %11149 = vst [vmem:[#allocation153_spill] sm:$0xff] %v6928_v22  ;;  %vm212_vm15 = vcmp.eq.s32.totalorder %v5871_v49, %v6519_v41  ;;  %vm213_vm0 = vcmp.eq.s32.totalorder %v5874_v12, %v6519_v41  ;;  %v4271_v23 = vsel %vm151_vm13, 1.0, %v11099_v30  ;;  %vm2507_vm1 = vcmp.eq.s32.totalorder %v5871_v49, %v6577_v43 }
  0xf8   :  { %v6892_v57 = vpop.permute.xlu1 %86  ;;  %11145 = vst [vmem:[#allocation149_spill] sm:$0xff] %v6894_v37  ;;  %v6918_v37 = vsel %vm774_vm4, 1.0, %v11099_v30  ;;  %vm2509_vm2 = vcmp.eq.s32.totalorder %v5881_v19, %v6577_v43  ;;  %vm1296_vm3 = vcmp.eq.s32.totalorder %v5884_v21, %v6081_v35  ;;  %v1065_v45 = vpack.c.bf16 %v6629_v34, %v6039_v13 }
  0xf9   :  { %11144 = vst [vmem:[#allocation148_spill] sm:$0xff] %v6892_v57  ;;  %11148 = vst [vmem:[#allocation152_spill] sm:$0xff] %v6918_v37  ;;  %5463 = vset.pattern.permute.xlu1 %v11033_v11  ;;  %v1671_v37 = vpack.c.bf16 %v6539_v48, %v4526_v40  ;;  %v4266_v48 = vsel %vm146_vm12, 1.0, %v11099_v30  ;;  %v6985_v25 = vsel %vm210_vm14, 1.0, %v11099_v30  ;;  %vm2506_vm12 = vcmp.eq.s32.totalorder %v5884_v21, %v6577_v43 }
  0xfa   :  { %638 = vperm.xlu1 %5463, %v5936_v44   ;;  %v1818_v44 = vadd.s32 384, %v6954_v6  ;;  %11152 = vst [vmem:[#allocation156_spill] sm:$0xff] %v6985_v25  ;;  %v7000_v13 = vsel %vm212_vm15, 1.0, %v11099_v30  ;;  %v7006_v34 = vsel %vm213_vm0, 1.0, %v11099_v30  ;;  %v525_v9 = vpack.c.bf16 %v6559_v28, %v6496_v39 }
  0xfb   :  { %v6949_v1 = vpop.permute.xlu0 %2489  ;;  %v6969_v40 = vadd.bf16 %v1671_v37, %v1131_v7  ;;  %v6991_v37 = vsel %vm211_vm8, 1.0, %v11099_v30  ;;  %11154 = vst [vmem:[#allocation158_spill] sm:$0xff] %v7000_v13  ;;  %11155 = vst [vmem:[#allocation159_spill] sm:$0xff] %v7006_v34  ;;  %vm1360_vm13 = vcmp.eq.s32.totalorder %v5861_v62, %v5863_v3  ;;  %vm1365_vm4 = vcmp.eq.s32.totalorder %v5861_v62, %v5876_v15 }
  0xfc   :  { %11150 = vst [vmem:[#allocation154_spill] sm:$0xff] %v6949_v1  ;;  %1890 = vperm.xlu0 %5483, %v1818_v44   ;;  %11153 = vst [vmem:[#allocation157_spill] sm:$0xff] %v6991_v37  ;;  %v521_v44 = vpack.c.bf16 %v4271_v23, %v4266_v48  ;;  %v7021_v22 = vsel %vm2507_vm1, 1.0, %v11099_v30  ;;  %v4521_v39 = vsel %vm1296_vm3, 1.0, %v11099_v30  ;;  %v4525_v28 = vsel %vm1300_vm7, 1.0, %v11099_v30 }
  0xfd   :  { %v6959_v55 = vpop.permute.xlu1 %626  ;;  %11157 = vst [vmem:[#allocation161_spill] sm:$0xff] %v7021_v22  ;;  %v7040_v23 = vsel %vm2506_vm12, 1.0, %v11099_v30  ;;  %vm761_vm5 = vcmp.eq.s32.totalorder %v5884_v21, %v11160_v53  ;;  %v1130_v27 = vadd.bf16 %v1065_v45, %v525_v9  ;;  %v1670_v51 = vpack.c.bf16 %v6536_v63, %v4525_v28  ;;  %v11165_v28 = vld [vmem:[#allocation77_spill] sm:$0xff]  ;;  %v11189_v22 = vld [vmem:[#allocation68_spill] sm:$0xff] }
  0xfe   :  { %11151 = vst [vmem:[#allocation155_spill] sm:$0xff] %v6959_v55  ;;  %5464 = vset.pattern.permute.xlu1 %v11044_v60  ;;  %v7049_v35 = vsel %vm2501_vm9, 1.0, %v11099_v30  ;;  %v11161_v10 = vpack.c.bf16 %v6834_v16, %v6803_v24  ;;  %v11163_v34 = vpack.c.bf16 %v6068_v0, %v11162_v52  ;;  %v4515_v9 = vsel %vm1290_vm6, 1.0, %v11099_v30  ;;  %v11166_v24 = vld [vmem:[#allocation76_spill] sm:$0xff]  ;;  %v7080_v52 = vld [vmem:[%s10764_s0 + $0xb0] sm:$0xff] }
  0xff   :  { %2486 = vperm.xlu1 %5464, %v5939_v46   ;;  %v7009_v7 = vpop.permute.xlu0 %2453  ;;  %v7027_v46 = vsel %vm2509_vm2, 1.0, %v11099_v30  ;;  %v4336_v63 = vsel %vm216_vm10, 1.0, %v11099_v30  ;;  %v11167_v16 = vpack.c.bf16 %v11165_v28, %v11166_v24  ;;  %vm2505_vm9 = vcmp.eq.s32.totalorder %v5861_v62, %v6577_v43  ;;  %11168 = vst [vmem:[#allocation25_spill] sm:$0xff] %v7080_v52  ;;  %v11170_v28 = vld [vmem:[#allocation90_spill] sm:$0xff] }
 0x100   :  { %11156 = vst [vmem:[#allocation160_spill] sm:$0xff] %v7009_v7  ;;  %11158 = vst [vmem:[#allocation162_spill] sm:$0xff] %v7027_v46  ;;  %v1125_v13 = vadd.bf16 %v11163_v34, %v11161_v10  ;;  %vm1366_vm7 = vcmp.eq.s32.totalorder %v5884_v21, %v5876_v15  ;;  %v7075_v0 = vadd.bf16 %v1670_v51, %v1130_v27  ;;  %v4466_v51 = vsel %vm761_vm5, 1.0, %v11099_v30  ;;  %v11171_v24 = vld [vmem:[#allocation14_spill] sm:$0xff]  ;;  %v11175_v34 = vld [vmem:[#allocation61_spill] sm:$0xff] }
 0x101   :  { %v1126_v37 = vadd.bf16 %v11167_v16, %v521_v44  ;;  %v1666_v10 = vpack.c.bf16 %v4521_v39, %v11169_v54  ;;  %v4341_v44 = vsel %vm221_vm11, 1.0, %v11099_v30  ;;  %vm2500_vm6 = vcmp.eq.s32.totalorder %v5861_v62, %v6046_v38  ;;  %v11178_v7 = vld [vmem:[#allocation106_spill] sm:$0xff] }
 0x102   :  { %v7037_v48 = vpop.permute.xlu1 %2474  ;;  %v556_v27 = vpack.c.bf16 %v4341_v44, %v4336_v63  ;;  %vm1361_vm10 = vcmp.eq.s32.totalorder %v5884_v21, %v5863_v3  ;;  %vm2576_vm14 = vcmp.eq.s32.totalorder %v5884_v21, %v6623_v29  ;;  %v1665_v33 = vpack.c.bf16 %v11170_v28, %v4515_v9  ;;  %v11173_v44 = vld [vmem:[#allocation24_spill] sm:$0xff] }
 0x103   :  { %11159 = vst [vmem:[#allocation163_spill] sm:$0xff] %v7037_v48  ;;  %5465 = vset.pattern.permute.xlu1 %v11017_v58  ;;  %v7066_v45 = vpop.permute.xlu0 %2495  ;;  %vm1900_vm11 = vcmp.eq.s32.totalorder %v5861_v62, %v11171_v24  ;;  %v7109_v53 = vsel %vm2505_vm9, 1.0, %v11099_v30  ;;  %v4591_v63 = vsel %vm1366_vm7, 1.0, %v11099_v30  ;;  %v7117_v54 = vadd.bf16 %v1666_v10, %v1126_v37  ;;  %v11174_v28 = vld [vmem:[#allocation20_spill] sm:$0xff] }
 0x104   :  { %11164 = vst [vmem:[#allocation8_spill] sm:$0xff] %v7066_v45  ;;  %137 = vperm.xlu1 %5465, %v7080_v52   ;;  %v1096_v9 = vpack.c.bf16 %v4466_v51, %v11173_v44  ;;  %vm1966_vm8 = vcmp.eq.s32.totalorder %v5884_v21, %v11174_v28  ;;  %vm2571_vm15 = vcmp.eq.s32.totalorder %v5884_v21, %v11175_v34  ;;  %v7131_v43 = vsel %vm2500_vm6, 1.0, %v11099_v30  ;;  %v11177_v45 = vld [vmem:[#allocation37_spill] sm:$0xff] }
 0x105   :  { %v7125_v25 = vadd.bf16 %v1665_v33, %v1125_v13  ;;  %v4586_v37 = vsel %vm1361_vm10, 1.0, %v11099_v30  ;;  %v7135_v10 = vsel %vm2576_vm14, 1.0, %v11099_v30  ;;  %v7138_v51 = vsel %vm1900_vm11, 1.0, %v11099_v30 }
 0x106   :  { %v1701_v13 = vpack.c.bf16 %v4591_v63, %v4586_v37  ;;  %v7148_v38 = vsel %vm2571_vm15, 1.0, %v11099_v30  ;;  %v1095_v24 = vpack.c.bf16 %v11177_v45, %v11176_v20  ;;  %vm2575_vm0 = vcmp.eq.s32.totalorder %v5861_v62, %v6623_v29  ;;  %v11180_v45 = vld [vmem:[#allocation97_spill] sm:$0xff] }
 0x107   :  { %v7100_v39 = vpop.permute.xlu1 %125  ;;  %v7115_v16 = vpop.permute.xlu0 %2456  ;;  %vm1376_vm1 = vcmp.eq.s32.totalorder %v5884_v21, %v11178_v7  ;;  %v7161_v63 = vadd.s32 384, %v6868_v31  ;;  %v4590_v20 = vsel %vm1365_vm4, 1.0, %v11099_v30  ;;  %vm1371_vm2 = vcmp.eq.s32.totalorder %v5884_v21, %v11180_v45 }
 0x108   :  { %11172 = vst [vmem:[#allocation77_spill] sm:$0xff] %v7115_v16  ;;  %140 = vperm.xlu1 %5465, %v6954_v6   ;;  %v1161_v6 = vadd.bf16 %v1096_v9, %v556_v27  ;;  %v7145_v16 = vsel %vm1966_vm8, 1.0, %v11099_v30  ;;  %v4585_v9 = vsel %vm1360_vm13, 1.0, %v11099_v30  ;;  %vm165_vm3 = vcmp.eq.s32.totalorder %v5861_v62, %v6845_v17  ;;  %v11182_v27 = vld [vmem:[#allocation23_spill] sm:$0xff] }
 0x109   :  { %v11181_v31 = vpack.c.bf16 %v5951_v50, %v6874_v14  ;;  %vm1965_vm12 = vcmp.eq.s32.totalorder %v5861_v62, %v11174_v28  ;;  %vm2570_vm13 = vcmp.eq.s32.totalorder %v5861_v62, %v11175_v34  ;;  %vm166_vm4 = vcmp.eq.s32.totalorder %v5884_v21, %v6845_v17 }
 0x10a   :  { %vm170_vm5 = vcmp.eq.s32.totalorder %v5861_v62, %v6892_v57  ;;  %v7188_v15 = vadd.bf16 %v1701_v13, %v1161_v6  ;;  %v7194_v50 = vsel %vm2575_vm0, 1.0, %v11099_v30  ;;  %vm171_vm9 = vcmp.eq.s32.totalorder %v5884_v21, %v6892_v57 }
 0x10b   :  { %v7142_v33 = vpop.permute.xlu1 %128  ;;  %v7156_v44 = vpop.permute.xlu0 %2498  ;;  %v1160_v37 = vadd.bf16 %v1095_v24, %v11181_v31  ;;  %v1700_v14 = vpack.c.bf16 %v4590_v20, %v4585_v9  ;;  %vm1911_vm7 = vcmp.eq.s32.totalorder %v5884_v21, %v6650_v47  ;;  %vm2511_vm6 = vcmp.eq.s32.totalorder %v5884_v21, %v6763_v42 }
 0x10c   :  { %11179 = vst [vmem:[#allocation76_spill] sm:$0xff] %v7156_v44  ;;  %5466 = vset.pattern.permute.xlu1 %v11033_v11  ;;  %v7203_v24 = vsel %vm165_vm3, 1.0, %v11099_v30  ;;  %v7208_v13 = vsel %vm1965_vm12, 1.0, %v11099_v30  ;;  %vm2516_vm10 = vcmp.eq.s32.totalorder %v5884_v21, %v6683_v8  ;;  %v7216_v9 = vsel %vm166_vm4, 1.0, %v11099_v30 }
 0x10d   :  { %680 = vperm.xlu1 %5466, %v11182_v27   ;;  %v7211_v27 = vsel %vm2570_vm13, 1.0, %v11099_v30  ;;  %v7219_v20 = vsel %vm170_vm5, 1.0, %v11099_v30  ;;  %v7223_v29 = vadd.bf16 %v1700_v14, %v1160_v37  ;;  %vm1375_vm14 = vcmp.eq.s32.totalorder %v5861_v62, %v11178_v7  ;;  %v11185_v14 = vld [vmem:[#allocation69_spill] sm:$0xff] }
 0x10e   :  { %v7230_v28 = vsel %vm171_vm9, 1.0, %v11099_v30  ;;  %v11184_v3 = vmov 2   ;;  %v7234_v44 = vsel %vm1911_vm7, 1.0, %v11099_v30  ;;  %v7237_v1 = vsel %vm2511_vm6, 1.0, %v11099_v30 }
 0x10f   :  { %v7240_v37 = vadd.s32 384, %v7080_v52  ;;  %vm710_vm11 = vcmp.eq.s32.totalorder %v5861_v62, %v6959_v55  ;;  %v7248_v34 = vsel %vm2516_vm10, 1.0, %v11099_v30  ;;  %vm2510_vm15 = vcmp.eq.s32.totalorder %v5861_v62, %v6763_v42  ;;  %v11186_v42 = vld [vmem:[#allocation67_spill] sm:$0xff] }
 0x110   :  { %v7205_v6 = vpop.permute.xlu1 %668  ;;  %v7221_v31 = vpop.permute.xlu0 %1821  ;;  %vm1370_vm0 = vcmp.eq.s32.totalorder %v5861_v62, %v11180_v45  ;;  %vm711_vm4 = vcmp.eq.s32.totalorder %v5884_v21, %v6959_v55  ;;  %vm2515_vm5 = vcmp.eq.s32.totalorder %v5861_v62, %v6683_v8  ;;  %vm1910_vm9 = vcmp.eq.s32.totalorder %v5861_v62, %v6650_v47  ;;  %v11192_v8 = vld [vmem:[#allocation33_spill] sm:$0xff] }
 0x111   :  { %11183 = vst [vmem:[#allocation85_spill] sm:$0xff] %v7221_v31  ;;  %5467 = vset.pattern.permute.xlu1 %v11184_v3  ;;  %vm1897_vm8 = vcmp.eq.s32.totalorder %v5871_v49, %v7221_v31  ;;  %vm1895_vm3 = vcmp.eq.s32.totalorder %v5861_v62, %v7221_v31  ;;  %vm1899_vm12 = vcmp.eq.s32.totalorder %v5881_v19, %v7221_v31  ;;  %v7276_v41 = vsel %vm2510_vm15, 1.0, %v11099_v30  ;;  %v11261_v45 = vld [vmem:[#allocation117_spill] sm:$0xff] }
 0x112   :  { %1240 = vperm.xlu1 %5467, %v11185_v14   ;;  %v4642_v59 = vsel %vm1897_vm8, 1.0, %v11099_v30  ;;  %vm1896_vm13 = vcmp.eq.s32.totalorder %v5884_v21, %v7221_v31  ;;  %v4644_v14 = vsel %vm1899_vm12, 1.0, %v11099_v30  ;;  %vm2581_vm7 = vcmp.eq.s32.totalorder %v5884_v21, %v7037_v48 }
 0x113   :  { %v2272_v57 = vpack.c.bf16 %v11186_v42, %v4642_v59  ;;  %v2274_v17 = vpack.c.bf16 %v11189_v22, %v4644_v14  ;;  %v4641_v52 = vsel %vm1896_vm13, 1.0, %v11099_v30  ;;  %v11191_v59 = vld [vmem:[#allocation70_spill] sm:$0xff]  ;;  %v4640_v42 = vsel %vm1895_vm3, 1.0, %v11099_v30 }
 0x114   :  { %v7265_v3 = vpop.permute.xlu0 %1866  ;;  %v1101_v22 = vpack.c.bf16 %v6887_v2, %v11192_v8  ;;  %v4601_v14 = vsel %vm1376_vm1, 1.0, %v11099_v30  ;;  %v11194_v2 = vld [vmem:[#allocation86_spill] sm:$0xff]  ;;  %vm1976_vm1 = vcmp.eq.s32.totalorder %v5884_v21, %v6702_v32  ;;  %vm2586_vm6 = vcmp.eq.s32.totalorder %v5884_v21, %v6731_v5 }
 0x115   :  { %11187 = vst [vmem:[#allocation90_spill] sm:$0xff] %v7265_v3  ;;  %v7267_v46 = vpop.permute.xlu1 %1228  ;;  %v7279_v11 = vadd.bf16 %v2272_v57, %v6655_v56  ;;  %v7293_v19 = vadd.bf16 %v2274_v17, %v6660_v36  ;;  %v7296_v56 = vsel %vm2515_vm5, 1.0, %v11099_v30  ;;  %v561_v57 = vpack.c.bf16 %v6816_v61, %v6780_v26 }
 0x116   :  { %11188 = vst [vmem:[#allocation24_spill] sm:$0xff] %v7267_v46  ;;  %1282 = vperm.xlu1 %5467, %v11191_v59   ;;  %v4596_v59 = vsel %vm1371_vm2, 1.0, %v11099_v30  ;;  %v7317_v36 = vsel %vm710_vm11, 1.0, %v11099_v30  ;;  %v7323_v26 = vsel %vm711_vm4, 1.0, %v11099_v30  ;;  %v2270_v61 = vpack.c.bf16 %v7138_v51, %v4640_v42 }
 0x117   :  { %11190 = vst [vmem:[#allocation18_spill] sm:$0xff] %v7279_v11  ;;  %11193 = vst [vmem:[#allocation37_spill] sm:$0xff] %v7293_v19  ;;  %v2271_v11 = vpack.c.bf16 %v11194_v2, %v4641_v52  ;;  %v1706_v17 = vpack.c.bf16 %v4601_v14, %v4596_v59  ;;  %v11195_v2 = vld [vmem:[#allocation87_spill] sm:$0xff]  ;;  %v7335_v31 = vsel %vm1910_vm9, 1.0, %v11099_v30  ;;  %v1166_v12 = vadd.bf16 %v1101_v22, %v561_v57  ;;  %v11196_v22 = vld [vmem:[#allocation32_spill] sm:$0xff] }
 0x118   :  { %v7326_v52 = vpop.permute.xlu0 %1827  ;;  %vm1970_vm2 = vcmp.eq.s32.totalorder %v5861_v62, %v7265_v3  ;;  %v7342_v51 = vsel %vm1976_vm1, 1.0, %v11099_v30  ;;  %v7345_v42 = vsel %vm2581_vm7, 1.0, %v11099_v30  ;;  %v7348_v14 = vsel %vm2586_vm6, 1.0, %v11099_v30  ;;  %v11197_v57 = vld [vmem:[#allocation146_spill] sm:$0xff] }
 0x119   :  { %v7304_v8 = vpop.permute.xlu1 %1270  ;;  %v2336_v59 = vadd.bf16 %v2271_v11, %v7117_v54  ;;  %v560_v55 = vpack.c.bf16 %v6809_v18, %v6755_v4  ;;  %v1100_v19 = vpack.c.bf16 %v11197_v57, %v11196_v22  ;;  %v4600_v47 = vsel %vm1375_vm14, 1.0, %v11099_v30 }
 0x11a   :  { %1285 = vperm.xlu1 %5467, %v11195_v2   ;;  %vm235_vm10 = vcmp.eq.s32.totalorder %v5861_v62, %v7100_v39  ;;  %vm236_vm11 = vcmp.eq.s32.totalorder %v5884_v21, %v7100_v39  ;;  %v2335_v11 = vadd.bf16 %v2270_v61, %v7125_v25  ;;  %v7366_v54 = vadd.bf16 %v1706_v17, %v1166_v12 }
 0x11b   :  { %v11198_v4 = vpack.c.bf16 %v7040_v23, %v7049_v35  ;;  %v11199_v22 = vmov 3   ;;  %vm1971_vm8 = vcmp.eq.s32.totalorder %v5884_v21, %v7265_v3  ;;  %v4715_v57 = vsel %vm1970_vm2, 1.0, %v11099_v30 }
 0x11c   :  { %v4595_v12 = vsel %vm1370_vm0, 1.0, %v11099_v30  ;;  %v11200_v25 = vpack.c.bf16 %v7109_v53, %v7131_v43  ;;  %vm2580_vm14 = vcmp.eq.s32.totalorder %v5861_v62, %v7037_v48  ;;  %vm2585_vm15 = vcmp.eq.s32.totalorder %v5861_v62, %v6731_v5  ;;  %v7398_v43 = vpop.permute.xlu0 %1872 }
 0x11d   :  { %v7351_v2 = vpop.permute.xlu1 %1273  ;;  %v2941_v18 = vadd.bf16 %v11198_v4, %v2336_v59  ;;  %v1705_v35 = vpack.c.bf16 %v4600_v47, %v4595_v12  ;;  %v7391_v61 = vsel %vm235_vm10, 1.0, %v11099_v30  ;;  %v7394_v17 = vsel %vm236_vm11, 1.0, %v11099_v30  ;;  %11201 = vst [vmem:[#allocation23_spill] sm:$0xff] %v7398_v43 }
 0x11e   :  { %5468 = vset.pattern.permute.xlu1 %v11199_v22  ;;  %v2940_v23 = vadd.bf16 %v11200_v25, %v2335_v11  ;;  %vm1906_vm0 = vcmp.eq.s32.totalorder %v5884_v21, %v7326_v52  ;;  %v2916_v47 = vpack.c.bf16 %v7348_v14, %v7345_v42  ;;  %v4716_v53 = vsel %vm1971_vm8, 1.0, %v11099_v30  ;;  %v11202_v25 = vld [vmem:[#allocation136_spill] sm:$0xff] }
 0x11f   :  { %1848 = vperm.xlu1 %5468, %v7161_v63   ;;  %3357 = vmatprep.mubr.bf16.mxu0 %v2941_v18  ;;  %v2305_v63 = vpack.c.bf16 %v4715_v57, %v7208_v13  ;;  %v1165_v59 = vadd.bf16 %v1100_v19, %v560_v55  ;;  %vm1975_vm3 = vcmp.eq.s32.totalorder %v5861_v62, %v6702_v32  ;;  %v7410_v18 = vsel %vm2580_vm14, 1.0, %v11099_v30 }
 0x120   :  { %3358 = vmatmul.mubr.bf16.vlgmr.msra.gmra.mxu0 %v2940_v23  ;;  %v2306_v11 = vpack.c.bf16 %v4716_v53, %v7145_v16  ;;  %v7413_v12 = vsel %vm2585_vm15, 1.0, %v11099_v30  ;;  %v2408_v23 = vadd.s32 512, %v11202_v25  ;;  %vm1905_vm12 = vcmp.eq.s32.totalorder %v5861_v62, %v7326_v52 }
 0x121   :  { %v2370_v19 = vadd.bf16 %v2305_v63, %v7223_v29  ;;  %v4651_v55 = vsel %vm1906_vm0, 1.0, %v11099_v30  ;;  %v1770_v16 = vadd.bf16 %v1705_v35, %v1165_v59  ;;  %v4720_v53 = vsel %vm1975_vm3, 1.0, %v11099_v30  ;;  %v7445_v63 = vpop.permute.xlu0 %1833 }
 0x122   :  { %v7407_v4 = vpop.permute.xlu1 %1836  ;;  %v2371_v13 = vadd.bf16 %v2306_v11, %v7188_v15  ;;  %v2276_v57 = vpack.c.bf16 %v7234_v44, %v4651_v55  ;;  %v531_v25 = vpack.c.bf16 %v7230_v28, %v7216_v9  ;;  %vm240_vm13 = vcmp.eq.s32.totalorder %v5861_v62, %v7142_v33  ;;  %v11207_v11 = vld [vmem:[#allocation135_spill] sm:$0xff] }
 0x123   :  { %1887 = vperm.xlu1 %5468, %v7240_v37   ;;  %vm241_vm4 = vcmp.eq.s32.totalorder %v5884_v21, %v7142_v33  ;;  %vm1981_vm5 = vcmp.eq.s32.totalorder %v5884_v21, %v7398_v43  ;;  %v11203_v29 = vpack.c.bf16 %v7194_v50, %v7211_v27  ;;  %v2915_v44 = vpack.c.bf16 %v7413_v12, %v7410_v18  ;;  %v11204_v37 = vld [vmem:[#allocation42_spill] sm:$0xff] }
 0x124   :  { %v1071_v35 = vpack.c.bf16 %v7323_v26, %v11204_v37  ;;  %v11205_v28 = vpack.c.bf16 %v7135_v10, %v7148_v38  ;;  %v2341_v59 = vadd.bf16 %v2276_v57, %v6969_v40  ;;  %v4650_v50 = vsel %vm1905_vm12, 1.0, %v11099_v30  ;;  %v11208_v10 = vld [vmem:[#allocation41_spill] sm:$0xff] }
 0x125   :  { %v2975_v15 = vadd.bf16 %v11203_v29, %v2370_v19  ;;  %vm2526_vm9 = vcmp.eq.s32.totalorder %v5884_v21, %v11207_v11  ;;  %vm1980_vm1 = vcmp.eq.s32.totalorder %v5861_v62, %v7398_v43  ;;  %v2275_v38 = vpack.c.bf16 %v7335_v31, %v4650_v50 }
 0x126   :  { %v2976_v9 = vadd.bf16 %v11205_v28, %v2371_v13  ;;  %v7452_v27 = vpop.permute.xlu1 %1875  ;;  %v530_v40 = vpack.c.bf16 %v7219_v20, %v7203_v24  ;;  %v1070_v26 = vpack.c.bf16 %v7317_v36, %v11208_v10  ;;  %vm780_vm7 = vcmp.eq.s32.totalorder %v5861_v62, %v7205_v6  ;;  %v11212_v13 = vld [vmem:[#allocation107_spill] sm:$0xff]  ;;  %v11213_v28 = vld [vmem:[#allocation105_spill] sm:$0xff] }
 0x127   :  { %11206 = vst [vmem:[#allocation69_spill] sm:$0xff] %v7452_v27  ;;  %5469 = vset.pattern.permute.xlu1 %v11044_v60  ;;  %vm1311_vm6 = vcmp.eq.s32.totalorder %v5884_v21, %v7267_v46  ;;  %v11209_v18 = vpack.c.bf16 %v7248_v34, %v7237_v1  ;;  %v4726_v31 = vsel %vm1981_vm5, 1.0, %v11099_v30  ;;  %vm1916_vm2 = vcmp.eq.s32.totalorder %v5884_v21, %v7445_v63 }
 0x128   :  { %3413 = vmatprep.mubr.bf16.mxu1 %v2976_v9  ;;  %2450 = vperm.xlu1 %5469, %v2408_v23   ;;  %vm1921_vm10 = vcmp.eq.s32.totalorder %v5884_v21, %v7407_v4  ;;  %v2340_v24 = vadd.bf16 %v2275_v38, %v7075_v0  ;;  %v2311_v20 = vpack.c.bf16 %v4726_v31, %v7342_v51  ;;  %v4725_v1 = vsel %vm1980_vm1, 1.0, %v11099_v30 }
 0x129   :  { %v2946_v12 = vadd.bf16 %v11209_v18, %v2341_v59  ;;  %3414 = vmatmul.mubr.bf16.vlgmr.msra.gmra.mxu1 %v2975_v15  ;;  %vm1310_vm11 = vcmp.eq.s32.totalorder %v5861_v62, %v7267_v46  ;;  %vm1915_vm8 = vcmp.eq.s32.totalorder %v5861_v62, %v7445_v63  ;;  %v1136_v34 = vadd.bf16 %v1071_v35, %v531_v25  ;;  %v5548_v25 = vld [vmem:[%s10764_s0 + $0x50] sm:$0xff] }
 0x12a   :  { %v11210_v36 = vpack.c.bf16 %v7296_v56, %v7276_v41  ;;  %v2376_v0 = vadd.bf16 %v2311_v20, %v7366_v54  ;;  %v2310_v51 = vpack.c.bf16 %v4725_v1, %v4720_v53  ;;  %v4536_v55 = vsel %vm1311_vm6, 1.0, %v11099_v30 }
 0x12b   :  { %3365 = vmatprep.mubr.bf16.mxu0 %v2946_v12  ;;  %v7493_v19 = vpop.permute.xlu1 %2438  ;;  %v1676_v57 = vpack.c.bf16 %v11212_v13, %v4536_v55  ;;  %v4661_v41 = vsel %vm1916_vm2, 1.0, %v11099_v30  ;;  %v4666_v56 = vsel %vm1921_vm10, 1.0, %v11099_v30  ;;  %vm1920_vm15 = vcmp.eq.s32.totalorder %v5861_v62, %v7407_v4 }
 0x12c   :  { %v2945_v23 = vadd.bf16 %v11210_v36, %v2340_v24  ;;  %11211 = vst [vmem:[#allocation67_spill] sm:$0xff] %v7493_v19  ;;  %5470 = vset.pattern.permute.xlu1 %v11017_v58  ;;  %vm2521_vm14 = vcmp.eq.s32.totalorder %v5884_v21, %v7493_v19  ;;  %v2981_v54 = vadd.bf16 %v2916_v47, %v2376_v0  ;;  %v4791_v35 = vsel %vm2526_vm9, 1.0, %v11099_v30  ;;  %v7533_v47 = vld [vmem:[%s10764_s0 + $0x58] sm:$0xff]  ;;  %v11214_v0 = vld [vmem:[#allocation11_spill] sm:$0xff] }
 0x12d   :  { %v2375_v53 = vadd.bf16 %v2310_v51, %v1770_v16  ;;  %101 = vperm.xlu1 %5470, %v5548_v25   ;;  %v2281_v29 = vpack.c.bf16 %v4666_v56, %v4661_v41  ;;  %v4786_v15 = vsel %vm2521_vm14, 1.0, %v11099_v30  ;;  %v1741_v37 = vadd.bf16 %v1676_v57, %v1136_v34  ;;  %v11215_v51 = vld [vmem:[#allocation13_spill] sm:$0xff] }
 0x12e   :  { %3366 = vmatmul.mubr.bf16.gmra.mxu0 %v2945_v23  ;;  %v4535_v42 = vsel %vm1310_vm11, 1.0, %v11099_v30  ;;  %vm781_vm0 = vcmp.eq.s32.totalorder %v5884_v21, %v7205_v6  ;;  %3421 = vmatprep.mubr.bf16.mxu1 %v2981_v54  ;;  %v2886_v16 = vpack.c.bf16 %v4791_v35, %v4786_v15  ;;  %v7540_v59 = vsel %vm240_vm13, 1.0, %v11099_v30 }
 0x12f   :  { %v2980_v14 = vadd.bf16 %v2915_v44, %v2375_v53  ;;  %v1675_v9 = vpack.c.bf16 %v11213_v28, %v4535_v42  ;;  %v7546_v50 = vsel %vm241_vm4, 1.0, %v11099_v30  ;;  %v1135_v38 = vadd.bf16 %v1070_v26, %v530_v40  ;;  %v11231_v28 = vld [vmem:[#allocation144_spill] sm:$0xff] }
 0x130   :  { %v7548_v44 = vpop.permute.xlu1 %89  ;;  %v4660_v10 = vsel %vm1915_vm8, 1.0, %v11099_v30  ;;  %v2346_v18 = vadd.bf16 %v2281_v29, %v1741_v37  ;;  %v4665_v12 = vsel %vm1920_vm15, 1.0, %v11099_v30  ;;  %vm2520_vm3 = vcmp.eq.s32.totalorder %v5861_v62, %v7493_v19  ;;  %v11219_v29 = vld [vmem:[#allocation95_spill] sm:$0xff] }
 0x131   :  { %3422 = vmatmul.mubr.bf16.gmra.mxu1 %v2980_v14  ;;  %vm2525_vm12 = vcmp.eq.s32.totalorder %v5861_v62, %v11207_v11  ;;  %v7566_v40 = vsel %vm780_vm7, 1.0, %v11099_v30  ;;  %v7572_v26 = vsel %vm781_vm0, 1.0, %v11099_v30  ;;  %vm1380_vm13 = vcmp.eq.s32.totalorder %v5861_v62, %v7304_v8  ;;  %104 = vperm.xlu1 %5470, %v7533_v47   ;;  %v7632_v14 = vpop.permute.xlu0 %1878 }
 0x132   :  { %vm1381_vm4 = vcmp.eq.s32.totalorder %v5884_v21, %v7304_v8  ;;  %vm1385_vm5 = vcmp.eq.s32.totalorder %v5861_v62, %v7351_v2  ;;  %vm177_vm9 = vcmp.eq.s32.totalorder %v5871_v49, %v7548_v44  ;;  %v2951_v31 = vadd.bf16 %v2886_v16, %v2346_v18  ;;  %11221 = vst [vmem:[#allocation86_spill] sm:$0xff] %v7632_v14  ;;  %v11230_v16 = vld [vmem:[#allocation47_spill] sm:$0xff] }
 0x133   :  { %v1740_v24 = vadd.bf16 %v1675_v9, %v1135_v38  ;;  %v2280_v20 = vpack.c.bf16 %v4665_v12, %v4660_v10  ;;  %v4785_v1 = vsel %vm2520_vm3, 1.0, %v11099_v30  ;;  %v4790_v34 = vsel %vm2525_vm12, 1.0, %v11099_v30  ;;  %v11222_v38 = vld [vmem:[#allocation25_spill] sm:$0xff]  ;;  %v11223_v12 = vld [vmem:[#allocation143_spill] sm:$0xff] }
 0x134   :  { %v7585_v36 = vpop.permute.xlu1 %92  ;;  %v596_v23 = vadd.s32 128, %v7533_v47  ;;  %vm178_vm1 = vcmp.eq.s32.totalorder %v11214_v0, %v7548_v44  ;;  %vm179_vm7 = vcmp.eq.s32.totalorder %v11215_v51, %v7548_v44  ;;  %3373 = vmatprep.mubr.bf16.mxu0 %v2951_v31  ;;  %v2885_v55 = vpack.c.bf16 %v4790_v34, %v4785_v1 }
 0x135   :  { %vm182_vm6 = vcmp.eq.s32.totalorder %v5871_v49, %v7585_v36  ;;  %vm1386_vm2 = vcmp.eq.s32.totalorder %v5884_v21, %v7351_v2  ;;  %v2345_v13 = vadd.bf16 %v2280_v20, %v1740_v24  ;;  %vm183_vm10 = vcmp.eq.s32.totalorder %v11214_v0, %v7585_v36 }
 0x136   :  { %vm184_vm11 = vcmp.eq.s32.totalorder %v11215_v51, %v7585_v36  ;;  %v11216_v57 = vmov 1   ;;  %v7605_v41 = vsel %vm177_vm9, 1.0, %v11099_v30  ;;  %v7608_v56 = vsel %vm182_vm6, 1.0, %v11099_v30 }
 0x137   :  { %5472 = vset.pattern.permute.xlu1 %v11216_v57  ;;  %11217 = vst [vmem:[#allocation68_spill] sm:$0xff] %v7605_v41  ;;  %v7611_v54 = vsel %vm183_vm10, 1.0, %v11099_v30  ;;  %v7614_v53 = vsel %vm184_vm11, 1.0, %v11099_v30  ;;  %vm214_vm8 = vcmp.eq.s32.totalorder %v11215_v51, %v11219_v29  ;;  %v7622_v15 = vsel %vm178_vm1, 1.0, %v11099_v30  ;;  %v11234_v29 = vld [vmem:[#allocation83_spill] sm:$0xff] }
 0x138   :  { %11218 = vst [vmem:[#allocation70_spill] sm:$0xff] %v7614_v53  ;;  %644 = vperm.xlu1 %5472, %v596_v23   ;;  %v7628_v37 = vsel %vm179_vm7, 1.0, %v11099_v30  ;;  %v2950_v35 = vadd.bf16 %v2885_v55, %v2345_v13  ;;  %v2422_v10 = vadd.s32 512, %v11222_v38  ;;  %v1805_v18 = vadd.s32 384, %v5548_v25 }
 0x139   :  { %11220 = vst [vmem:[#allocation33_spill] sm:$0xff] %v7628_v37  ;;  %v7638_v9 = vpop.permute.xlu1 %632  ;;  %vm167_vm14 = vcmp.eq.s32.totalorder %v5871_v49, %v11223_v12  ;;  %v7647_v31 = vsel %vm1380_vm13, 1.0, %v11099_v30  ;;  %v4606_v24 = vsel %vm1381_vm4, 1.0, %v11099_v30  ;;  %v4610_v25 = vsel %vm1385_vm5, 1.0, %v11099_v30 }
 0x13a   :  { %3374 = vmatmul.mubr.bf16.gmra.mxu0 %v2950_v35  ;;  %vm722_vm15 = vcmp.eq.s32.totalorder %v5871_v49, %v7638_v9  ;;  %vm723_vm0 = vcmp.eq.s32.totalorder %v11214_v0, %v7638_v9  ;;  %vm1986_vm3 = vcmp.eq.s32.totalorder %v5884_v21, %v7452_v27  ;;  %vm724_vm12 = vcmp.eq.s32.totalorder %v11215_v51, %v7638_v9  ;;  %v11227_v35 = vld [vmem:[#allocation54_spill] sm:$0xff] }
 0x13b   :  { %v7666_v20 = vsel %vm722_vm15, 1.0, %v11099_v30  ;;  %1851 = vperm.xlu0 %5483, %v1805_v18   ;;  %v4611_v1 = vsel %vm1386_vm2, 1.0, %v11099_v30  ;;  %vm1991_vm13 = vcmp.eq.s32.totalorder %v5884_v21, %v7632_v14  ;;  %v7676_v34 = vsel %vm723_vm0, 1.0, %v11099_v30 }
 0x13c   :  { %11224 = vst [vmem:[#allocation87_spill] sm:$0xff] %v7666_v20  ;;  %5473 = vset.pattern.permute.xlu1 %v11044_v60  ;;  %v7679_v23 = vsel %vm724_vm12, 1.0, %v11099_v30  ;;  %vm1990_vm4 = vcmp.eq.s32.totalorder %v5861_v62, %v7632_v14  ;;  %vm1985_vm5 = vcmp.eq.s32.totalorder %v5861_v62, %v7452_v27  ;;  %v1106_v37 = vpack.c.bf16 %v7572_v26, %v11230_v16  ;;  %v11294_v20 = vld [vmem:[#allocation85_spill] sm:$0xff] }
 0x13d   :  { %11225 = vst [vmem:[#allocation32_spill] sm:$0xff] %v7679_v23  ;;  %2492 = vperm.xlu1 %5473, %v2422_v10   ;;  %v566_v10 = vpack.c.bf16 %v7546_v50, %v7394_v17  ;;  %v4731_v13 = vsel %vm1986_vm3, 1.0, %v11099_v30  ;;  %v1711_v38 = vpack.c.bf16 %v4611_v1, %v4606_v24  ;;  %v4736_v53 = vsel %vm1991_vm13, 1.0, %v11099_v30  ;;  %v7710_v17 = vld [vmem:[%s10764_s0 + $0xc0] sm:$0xff]  ;;  %v11232_v23 = vld [vmem:[#allocation46_spill] sm:$0xff] }
 0x13e   :  { %v7691_v42 = vpop.permute.xlu1 %2480  ;;  %vm2596_vm1 = vcmp.eq.s32.totalorder %v5884_v21, %v11231_v28  ;;  %v609_v50 = vadd.s32 128, %v7710_v17  ;;  %v565_v24 = vpack.c.bf16 %v7540_v59, %v7391_v61  ;;  %v2316_v18 = vpack.c.bf16 %v4736_v53, %v4731_v13  ;;  %v7748_v13 = vld [vmem:[%s10764_s0 + $0x60] sm:$0xff] }
 0x13f   :  { %11229 = vst [vmem:[#allocation146_spill] sm:$0xff] %v7691_v42  ;;  %vm2591_vm9 = vcmp.eq.s32.totalorder %v5884_v21, %v7691_v42  ;;  %v4861_v16 = vsel %vm2596_vm1, 1.0, %v11099_v30  ;;  %v1171_v1 = vadd.bf16 %v1106_v37, %v566_v10  ;;  %v1105_v5 = vpack.c.bf16 %v7566_v40, %v11232_v23  ;;  %v11235_v10 = vld [vmem:[#allocation161_spill] sm:$0xff] }
 0x140   :  { %v4856_v26 = vsel %vm2591_vm9, 1.0, %v11099_v30  ;;  %v4730_v48 = vsel %vm1985_vm5, 1.0, %v11099_v30  ;;  %v1710_v32 = vpack.c.bf16 %v4610_v25, %v7647_v31  ;;  %v4735_v43 = vsel %vm1990_vm4, 1.0, %v11099_v30 }
 0x141   :  { %5474 = vset.pattern.permute.xlu1 %v11017_v58  ;;  %vm2590_vm7 = vcmp.eq.s32.totalorder %v5861_v62, %v7691_v42  ;;  %vm2595_vm6 = vcmp.eq.s32.totalorder %v5861_v62, %v11231_v28  ;;  %v7737_v61 = vsel %vm214_vm8, 1.0, %v11099_v30  ;;  %vm168_vm2 = vcmp.eq.s32.totalorder %v11214_v0, %v11223_v12 }
 0x142   :  { %143 = vperm.xlu1 %5474, %v7710_v17   ;;  %11233 = vst [vmem:[#allocation136_spill] sm:$0xff] %v7737_v61  ;;  %v1776_v40 = vadd.bf16 %v1711_v38, %v1171_v1  ;;  %v2921_v53 = vpack.c.bf16 %v4861_v16, %v4856_v26  ;;  %v1170_v37 = vadd.bf16 %v1105_v5, %v565_v24  ;;  %v4855_v25 = vsel %vm2590_vm7, 1.0, %v11099_v30  ;;  %v5505_v16 = vld [vmem:[#allocation2 + $0xb8] sm:$0xff]  }
 0x143   :  { %v7741_v59 = vpop.permute.xlu1 %131  ;;  %v2315_v31 = vpack.c.bf16 %v4735_v43, %v4730_v48  ;;  %v4860_v23 = vsel %vm2595_vm6, 1.0, %v11099_v30  ;;  %vm169_vm10 = vcmp.eq.s32.totalorder %v11215_v51, %v11223_v12  ;;  %v7760_v5 = vsel %vm167_vm14, 1.0, %v11099_v30  ;;  %v5504_v48 = vld [vmem:[#allocation2 + $0xf8] sm:$0xff]   ;;  %v5506_v12 = vld [vmem:[#allocation2 + $0xf0] sm:$0xff]  }
 0x144   :  { %v7764_v43 = vsel %vm168_vm2, 1.0, %v11099_v30  ;;  %vm247_vm11 = vcmp.eq.s32.totalorder %v5871_v49, %v7741_v59  ;;  %v2381_v38 = vadd.bf16 %v2316_v18, %v1776_v40  ;;  %v1775_v26 = vadd.bf16 %v1710_v32, %v1170_v37  ;;  %5042 = vmatprep.subr.bf16.mxu1 %v5504_v48 }
 0x145   :  { %vm248_vm8 = vcmp.eq.s32.totalorder %v11214_v0, %v7741_v59  ;;  %v2920_v24 = vpack.c.bf16 %v4860_v23, %v4855_v25  ;;  %v1807_v27 = vadd.s32 384, %v7748_v13  ;;  %v1201_v28 = vadd.s32 256, %v7533_v47  ;;  %5043 = vmatpush3.bf16.msra.mxu1 %v5505_v16  ;;  %v5507_v23 = vld [vmem:[#allocation2 + $0xb0] sm:$0xff]   ;;  %v11246_v16 = vld [vmem:[#allocation148_spill] sm:$0xff] }
 0x146   :  { %5475 = vset.pattern.permute.xlu1 %v11216_v57  ;;  %v7778_v7 = vsel %vm169_vm10, 1.0, %v11099_v30  ;;  %vm249_vm14 = vcmp.eq.s32.totalorder %v11215_v51, %v7741_v59  ;;  %v2986_v32 = vadd.bf16 %v2921_v53, %v2381_v38  ;;  %v2380_v18 = vadd.bf16 %v2315_v31, %v1775_v26  ;;  %5044 = vmatprep.subr.bf16.mxu1 %v5506_v12 }
 0x147   :  { %683 = vperm.xlu1 %5475, %v609_v50   ;;  %v7770_v1 = vpop.permute.xlu1 %134  ;;  %11238 = vst [vmem:[#allocation42_spill] sm:$0xff] %v7778_v7  ;;  %v7786_v50 = vsel %vm247_vm11, 1.0, %v11099_v30  ;;  %1857 = vperm.xlu0 %5483, %v1807_v27   ;;  %v7798_v40 = vsel %vm248_vm8, 1.0, %v11099_v30  ;;  %v11243_v25 = vmov 2   ;;  %v7811_v27 = vsel %vm249_vm14, 1.0, %v11099_v30 }
 0x148   :  { %11239 = vst [vmem:[#allocation41_spill] sm:$0xff] %v7786_v50  ;;  %vm252_vm15 = vcmp.eq.s32.totalorder %v5871_v49, %v7770_v1  ;;  %vm253_vm0 = vcmp.eq.s32.totalorder %v11214_v0, %v7770_v1  ;;  %vm254_vm3 = vcmp.eq.s32.totalorder %v11215_v51, %v7770_v1  ;;  %11240 = vst [vmem:[#allocation107_spill] sm:$0xff] %v7798_v40  ;;  %3429 = vmatprep.mubr.bf16.mxu1 %v2986_v32  ;;  %v5509_v32 = vld [vmem:[#allocation2 + $0xa8] sm:$0xff]  }
 0x149   :  { %v2985_v53 = vadd.bf16 %v2920_v24, %v2380_v18  ;;  %v7801_v37 = vsel %vm252_vm15, 1.0, %v11099_v30  ;;  %v7804_v31 = vsel %vm253_vm0, 1.0, %v11099_v30  ;;  %11244 = vst [vmem:[#allocation13_spill] sm:$0xff] %v7811_v27  ;;  %v7814_v48 = vsel %vm254_vm3, 1.0, %v11099_v30  ;;  %5045 = vmatpush3.bf16.msra.mxu1 %v5507_v23  ;;  %v5511_v23 = vld [vmem:[#allocation2 + $0x138] sm:$0xff]  }
 0x14a   :  { %11241 = vst [vmem:[#allocation105_spill] sm:$0xff] %v7801_v37  ;;  %11242 = vst [vmem:[#allocation11_spill] sm:$0xff] %v7804_v31  ;;  %v1214_v26 = vadd.s32 256, %v7710_v17  ;;  %vm172_vm12 = vcmp.eq.s32.totalorder %v5871_v49, %v11246_v16  ;;  %vm173_vm13 = vcmp.eq.s32.totalorder %v11214_v0, %v11246_v16  ;;  %vm174_vm4 = vcmp.eq.s32.totalorder %v11215_v51, %v11246_v16 }
 0x14b   :  { %5477 = vset.pattern.permute.xlu1 %v11243_v25  ;;  %11245 = vst [vmem:[#allocation95_spill] sm:$0xff] %v7814_v48  ;;  %3430 = vmatmul.mubr.bf16.gmra.mxu1 %v2985_v53  ;;  %v5508_v53 = vld [vmem:[#allocation2 + $0xe8] sm:$0xff]   ;;  %vm237_vm10 = vcmp.eq.s32.totalorder %v5871_v49, %v7100_v39  ;;  %vm721_vm11 = vcmp.eq.s32.totalorder %v5884_v21, %v7638_v9  ;;  %v1806_v31 = vadd.s32 384, %v7533_v47  ;;  %v7868_v7 = vsel %vm172_vm12, 1.0, %v11099_v30  ;;  %v5510_v48 = vld [vmem:[#allocation2 + $0xe0] sm:$0xff]  }
 0x14c   :  { %1249 = vperm.xlu1 %5477, %v1201_v28   ;;  %v7827_v18 = vpop.permute.xlu1 %674  ;;  %v11247_v28 = vld [vmem:[#allocation155_spill] sm:$0xff]  ;;  %5487 = vset.pattern.permute.xlu0 %v11044_v60  ;;  %v7880_v40 = vsel %vm174_vm4, 1.0, %v11099_v30  ;;  %vm238_vm8 = vcmp.eq.s32.totalorder %v11214_v0, %v7100_v39  ;;  %vm239_vm14 = vcmp.eq.s32.totalorder %v11215_v51, %v7100_v39  ;;  %vm181_vm15 = vcmp.eq.s32.totalorder %v5884_v21, %v7585_v36  ;;  %v11259_v39 = vld [vmem:[#allocation52_spill] sm:$0xff] }
 0x14d   :  { %vm712_vm5 = vcmp.eq.s32.totalorder %v5871_v49, %v11247_v28  ;;  %vm792_vm9 = vcmp.eq.s32.totalorder %v5871_v49, %v7827_v18  ;;  %vm793_vm1 = vcmp.eq.s32.totalorder %v11214_v0, %v7827_v18  ;;  %vm713_vm7 = vcmp.eq.s32.totalorder %v11214_v0, %v11247_v28  ;;  %5046 = vmatprep.subr.bf16.mxu1 %v5508_v53 }
 0x14e   :  { %vm714_vm6 = vcmp.eq.s32.totalorder %v11215_v51, %v11247_v28  ;;  %vm794_vm2 = vcmp.eq.s32.totalorder %v11215_v51, %v7827_v18  ;;  %v7845_v12 = vsel %vm792_vm9, 1.0, %v11099_v30  ;;  %v7852_v38 = vsel %vm793_vm1, 1.0, %v11099_v30  ;;  %11254 = vst [vmem:[#allocation47_spill] sm:$0xff] %v7880_v40  ;;  %5047 = vmatpush3.bf16.msra.mxu1 %v5509_v32  ;;  %5200 = vmatpush3.bf16.msra.mxu0 %v5511_v23  ;;  %v5515_v23 = vld [vmem:[#allocation2 + $0x130] sm:$0xff]  }
 0x14f   :  { %11248 = vst [vmem:[#allocation25_spill] sm:$0xff] %v7845_v12  ;;  %11249 = vst [vmem:[#allocation143_spill] sm:$0xff] %v7852_v38  ;;  %v7855_v24 = vsel %vm794_vm2, 1.0, %v11099_v30  ;;  %v7890_v37 = vsel %vm712_vm5, 1.0, %v11099_v30  ;;  %v7896_v16 = vsel %vm713_vm7, 1.0, %v11099_v30  ;;  %v7906_v27 = vsel %vm714_vm6, 1.0, %v11099_v30  ;;  %5048 = vmatprep.subr.bf16.mxu1 %v5510_v48  ;;  %5201 = vmatprep.subr.bf16.mxu0 %v11099_v30 }
 0x150   :  { %11250 = vst [vmem:[#allocation54_spill] sm:$0xff] %v7855_v24  ;;  %1288 = vperm.xlu1 %5477, %v1214_v26   ;;  %v7874_v26 = vsel %vm173_vm13, 1.0, %v11099_v30  ;;  %v5512_v24 = vld [vmem:[#allocation2 + $0xa0] sm:$0xff]   ;;  %11255 = vst [vmem:[#allocation46_spill] sm:$0xff] %v7906_v27  ;;  %v7912_v12 = vsel %vm237_vm10, 1.0, %v11099_v30  ;;  %v4426_v50 = vsel %vm721_vm11, 1.0, %v11099_v30  ;;  %vm176_vm3 = vcmp.eq.s32.totalorder %v5884_v21, %v7548_v44 }
 0x151   :  { %v7884_v53 = vpop.permute.xlu1 %1234  ;;  %11256 = vst [vmem:[#allocation83_spill] sm:$0xff] %v7912_v12  ;;  %v7925_v32 = vsel %vm238_vm8, 1.0, %v11099_v30  ;;  %vm720_vm12 = vcmp.eq.s32.totalorder %v5861_v62, %v7638_v9  ;;  %v1819_v28 = vadd.s32 384, %v7710_v17  ;;  %v7936_v48 = vsel %vm239_vm14, 1.0, %v11099_v30  ;;  %v5513_v17 = vld [vmem:[#allocation2 + $0xd8] sm:$0xff]   ;;  %v5516_v9 = vld [vmem:[#allocation2 + $0xd0] sm:$0xff]  }
 0x152   :  { %vm1321_vm0 = vcmp.eq.s32.totalorder %v5884_v21, %v7884_v53  ;;  %11257 = vst [vmem:[#allocation161_spill] sm:$0xff] %v7925_v32  ;;  %11258 = vst [vmem:[#allocation148_spill] sm:$0xff] %v7936_v48  ;;  %vm242_vm13 = vcmp.eq.s32.totalorder %v5871_v49, %v7142_v33  ;;  %vm243_vm4 = vcmp.eq.s32.totalorder %v11214_v0, %v7142_v33  ;;  %5049 = vmatpush3.bf16.msra.mxu1 %v5512_v24  ;;  %v5514_v32 = vld [vmem:[#allocation2 + $0x98] sm:$0xff]  }
 0x153   :  { %vm244_vm5 = vcmp.eq.s32.totalorder %v11215_v51, %v7142_v33  ;;  %vm180_vm9 = vcmp.eq.s32.totalorder %v5861_v62, %v7585_v36  ;;  %v1076_v48 = vpack.c.bf16 %v4426_v50, %v11259_v39  ;;  %v4546_v12 = vsel %vm1321_vm0, 1.0, %v11099_v30  ;;  %5050 = vmatprep.subr.bf16.mxu1 %v5513_v17  ;;  %5202 = vmatpush3.bf16.msra.mxu0 %v5515_v23  ;;  %v5517_v23 = vld [vmem:[#allocation2 + $0x90] sm:$0xff]  }
 0x154   :  { %5478 = vset.pattern.permute.xlu1 %v11199_v22  ;;  %vm782_vm1 = vcmp.eq.s32.totalorder %v5871_v49, %v7205_v6  ;;  %v4296_v27 = vsel %vm176_vm3, 1.0, %v11099_v30  ;;  %v4425_v50 = vsel %vm720_vm12, 1.0, %v11099_v30  ;;  %vm1320_vm7 = vcmp.eq.s32.totalorder %v5861_v62, %v7884_v53  ;;  %5203 = vmatprep.subr.bf16.mxu0 %v11099_v30 }
 0x155   :  { %1854 = vperm.xlu1 %5478, %v1806_v31   ;;  %v4301_v31 = vsel %vm181_vm15, 1.0, %v11099_v30  ;;  %v7946_v38 = vpop.permute.xlu1 %1276  ;;  %v7974_v24 = vsel %vm242_vm13, 1.0, %v11099_v30  ;;  %vm783_vm6 = vcmp.eq.s32.totalorder %v11214_v0, %v7205_v6  ;;  %vm175_vm2 = vcmp.eq.s32.totalorder %v5861_v62, %v7548_v44 }
 0x156   :  { %11260 = vst [vmem:[#allocation155_spill] sm:$0xff] %v7974_v24  ;;  %v536_v39 = vpack.c.bf16 %v4301_v31, %v4296_v27  ;;  %vm784_vm10 = vcmp.eq.s32.totalorder %v11215_v51, %v7205_v6  ;;  %v4300_v17 = vsel %vm180_vm9, 1.0, %v11099_v30  ;;  %v2411_v24 = vadd.s32 512, %v7533_v47  ;;  %v11262_v27 = vld [vmem:[#allocation51_spill] sm:$0xff]  ;;  %5051 = vmatpush3.bf16.msra.mxu1 %v5514_v32 }
 0x157   :  { %v1681_v3 = vpack.c.bf16 %v11261_v45, %v4546_v12  ;;  %vm1382_vm11 = vcmp.eq.s32.totalorder %v5871_v49, %v7304_v8  ;;  %v4545_v31 = vsel %vm1320_vm7, 1.0, %v11099_v30  ;;  %v8002_v45 = vsel %vm243_vm4, 1.0, %v11099_v30  ;;  %5052 = vmatprep.subr.bf16.mxu1 %v5516_v9 }
 0x158   :  { %v1141_v36 = vadd.bf16 %v1076_v48, %v536_v39  ;;  %11263 = vst [vmem:[#allocation52_spill] sm:$0xff] %v8002_v45  ;;  %vm1383_vm8 = vcmp.eq.s32.totalorder %v11214_v0, %v7304_v8  ;;  %vm1384_vm14 = vcmp.eq.s32.totalorder %v11215_v51, %v7304_v8  ;;  %v4295_v47 = vsel %vm175_vm2, 1.0, %v11099_v30 }
 0x159   :  { %1893 = vperm.xlu1 %5478, %v1819_v28   ;;  %v7986_v40 = vpop.permute.xlu1 %1279  ;;  %v1075_v28 = vpack.c.bf16 %v4425_v50, %v11262_v27  ;;  %v8016_v12 = vsel %vm244_vm5, 1.0, %v11099_v30  ;;  %v8022_v32 = vsel %vm782_vm1, 1.0, %v11099_v30  ;;  %v535_v48 = vpack.c.bf16 %v4300_v17, %v4295_v47  ;;  %v8025_v50 = vpop.permute.xlu0 %1839 }
 0x15a   :  { %11264 = vst [vmem:[#allocation117_spill] sm:$0xff] %v8016_v12  ;;  %11265 = vst [vmem:[#allocation51_spill] sm:$0xff] %v8022_v32  ;;  %v8027_v44 = vadd.bf16 %v1681_v3, %v1141_v36  ;;  %v8033_v33 = vsel %vm783_vm6, 1.0, %v11099_v30  ;;  %v8039_v39 = vsel %vm784_vm10, 1.0, %v11099_v30  ;;  %v8045_v9 = vsel %vm1382_vm11, 1.0, %v11099_v30  ;;  %v11270_v3 = vld [vmem:[#allocation116_spill] sm:$0xff]  ;;  %5053 = vmatpush3.bf16.msra.mxu1 %v5517_v23 }
 0x15b   :  { %11266 = vst [vmem:[#allocation164_spill] sm:$0xff] %v8025_v50  ;;  %11267 = vst [vmem:[#allocation165_spill] sm:$0xff] %v8033_v33  ;;  %v1680_v17 = vpack.c.bf16 %v11270_v3, %v4545_v31  ;;  %v8049_v27 = vsel %vm1383_vm8, 1.0, %v11099_v30  ;;  %v8052_v36 = vsel %vm1384_vm14, 1.0, %v11099_v30  ;;  %v1140_v6 = vadd.bf16 %v1075_v28, %v535_v48  ;;  %v5519_v12 = vld [vmem:[#allocation2 + $0x88] sm:$0xff]  }
 0x15c   :  { %11268 = vst [vmem:[#allocation166_spill] sm:$0xff] %v8039_v39  ;;  %11269 = vst [vmem:[#allocation167_spill] sm:$0xff] %v8045_v9  ;;  %v8059_v39 = vld [vmem:[%s10764_s0 + $0x68] sm:$0xff]  ;;  %vm1387_vm15 = vcmp.eq.s32.totalorder %v5871_v49, %v7351_v2  ;;  %vm250_vm0 = vcmp.eq.s32.totalorder %v5861_v62, %v7770_v1  ;;  %vm251_vm3 = vcmp.eq.s32.totalorder %v5884_v21, %v7770_v1  ;;  %v597_v48 = vadd.s32 128, %v7748_v13 }
 0x15d   :  { %5479 = vset.pattern.permute.xlu1 %v11044_v60  ;;  %11271 = vst [vmem:[#allocation116_spill] sm:$0xff] %v8049_v27  ;;  %11272 = vst [vmem:[#allocation168_spill] sm:$0xff] %v8052_v36  ;;  %v2413_v8 = vadd.s32 512, %v8059_v39  ;;  %vm1925_vm12 = vcmp.eq.s32.totalorder %v5861_v62, %v8025_v50  ;;  %vm1926_vm13 = vcmp.eq.s32.totalorder %v5884_v21, %v8025_v50  ;;  %v5518_v1 = vld [vmem:[#allocation2 + $0xc8] sm:$0xff]   ;;  %v8086_v28 = vsel %vm250_vm0, 1.0, %v11099_v30  ;;  %v11275_v36 = vld [vmem:[#allocation149_spill] sm:$0xff] }
 0x15e   :  { %2459 = vperm.xlu1 %5479, %v2411_v24   ;;  %v8054_v47 = vpop.permute.xlu1 %1842  ;;  %v1745_v24 = vadd.bf16 %v1680_v17, %v1140_v6  ;;  %vm1388_vm9 = vcmp.eq.s32.totalorder %v11214_v0, %v7351_v2  ;;  %vm1389_vm1 = vcmp.eq.s32.totalorder %v11215_v51, %v7351_v2  ;;  %vm245_vm7 = vcmp.eq.s32.totalorder %v5861_v62, %v7741_v59  ;;  %v5520_v9 = vld [vmem:[#allocation2 + $0x128] sm:$0xff]  }
 0x15f   :  { %11273 = vst [vmem:[#allocation169_spill] sm:$0xff] %v8054_v47  ;;  %vm1930_vm4 = vcmp.eq.s32.totalorder %v5861_v62, %v8054_v47  ;;  %vm1931_vm5 = vcmp.eq.s32.totalorder %v5884_v21, %v8054_v47  ;;  %2465 = vperm.xlu0 %5487, %v2413_v8   ;;  %vm246_vm6 = vcmp.eq.s32.totalorder %v5884_v21, %v7741_v59  ;;  %v8089_v31 = vsel %vm251_vm3, 1.0, %v11099_v30 }
 0x160   :  { %vm790_vm2 = vcmp.eq.s32.totalorder %v5861_v62, %v7827_v18  ;;  %v4676_v3 = vsel %vm1931_vm5, 1.0, %v11099_v30  ;;  %v4670_v17 = vsel %vm1925_vm12, 1.0, %v11099_v30  ;;  %v4675_v6 = vsel %vm1930_vm4, 1.0, %v11099_v30  ;;  %5054 = vmatprep.subr.bf16.mxu1 %v5518_v1  ;;  %5204 = vmatpush3.bf16.msra.mxu0 %v5520_v9 }
 0x161   :  { %v8114_v8 = vsel %vm245_vm7, 1.0, %v11099_v30  ;;  %vm791_vm10 = vcmp.eq.s32.totalorder %v5884_v21, %v7827_v18  ;;  %vm2536_vm11 = vcmp.eq.s32.totalorder %v5884_v21, %v11275_v36  ;;  %vm2535_vm8 = vcmp.eq.s32.totalorder %v5861_v62, %v11275_v36  ;;  %5055 = vmatpush3.bf16.msra.mxu1 %v5519_v12  ;;  %v11279_v12 = vld [vmem:[#allocation56_spill] sm:$0xff]  ;;  %5205 = vmatprep.subr.bf16.mxu0 %v11099_v30  ;;  %v8193_v36 = vpop.permute.xlu0 %1884 }
 0x162   :  { %5480 = vset.pattern.permute.xlu1 %v11017_v58  ;;  %v8094_v23 = vpop.permute.xlu1 %1881  ;;  %v4671_v58 = vsel %vm1926_vm13, 1.0, %v11099_v30  ;;  %v8126_v32 = vsel %vm1387_vm15, 1.0, %v11099_v30  ;;  %v8132_v1 = vsel %vm246_vm6, 1.0, %v11099_v30  ;;  %v8140_v33 = vsel %vm790_vm2, 1.0, %v11099_v30  ;;  %11281 = vst [vmem:[#allocation174_spill] sm:$0xff] %v8193_v36 }
 0x163   :  { %107 = vperm.xlu1 %5480, %v7748_v13   ;;  %11274 = vst [vmem:[#allocation170_spill] sm:$0xff] %v8094_v23  ;;  %11276 = vst [vmem:[#allocation171_spill] sm:$0xff] %v8126_v32  ;;  %v8146_v32 = vsel %vm1388_vm9, 1.0, %v11099_v30  ;;  %v2286_v45 = vpack.c.bf16 %v4676_v3, %v4671_v58  ;;  %v2285_v42 = vpack.c.bf16 %v4675_v6, %v4670_v17  ;;  %v8152_v27 = vsel %vm791_vm10, 1.0, %v11099_v30  ;;  %v5521_v3 = vld [vmem:[#allocation2 + $0xc0] sm:$0xff]  }
 0x164   :  { %11277 = vst [vmem:[#allocation172_spill] sm:$0xff] %v8146_v32  ;;  %v598_v14 = vadd.s32 128, %v8059_v39  ;;  %v4801_v32 = vsel %vm2536_vm11, 1.0, %v11099_v30  ;;  %vm1322_vm14 = vcmp.eq.s32.totalorder %v5871_v49, %v7884_v53  ;;  %vm1323_vm3 = vcmp.eq.s32.totalorder %v11214_v0, %v7884_v53  ;;  %5056 = vmatprep.subr.bf16.mxu1 %v5521_v3 }
 0x165   :  { %vm1324_vm12 = vcmp.eq.s32.totalorder %v11215_v51, %v7884_v53  ;;  %v2351_v17 = vadd.bf16 %v2286_v45, %v8027_v44  ;;  %v2350_v58 = vadd.bf16 %v2285_v42, %v1745_v24  ;;  %v8185_v61 = vsel %vm1389_vm1, 1.0, %v11099_v30  ;;  %v5522_v44 = vld [vmem:[#allocation2 + $0x80] sm:$0xff]   ;;  %v11282_v24 = vld [vmem:[#allocation57_spill] sm:$0xff] }
 0x166   :  { %11280 = vst [vmem:[#allocation56_spill] sm:$0xff] %v8185_v61  ;;  %vm1390_vm13 = vcmp.eq.s32.totalorder %v5861_v62, %v7946_v38  ;;  %vm1391_vm4 = vcmp.eq.s32.totalorder %v5884_v21, %v7946_v38  ;;  %vm1392_vm5 = vcmp.eq.s32.totalorder %v5871_v49, %v7946_v38  ;;  %vm1395_vm9 = vcmp.eq.s32.totalorder %v5861_v62, %v7986_v40  ;;  %v11292_v61 = vld [vmem:[#allocation9_spill] sm:$0xff] }
 0x167   :  { %5482 = vset.pattern.permute.xlu1 %v11216_v57  ;;  %v8154_v18 = vpop.permute.xlu1 %2444  ;;  %v4800_v57 = vsel %vm2535_vm8, 1.0, %v11099_v30  ;;  %v1202_v45 = vadd.s32 256, %v7748_v13  ;;  %vm1396_vm1 = vcmp.eq.s32.totalorder %v5884_v21, %v7986_v40  ;;  %vm2000_vm7 = vcmp.eq.s32.totalorder %v5861_v62, %v8193_v36  ;;  %5057 = vmatpush3.bf16.msra.mxu1 %v5522_v44 }
 0x168   :  { %647 = vperm.xlu1 %5482, %v597_v48   ;;  %11278 = vst [vmem:[#allocation173_spill] sm:$0xff] %v8154_v18  ;;  %vm2531_vm15 = vcmp.eq.s32.totalorder %v5884_v21, %v8154_v18  ;;  %vm2530_vm0 = vcmp.eq.s32.totalorder %v5861_v62, %v8154_v18  ;;  %vm2001_vm6 = vcmp.eq.s32.totalorder %v5884_v21, %v8193_v36  ;;  %v8236_v53 = vsel %vm1391_vm4, 1.0, %v11099_v30 }
 0x169   :  { %v4796_v9 = vsel %vm2531_vm15, 1.0, %v11099_v30  ;;  %v4795_v48 = vsel %vm2530_vm0, 1.0, %v11099_v30  ;;  %v8254_v3 = vsel %vm1396_vm1, 1.0, %v11099_v30  ;;  %5267 = vmatprep.subr.bf16.mxu1 %v11099_v30  ;;  %vm1995_vm8 = vcmp.eq.s32.totalorder %v5861_v62, %v8094_v23 }
 0x16a   :  { %v2891_v6 = vpack.c.bf16 %v4801_v32, %v4796_v9  ;;  %v2890_v59 = vpack.c.bf16 %v4800_v57, %v4795_v48  ;;  %v1111_v57 = vpack.c.bf16 %v8152_v27, %v11282_v24  ;;  %v8206_v9 = vsel %vm1322_vm14, 1.0, %v11099_v30 }
 0x16b   :  { %11283 = vst [vmem:[#allocation57_spill] sm:$0xff] %v8206_v9  ;;  %v8220_v27 = vsel %vm1324_vm12, 1.0, %v11099_v30  ;;  %v8248_v48 = vsel %vm1395_vm9, 1.0, %v11099_v30  ;;  %vm1996_vm0 = vcmp.eq.s32.totalorder %v5884_v21, %v8094_v23  ;;  %vm1393_vm12 = vcmp.eq.s32.totalorder %v11214_v0, %v7946_v38 }
 0x16c   :  { %650 = vperm.xlu1 %5482, %v598_v14   ;;  %v8197_v42 = vpop.permute.xlu1 %95  ;;  %v2956_v2 = vadd.bf16 %v2891_v6, %v2351_v17  ;;  %v2955_v32 = vadd.bf16 %v2890_v59, %v2350_v58  ;;  %v8212_v14 = vsel %vm1323_vm3, 1.0, %v11099_v30  ;;  %11284 = vst [vmem:[#allocation175_spill] sm:$0xff] %v8220_v27  ;;  %v8226_v59 = vsel %vm1390_vm13, 1.0, %v11099_v30 }
 0x16d   :  { %v8242_v58 = vsel %vm1392_vm5, 1.0, %v11099_v30  ;;  %vm187_vm2 = vcmp.eq.s32.totalorder %v5871_v49, %v8197_v42  ;;  %vm188_vm10 = vcmp.eq.s32.totalorder %v11214_v0, %v8197_v42  ;;  %vm189_vm11 = vcmp.eq.s32.totalorder %v11215_v51, %v8197_v42 }
 0x16e   :  { %3381 = vmatprep.mubr.bf16.mxu0 %v2956_v2  ;;  %11285 = vst [vmem:[#allocation176_spill] sm:$0xff] %v8242_v58  ;;  %v1203_v6 = vadd.s32 256, %v8059_v39  ;;  %v5523_v2 = vld [vmem:[#allocation2 + $0x120] sm:$0xff]   ;;  %v8296_v44 = vsel %vm189_vm11, 1.0, %v11099_v30  ;;  %vm1293_vm13 = vcmp.eq.s32.totalorder %v11214_v0, %v11292_v61  ;;  %v11293_v9 = vpack.c.bf16 %v8089_v31, %v8132_v1  ;;  %v11295_v1 = vld [vmem:[#allocation154_spill] sm:$0xff] }
 0x16f   :  { %3382 = vmatmul.mubr.bf16.gmra.mxu0 %v2955_v32  ;;  %11289 = vst [vmem:[#allocation180_spill] sm:$0xff] %v8296_v44  ;;  %vm1898_vm4 = vcmp.eq.s32.totalorder %v11214_v0, %v11294_v20  ;;  %vm1394_vm5 = vcmp.eq.s32.totalorder %v11215_v51, %v7946_v38  ;;  %v1716_v58 = vpack.c.bf16 %v8254_v3, %v8236_v53  ;;  %v4746_v31 = vsel %vm2001_vm6, 1.0, %v11099_v30 }
 0x170   :  { %5484 = vset.pattern.permute.xlu1 %v11243_v25  ;;  %v8260_v17 = vpop.permute.xlu1 %98  ;;  %v1808_v25 = vadd.s32 384, %v8059_v39  ;;  %5206 = vmatpush3.bf16.msra.mxu0 %v5523_v2  ;;  %v8290_v39 = vsel %vm188_vm10, 1.0, %v11099_v30  ;;  %v1176_v55 = vadd.bf16 %v1111_v57, %v11293_v9  ;;  %vm2606_vm9 = vcmp.eq.s32.totalorder %v5884_v21, %v11295_v1  ;;  %v5524_v57 = vld [vmem:[#allocation2 + $0x118] sm:$0xff]  }
 0x171   :  { %1252 = vperm.xlu1 %5484, %v1202_v45   ;;  %vm192_vm14 = vcmp.eq.s32.totalorder %v5871_v49, %v8260_v17  ;;  %vm193_vm15 = vcmp.eq.s32.totalorder %v11214_v0, %v8260_v17  ;;  %v8277_v45 = vsel %vm187_vm2, 1.0, %v11099_v30  ;;  %vm194_vm3 = vcmp.eq.s32.totalorder %v11215_v51, %v8260_v17  ;;  %11288 = vst [vmem:[#allocation179_spill] sm:$0xff] %v8290_v39 }
 0x172   :  { %11286 = vst [vmem:[#allocation177_spill] sm:$0xff] %v8277_v45  ;;  %v8282_v32 = vsel %vm192_vm14, 1.0, %v11099_v30  ;;  %v8299_v24 = vsel %vm193_vm15, 1.0, %v11099_v30  ;;  %v8302_v2 = vsel %vm194_vm3, 1.0, %v11099_v30  ;;  %5207 = vmatprep.subr.bf16.mxu0 %v11099_v30  ;;  %vm1397_vm1 = vcmp.eq.s32.totalorder %v5871_v49, %v7986_v40 }
 0x173   :  { %11287 = vst [vmem:[#allocation178_spill] sm:$0xff] %v8282_v32  ;;  %11290 = vst [vmem:[#allocation181_spill] sm:$0xff] %v8299_v24  ;;  %v4740_v9 = vsel %vm1995_vm8, 1.0, %v11099_v30  ;;  %v4745_v53 = vsel %vm2000_vm7, 1.0, %v11099_v30  ;;  %v1715_v18 = vpack.c.bf16 %v8248_v48, %v8226_v59  ;;  %vm2605_vm11 = vcmp.eq.s32.totalorder %v5861_v62, %v11295_v1  ;;  %v11345_v48 = vld [vmem:[#allocation99_spill] sm:$0xff] }
 0x174   :  { %11291 = vst [vmem:[#allocation182_spill] sm:$0xff] %v8302_v2  ;;  %5208 = vmatpush3.bf16.msra.mxu0 %v5524_v57  ;;  %v11299_v23 = vpack.c.bf16 %v8086_v28, %v8114_v8  ;;  %v11300_v36 = vpack.c.bf16 %v8140_v33, %v11279_v12  ;;  %vm1398_vm7 = vcmp.eq.s32.totalorder %v11214_v0, %v7986_v40  ;;  %v2412_v33 = vadd.s32 512, %v7748_v13  ;;  %v5525_v8 = vld [vmem:[#allocation2 + $0x110] sm:$0xff]   ;;  %v11308_v57 = vld [vmem:[#allocation160_spill] sm:$0xff] }
 0x175   :  { %1255 = vperm.xlu1 %5484, %v1203_v6   ;;  %v8320_v41 = vpop.permute.xlu1 %638  ;;  %v4741_v6 = vsel %vm1996_vm0, 1.0, %v11099_v30  ;;  %5209 = vmatprep.subr.bf16.mxu0 %v11099_v30  ;;  %v1781_v12 = vadd.bf16 %v1716_v58, %v1176_v55  ;;  %vm1399_vm15 = vcmp.eq.s32.totalorder %v11215_v51, %v7986_v40  ;;  %vm2546_vm0 = vcmp.eq.s32.totalorder %v5884_v21, %v11308_v57 }
 0x176   :  { %vm732_vm2 = vcmp.eq.s32.totalorder %v5871_v49, %v8320_v41  ;;  %vm733_vm10 = vcmp.eq.s32.totalorder %v11214_v0, %v8320_v41  ;;  %vm734_vm6 = vcmp.eq.s32.totalorder %v11215_v51, %v8320_v41  ;;  %v2321_v2 = vpack.c.bf16 %v4746_v31, %v4741_v6  ;;  %v11305_v31 = vld [vmem:[#allocation26_spill] sm:$0xff] }
 0x177   :  { %v8351_v3 = vsel %vm732_vm2, 1.0, %v11099_v30  ;;  %v8358_v27 = vsel %vm733_vm10, 1.0, %v11099_v30  ;;  %v8361_v44 = vsel %vm734_vm6, 1.0, %v11099_v30  ;;  %v1175_v59 = vadd.bf16 %v11300_v36, %v11299_v23 }
 0x178   :  { %11296 = vst [vmem:[#allocation9_spill] sm:$0xff] %v8351_v3  ;;  %11297 = vst [vmem:[#allocation85_spill] sm:$0xff] %v8358_v27  ;;  %v4871_v36 = vsel %vm2606_vm9, 1.0, %v11099_v30  ;;  %v4870_v23 = vsel %vm2605_vm11, 1.0, %v11099_v30  ;;  %5210 = vmatpush3.bf16.msra.mxu0 %v5525_v8  ;;  %v2386_v55 = vadd.bf16 %v2321_v2, %v1781_v12  ;;  %vm2545_vm3 = vcmp.eq.s32.totalorder %v5861_v62, %v11308_v57  ;;  %v11309_v8 = vld [vmem:[#allocation89_spill] sm:$0xff]  ;;  %v11312_v12 = vld [vmem:[#allocation14_spill] sm:$0xff] }
 0x179   :  { %11298 = vst [vmem:[#allocation183_spill] sm:$0xff] %v8361_v44  ;;  %5485 = vset.pattern.permute.xlu1 %v11199_v22  ;;  %v2320_v22 = vpack.c.bf16 %v4745_v53, %v4740_v9  ;;  %v11306_v9 = vld [vmem:[#allocation31_spill] sm:$0xff]  ;;  %5211 = vmatprep.subr.bf16.mxu0 %v11099_v30  ;;  %v4643_v61 = vsel %vm1898_vm4, 1.0, %v11099_v30  ;;  %v8446_v38 = vsel %vm1398_vm7, 1.0, %v11099_v30  ;;  %v8458_v20 = vsel %vm2546_vm0, 1.0, %v11099_v30  ;;  %v11346_v57 = vld [vmem:[#allocation114_spill] sm:$0xff] }
 0x17a   :  { %1860 = vperm.xlu1 %5485, %v1808_v25   ;;  %v8379_v28 = vpop.permute.xlu1 %2486  ;;  %v1780_v25 = vadd.bf16 %v1715_v18, %v1175_v59  ;;  %v1063_v53 = vpack.c.bf16 %v11306_v9, %v11305_v31  ;;  %v8405_v59 = vsel %vm1393_vm12, 1.0, %v11099_v30  ;;  %v11310_v31 = vld [vmem:[#allocation88_spill] sm:$0xff]  ;;  %vm1903_vm12 = vcmp.eq.s32.totalorder %v11214_v0, %v11312_v12 }
 0x17b   :  { %11304 = vst [vmem:[#allocation184_spill] sm:$0xff] %v8379_v28  ;;  %vm2601_vm8 = vcmp.eq.s32.totalorder %v5884_v21, %v8379_v28  ;;  %vm2600_vm14 = vcmp.eq.s32.totalorder %v5861_v62, %v8379_v28  ;;  %11307 = vst [vmem:[#allocation26_spill] sm:$0xff] %v8405_v59  ;;  %vm190_vm11 = vcmp.eq.s32.totalorder %v5861_v62, %v8260_v17 }
 0x17c   :  { %v4866_v13 = vsel %vm2601_vm8, 1.0, %v11099_v30  ;;  %v4865_v6 = vsel %vm2600_vm14, 1.0, %v11099_v30  ;;  %v2385_v24 = vadd.bf16 %v2320_v22, %v1780_v25  ;;  %v8427_v25 = vsel %vm1394_vm5, 1.0, %v11099_v30  ;;  %11317 = vst [vmem:[#allocation88_spill] sm:$0xff] %v8446_v38 }
 0x17d   :  { %v2926_v58 = vpack.c.bf16 %v4871_v36, %v4866_v13  ;;  %v2925_v18 = vpack.c.bf16 %v4870_v23, %v4865_v6  ;;  %11313 = vst [vmem:[#allocation31_spill] sm:$0xff] %v8427_v25  ;;  %v11314_v13 = vld [vmem:[#allocation8_spill] sm:$0xff]  ;;  %v11315_v6 = vld [vmem:[#allocation91_spill] sm:$0xff]  ;;  %vm731_vm0 = vcmp.eq.s32.totalorder %v5884_v21, %v8320_v41 }
 0x17e   :  { %5486 = vset.pattern.permute.xlu1 %v11044_v60  ;;  %v11311_v60 = vpack.c.bf16 %v11309_v8, %v11310_v31  ;;  %vm2616_vm9 = vcmp.eq.s32.totalorder %v5884_v21, %v11314_v13  ;;  %vm2615_vm8 = vcmp.eq.s32.totalorder %v5861_v62, %v11314_v13  ;;  %v4436_v25 = vsel %vm731_vm0, 1.0, %v11099_v30 }
 0x17f   :  { %2462 = vperm.xlu1 %5486, %v2412_v33   ;;  %v8415_v22 = vpop.permute.xlu1 %137  ;;  %v2991_v36 = vadd.bf16 %v2926_v58, %v2386_v55  ;;  %v2990_v23 = vadd.bf16 %v2925_v18, %v2385_v24  ;;  %v4518_v33 = vsel %vm1293_vm13, 1.0, %v11099_v30  ;;  %v8440_v24 = vsel %vm1397_vm1, 1.0, %v11099_v30  ;;  %v5526_v55 = vld [vmem:[#allocation2 + $0x108] sm:$0xff]  }
 0x180   :  { %v1128_v2 = vadd.bf16 %v1063_v53, %v11311_v60  ;;  %v1668_v9 = vpack.c.bf16 %v11315_v6, %v4518_v33  ;;  %11316 = vst [vmem:[#allocation89_spill] sm:$0xff] %v8440_v24  ;;  %v8452_v53 = vsel %vm1399_vm15, 1.0, %v11099_v30  ;;  %vm257_vm13 = vcmp.eq.s32.totalorder %v5871_v49, %v8415_v22  ;;  %5212 = vmatpush3.bf16.msra.mxu0 %v5526_v55  ;;  %v8521_v55 = vpop.permute.xlu0 %1845 }
 0x181   :  { %11318 = vst [vmem:[#allocation14_spill] sm:$0xff] %v8452_v53  ;;  %3437 = vmatprep.mubr.bf16.mxu1 %v2991_v36  ;;  %v8466_v58 = vsel %vm2545_vm3, 1.0, %v11099_v30  ;;  %v4648_v18 = vsel %vm1903_vm12, 1.0, %v11099_v30  ;;  %vm258_vm4 = vcmp.eq.s32.totalorder %v11214_v0, %v8415_v22  ;;  %vm259_vm5 = vcmp.eq.s32.totalorder %v11215_v51, %v8415_v22  ;;  %v5527_v36 = vld [vmem:[#allocation2 + $0x100] sm:$0xff]   ;;  %5213 = vmatprep.subr.bf16.mxu0 %v11099_v30 }
 0x182   :  { %3438 = vmatmul.mubr.bf16.gmra.mxu1 %v2990_v23  ;;  %v1733_v40 = vadd.bf16 %v1668_v9, %v1128_v2  ;;  %v8479_v31 = vsel %vm2616_vm9, 1.0, %v11099_v30  ;;  %v2273_v60 = vpack.c.bf16 %v4648_v18, %v4643_v61  ;;  %vm185_vm1 = vcmp.eq.s32.totalorder %v5861_v62, %v8197_v42  ;;  %v11319_v2 = vld [vmem:[#allocation76_spill] sm:$0xff]  ;;  %11326 = vst [vmem:[#allocation190_spill] sm:$0xff] %v8521_v55 }
 0x183   :  { %v8473_v8 = vpop.permute.xlu1 %140  ;;  %vm2621_vm6 = vcmp.eq.s32.totalorder %v5884_v21, %v11319_v2  ;;  %v8496_v23 = vsel %vm257_vm13, 1.0, %v11099_v30  ;;  %v8507_v12 = vsel %vm258_vm4, 1.0, %v11099_v30  ;;  %v8513_v6 = vsel %vm259_vm5, 1.0, %v11099_v30  ;;  %v11327_v18 = vld [vmem:[#allocation92_spill] sm:$0xff] }
 0x184   :  { %vm262_vm2 = vcmp.eq.s32.totalorder %v5871_v49, %v8473_v8  ;;  %vm263_vm10 = vcmp.eq.s32.totalorder %v11214_v0, %v8473_v8  ;;  %11320 = vst [vmem:[#allocation91_spill] sm:$0xff] %v8496_v23  ;;  %vm264_vm7 = vcmp.eq.s32.totalorder %v11215_v51, %v8473_v8  ;;  %11322 = vst [vmem:[#allocation186_spill] sm:$0xff] %v8507_v12  ;;  %5214 = vmatpush3.bf16.msra.mxu0 %v5527_v36  ;;  %v8588_v38 = vpop.permute.xlu0 %1890  ;;  %v11335_v23 = vld [vmem:[#allocation62_spill] sm:$0xff] }
 0x185   :  { %v8501_v33 = vsel %vm262_vm2, 1.0, %v11099_v30  ;;  %11323 = vst [vmem:[#allocation187_spill] sm:$0xff] %v8513_v6  ;;  %v8516_v9 = vsel %vm263_vm10, 1.0, %v11099_v30  ;;  %v8519_v61 = vsel %vm264_vm7, 1.0, %v11099_v30  ;;  %vm1303_vm14 = vcmp.eq.s32.totalorder %v11214_v0, %v11327_v18  ;;  %5335 = vmatprep.subr.bf16.mxu0 %v11099_v30  ;;  %11334 = vst [vmem:[#allocation194_spill] sm:$0xff] %v8588_v38 }
 0x186   :  { %11321 = vst [vmem:[#allocation185_spill] sm:$0xff] %v8501_v33  ;;  %11324 = vst [vmem:[#allocation188_spill] sm:$0xff] %v8516_v9  ;;  %v8533_v24 = vadd.bf16 %v2273_v60, %v1733_v40  ;;  %vm730_vm15 = vcmp.eq.s32.totalorder %v5861_v62, %v8320_v41  ;;  %v8545_v32 = vsel %vm2621_vm6, 1.0, %v11099_v30  ;;  %vm2620_vm3 = vcmp.eq.s32.totalorder %v5861_v62, %v11319_v2 }
 0x187   :  { %11325 = vst [vmem:[#allocation189_spill] sm:$0xff] %v8519_v61  ;;  %vm186_vm12 = vcmp.eq.s32.totalorder %v5884_v21, %v8197_v42  ;;  %vm191_vm9 = vcmp.eq.s32.totalorder %v5884_v21, %v8260_v17  ;;  %v4305_v41 = vsel %vm185_vm1, 1.0, %v11099_v30  ;;  %v4310_v40 = vsel %vm190_vm11, 1.0, %v11099_v30  ;;  %v11336_v61 = vld [vmem:[#allocation63_spill] sm:$0xff] }
 0x188   :  { %v8539_v1 = vpop.permute.xlu1 %680  ;;  %vm1908_vm2 = vcmp.eq.s32.totalorder %v11214_v0, %v7326_v52  ;;  %v4435_v36 = vsel %vm730_vm15, 1.0, %v11099_v30  ;;  %v4311_v17 = vsel %vm191_vm9, 1.0, %v11099_v30  ;;  %v4306_v59 = vsel %vm186_vm12, 1.0, %v11099_v30 }
 0x189   :  { %vm802_vm13 = vcmp.eq.s32.totalorder %v5871_v49, %v8539_v1  ;;  %vm803_vm4 = vcmp.eq.s32.totalorder %v11214_v0, %v8539_v1  ;;  %vm804_vm5 = vcmp.eq.s32.totalorder %v11215_v51, %v8539_v1  ;;  %v540_v39 = vpack.c.bf16 %v4310_v40, %v4305_v41 }
 0x18a   :  { %v8569_v60 = vsel %vm802_vm13, 1.0, %v11099_v30  ;;  %v8576_v53 = vsel %vm803_vm4, 1.0, %v11099_v30  ;;  %v8579_v6 = vsel %vm804_vm5, 1.0, %v11099_v30  ;;  %vm1935_vm1 = vcmp.eq.s32.totalorder %v5861_v62, %v8521_v55 }
 0x18b   :  { %11328 = vst [vmem:[#allocation191_spill] sm:$0xff] %v8569_v60  ;;  %11329 = vst [vmem:[#allocation192_spill] sm:$0xff] %v8576_v53  ;;  %vm1936_vm10 = vcmp.eq.s32.totalorder %v5884_v21, %v8521_v55  ;;  %v1080_v12 = vpack.c.bf16 %v4435_v36, %v11335_v23  ;;  %v1081_v28 = vpack.c.bf16 %v4436_v25, %v11336_v61  ;;  %v11337_v23 = vld [vmem:[#allocation124_spill] sm:$0xff]  ;;  %v11338_v25 = vld [vmem:[#allocation123_spill] sm:$0xff]  ;;  %v8618_v9 = vsel %vm2620_vm3, 1.0, %v11099_v30 }
 0x18c   :  { %11330 = vst [vmem:[#allocation193_spill] sm:$0xff] %v8579_v6  ;;  %v541_v42 = vpack.c.bf16 %v4311_v17, %v4306_v59  ;;  %vm2011_vm7 = vcmp.eq.s32.totalorder %v5884_v21, %v8588_v38  ;;  %vm2010_vm15 = vcmp.eq.s32.totalorder %v5861_v62, %v8588_v38  ;;  %11339 = vst [vmem:[#allocation62_spill] sm:$0xff] %v8618_v9  ;;  %v8623_v17 = vsel %vm1936_vm10, 1.0, %v11099_v30  ;;  %v11341_v53 = vld [vmem:[#allocation29_spill] sm:$0xff]  ;;  %v11343_v38 = vld [vmem:[#allocation94_spill] sm:$0xff] }
 0x18d   :  { %v8594_v44 = vpop.permute.xlu1 %1240  ;;  %v8629_v6 = vsel %vm1935_vm1, 1.0, %v11099_v30  ;;  %vm1302_vm0 = vcmp.eq.s32.totalorder %v5871_v49, %v11327_v18  ;;  %v8642_v2 = vsel %vm2011_vm7, 1.0, %v11099_v30  ;;  %v4528_v60 = vsel %vm1303_vm14, 1.0, %v11099_v30 }
 0x18e   :  { %vm1330_vm6 = vcmp.eq.s32.totalorder %v5861_v62, %v8594_v44  ;;  %vm1331_vm11 = vcmp.eq.s32.totalorder %v5884_v21, %v8594_v44  ;;  %v8649_v13 = vsel %vm2010_vm15, 1.0, %v11099_v30  ;;  %vm1907_vm3 = vcmp.eq.s32.totalorder %v5871_v49, %v7326_v52 }
 0x18f   :  { %v4555_v41 = vsel %vm1330_vm6, 1.0, %v11099_v30  ;;  %v4556_v40 = vsel %vm1331_vm11, 1.0, %v11099_v30  ;;  %vm255_vm12 = vcmp.eq.s32.totalorder %v5861_v62, %v8415_v22  ;;  %vm260_vm14 = vcmp.eq.s32.totalorder %v5861_v62, %v8473_v8 }
 0x190   :  { %v1686_v36 = vpack.c.bf16 %v11337_v23, %v4556_v40  ;;  %v1685_v61 = vpack.c.bf16 %v11338_v25, %v4555_v41  ;;  %v8635_v41 = vsel %vm2615_vm8, 1.0, %v11099_v30  ;;  %v1146_v23 = vadd.bf16 %v1081_v28, %v541_v42  ;;  %v11340_v40 = vld [vmem:[#allocation103_spill] sm:$0xff]  ;;  %v11342_v28 = vld [vmem:[#allocation113_spill] sm:$0xff] }
 0x191   :  { %v8620_v59 = vpop.permute.xlu1 %1282  ;;  %v1145_v25 = vadd.bf16 %v1080_v12, %v540_v39  ;;  %vm2508_vm8 = vcmp.eq.s32.totalorder %v11214_v0, %v11340_v40  ;;  %v1068_v39 = vpack.c.bf16 %v11342_v28, %v11341_v53  ;;  %vm261_vm9 = vcmp.eq.s32.totalorder %v5884_v21, %v8473_v8  ;;  %v11344_v53 = vld [vmem:[#allocation102_spill] sm:$0xff] }
 0x192   :  { %v8663_v12 = vadd.bf16 %v1686_v36, %v1146_v23  ;;  %v528_v28 = vpack.c.bf16 %v11344_v53, %v11343_v38  ;;  %v1673_v3 = vpack.c.bf16 %v11345_v48, %v4528_v60  ;;  %vm1913_vm13 = vcmp.eq.s32.totalorder %v11214_v0, %v11346_v57  ;;  %v11347_v36 = vld [vmem:[#allocation27_spill] sm:$0xff]  ;;  %v11348_v23 = vld [vmem:[#allocation77_spill] sm:$0xff] }
 0x193   :  { %v8665_v42 = vadd.bf16 %v1685_v61, %v1145_v25  ;;  %vm800_vm4 = vcmp.eq.s32.totalorder %v5861_v62, %v8539_v1  ;;  %vm801_vm5 = vcmp.eq.s32.totalorder %v5884_v21, %v8539_v1  ;;  %vm2503_vm1 = vcmp.eq.s32.totalorder %v11214_v0, %v11347_v36  ;;  %v11350_v36 = vld [vmem:[#allocation71_spill] sm:$0xff] }
 0x194   :  { %v4653_v8 = vsel %vm1908_vm2, 1.0, %v11099_v30  ;;  %vm256_vm10 = vcmp.eq.s32.totalorder %v5884_v21, %v8415_v22  ;;  %v4375_v48 = vsel %vm255_vm12, 1.0, %v11099_v30  ;;  %v4380_v38 = vsel %vm260_vm14, 1.0, %v11099_v30 }
 0x195   :  { %v8669_v33 = vpop.permute.xlu1 %1285  ;;  %v1133_v60 = vadd.bf16 %v1068_v39, %v528_v28  ;;  %v4381_v61 = vsel %vm261_vm9, 1.0, %v11099_v30  ;;  %v4773_v1 = vsel %vm2508_vm8, 1.0, %v11099_v30  ;;  %vm2551_vm6 = vcmp.eq.s32.totalorder %v5884_v21, %v11348_v23 }
 0x196   :  { %v4658_v25 = vsel %vm1913_vm13, 1.0, %v11099_v30  ;;  %v4505_v53 = vsel %vm800_vm4, 1.0, %v11099_v30  ;;  %v4506_v22 = vsel %vm801_vm5, 1.0, %v11099_v30  ;;  %v4376_v39 = vsel %vm256_vm10, 1.0, %v11099_v30 }
 0x197   :  { %v1738_v45 = vadd.bf16 %v1673_v3, %v1133_v60  ;;  %v2278_v27 = vpack.c.bf16 %v4658_v25, %v4653_v8  ;;  %v575_v28 = vpack.c.bf16 %v4380_v38, %v4375_v48  ;;  %v4768_v40 = vsel %vm2503_vm1, 1.0, %v11099_v30  ;;  %v11351_v48 = vld [vmem:[#allocation72_spill] sm:$0xff] }
 0x198   :  { %vm2550_vm2 = vcmp.eq.s32.totalorder %v5861_v62, %v11348_v23  ;;  %vm1313_vm11 = vcmp.eq.s32.totalorder %v11214_v0, %v7267_v46  ;;  %v576_v9 = vpack.c.bf16 %v4381_v61, %v4376_v39  ;;  %v2878_v3 = vpack.c.bf16 %v4773_v1, %v4768_v40  ;;  %v11354_v39 = vld [vmem:[#allocation28_spill] sm:$0xff] }
 0x199   :  { %vm1918_vm8 = vcmp.eq.s32.totalorder %v11214_v0, %v7445_v63  ;;  %vm1923_vm12 = vcmp.eq.s32.totalorder %v11214_v0, %v7407_v4  ;;  %v1115_v8 = vpack.c.bf16 %v4505_v53, %v11350_v36  ;;  %v1116_v38 = vpack.c.bf16 %v4506_v22, %v11351_v48  ;;  %v11355_v40 = vld [vmem:[#allocation112_spill] sm:$0xff] }
 0x19a   :  { %v8701_v55 = vpop.permute.xlu1 %1848  ;;  %v8725_v60 = vsel %vm2551_vm6, 1.0, %v11099_v30  ;;  %v8727_v61 = vadd.bf16 %v2278_v27, %v1738_v45  ;;  %v8731_v25 = vsel %vm2550_vm2, 1.0, %v11099_v30  ;;  %v4527_v53 = vsel %vm1302_vm0, 1.0, %v11099_v30  ;;  %v11357_v45 = vld [vmem:[#allocation18_spill] sm:$0xff] }
 0x19b   :  { %11349 = vst [vmem:[#allocation63_spill] sm:$0xff] %v8701_v55  ;;  %vm1940_vm7 = vcmp.eq.s32.totalorder %v5861_v62, %v8701_v55  ;;  %vm1941_vm15 = vcmp.eq.s32.totalorder %v5884_v21, %v8701_v55  ;;  %11352 = vst [vmem:[#allocation124_spill] sm:$0xff] %v8725_v60  ;;  %v1067_v55 = vpack.c.bf16 %v11355_v40, %v11354_v39  ;;  %v11359_v39 = vld [vmem:[#allocation93_spill] sm:$0xff] }
 0x19c   :  { %v4686_v1 = vsel %vm1941_vm15, 1.0, %v11099_v30  ;;  %11353 = vst [vmem:[#allocation123_spill] sm:$0xff] %v8731_v25  ;;  %v4685_v36 = vsel %vm1940_vm7, 1.0, %v11099_v30  ;;  %v8743_v27 = vadd.bf16 %v2878_v3, %v8533_v24  ;;  %v11358_v48 = vpack.c.bf16 %v11235_v10, %v11234_v29  ;;  %v11360_v40 = vld [vmem:[#allocation101_spill] sm:$0xff]  ;;  %v11361_v25 = vld [vmem:[#allocation98_spill] sm:$0xff] }
 0x19d   :  { %vm1912_vm14 = vcmp.eq.s32.totalorder %v5871_v49, %v11346_v57  ;;  %vm1332_vm9 = vcmp.eq.s32.totalorder %v5871_v49, %v8594_v44  ;;  %v527_v18 = vpack.c.bf16 %v11360_v40, %v11359_v39  ;;  %v1672_v60 = vpack.c.bf16 %v11361_v25, %v4527_v53 }
 0x19e   :  { %v8739_v22 = vpop.permute.xlu1 %1887  ;;  %v8749_v23 = vadd.bf16 %v11358_v48, %v11357_v45  ;;  %v4652_v24 = vsel %vm1907_vm3, 1.0, %v11099_v30  ;;  %vm1333_vm0 = vcmp.eq.s32.totalorder %v11214_v0, %v8594_v44  ;;  %v2291_v29 = vpack.c.bf16 %v4686_v1, %v8623_v17 }
 0x19f   :  { %11356 = vst [vmem:[#allocation103_spill] sm:$0xff] %v8739_v22  ;;  %v8765_v10 = vadd.bf16 %v1116_v38, %v576_v9  ;;  %v8767_v3 = vadd.bf16 %v1115_v8, %v575_v28  ;;  %vm1334_vm13 = vcmp.eq.s32.totalorder %v11215_v51, %v8594_v44  ;;  %v2290_v45 = vpack.c.bf16 %v4685_v36, %v8629_v6  ;;  %v11362_v36 = vld [vmem:[#allocation44_spill] sm:$0xff] }
 0x1a0   :  { %v1132_v25 = vadd.bf16 %v1067_v55, %v527_v18  ;;  %v4657_v53 = vsel %vm1912_vm14, 1.0, %v11099_v30  ;;  %v8774_v48 = vsel %vm1332_vm9, 1.0, %v11099_v30  ;;  %vm1400_vm3 = vcmp.eq.s32.totalorder %v5861_v62, %v8620_v59 }
 0x1a1   :  { %vm1401_vm4 = vcmp.eq.s32.totalorder %v5884_v21, %v8620_v59  ;;  %v2277_v9 = vpack.c.bf16 %v4657_v53, %v4652_v24  ;;  %vm1402_vm5 = vcmp.eq.s32.totalorder %v5871_v49, %v8620_v59  ;;  %vm1403_vm1 = vcmp.eq.s32.totalorder %v11214_v0, %v8620_v59 }
 0x1a2   :  { %vm1404_vm10 = vcmp.eq.s32.totalorder %v11215_v51, %v8620_v59  ;;  %v1737_v55 = vadd.bf16 %v1672_v60, %v1132_v25  ;;  %vm1406_vm6 = vcmp.eq.s32.totalorder %v5884_v21, %v8669_v33  ;;  %v2356_v18 = vadd.bf16 %v2291_v29, %v8663_v12  ;;  %v11369_v59 = vld [vmem:[#allocation119_spill] sm:$0xff] }
 0x1a3   :  { %v8786_v6 = vpop.permute.xlu1 %2450  ;;  %v2355_v28 = vadd.bf16 %v2290_v45, %v8665_v42  ;;  %v1073_v12 = vpack.c.bf16 %v7896_v16, %v11362_v36  ;;  %v4538_v39 = vsel %vm1313_vm11, 1.0, %v11099_v30  ;;  %v533_v40 = vpack.c.bf16 %v7874_v26, %v7764_v43  ;;  %v11363_v42 = vld [vmem:[#allocation109_spill] sm:$0xff] }
 0x1a4   :  { %vm2541_vm2 = vcmp.eq.s32.totalorder %v5884_v21, %v8786_v6  ;;  %vm2540_vm7 = vcmp.eq.s32.totalorder %v5861_v62, %v8786_v6  ;;  %v8798_v38 = vadd.bf16 %v2277_v9, %v1737_v55  ;;  %v1678_v24 = vpack.c.bf16 %v11363_v42, %v4538_v39 }
 0x1a5   :  { %v4806_v17 = vsel %vm2541_vm2, 1.0, %v11099_v30  ;;  %v4805_v8 = vsel %vm2540_vm7, 1.0, %v11099_v30  ;;  %v4668_v16 = vsel %vm1923_vm12, 1.0, %v11099_v30  ;;  %vm1312_vm15 = vcmp.eq.s32.totalorder %v5871_v49, %v7267_v46 }
 0x1a6   :  { %v2896_v60 = vpack.c.bf16 %v8458_v20, %v4806_v17  ;;  %v2895_v1 = vpack.c.bf16 %v8466_v58, %v4805_v8  ;;  %v4663_v20 = vsel %vm1918_vm8, 1.0, %v11099_v30  ;;  %vm1405_vm11 = vcmp.eq.s32.totalorder %v5861_v62, %v8669_v33 }
 0x1a7   :  { %v2283_v29 = vpack.c.bf16 %v4668_v16, %v4663_v20  ;;  %v8829_v45 = vsel %vm1333_vm0, 1.0, %v11099_v30  ;;  %v8835_v25 = vsel %vm1334_vm13, 1.0, %v11099_v30  ;;  %v4625_v53 = vsel %vm1400_vm3, 1.0, %v11099_v30 }
 0x1a8   :  { %v8823_v58 = vpop.permute.xlu1 %101  ;;  %v2961_v43 = vadd.bf16 %v2896_v60, %v2356_v18  ;;  %v2960_v26 = vadd.bf16 %v2895_v1, %v2355_v28  ;;  %11364 = vst [vmem:[#allocation29_spill] sm:$0xff] %v8835_v25  ;;  %v1138_v9 = vadd.bf16 %v1073_v12, %v533_v40  ;;  %v4626_v55 = vsel %vm1401_vm4, 1.0, %v11099_v30  ;;  %v11368_v1 = vld [vmem:[#allocation134_spill] sm:$0xff] }
 0x1a9   :  { %v8849_v18 = vsel %vm1402_vm5, 1.0, %v11099_v30  ;;  %v8855_v44 = vsel %vm1403_vm1, 1.0, %v11099_v30  ;;  %v4631_v17 = vsel %vm1406_vm6, 1.0, %v11099_v30  ;;  %v8865_v28 = vsel %vm1404_vm10, 1.0, %v11099_v30 }
 0x1aa   :  { %11365 = vst [vmem:[#allocation113_spill] sm:$0xff] %v8849_v18  ;;  %11366 = vst [vmem:[#allocation94_spill] sm:$0xff] %v8855_v44  ;;  %3389 = vmatprep.mubr.bf16.mxu0 %v2961_v43  ;;  %v4630_v8 = vsel %vm1405_vm11, 1.0, %v11099_v30  ;;  %vm2006_vm8 = vcmp.eq.s32.totalorder %v5884_v21, %v8739_v22  ;;  %v1743_v60 = vadd.bf16 %v1678_v24, %v1138_v9 }
 0x1ab   :  { %11367 = vst [vmem:[#allocation102_spill] sm:$0xff] %v8865_v28  ;;  %3390 = vmatmul.mubr.bf16.gmra.mxu0 %v2960_v26  ;;  %vm1917_vm12 = vcmp.eq.s32.totalorder %v5871_v49, %v7445_v63  ;;  %vm2005_vm14 = vcmp.eq.s32.totalorder %v5861_v62, %v8739_v22  ;;  %vm197_vm9 = vcmp.eq.s32.totalorder %v5871_v49, %v8823_v58  ;;  %v4751_v40 = vsel %vm2006_vm8, 1.0, %v11099_v30 }
 0x1ac   :  { %vm2513_vm0 = vcmp.eq.s32.totalorder %v11214_v0, %v11368_v1  ;;  %vm2518_vm13 = vcmp.eq.s32.totalorder %v11214_v0, %v11369_v59  ;;  %vm1922_vm3 = vcmp.eq.s32.totalorder %v5871_v49, %v7407_v4  ;;  %vm198_vm4 = vcmp.eq.s32.totalorder %v11214_v0, %v8823_v58  ;;  %v8886_v36 = vpop.permute.xlu1 %104 }
 0x1ad   :  { %vm199_vm5 = vcmp.eq.s32.totalorder %v11215_v51, %v8823_v58  ;;  %v1721_v12 = vpack.c.bf16 %v4631_v17, %v4626_v55  ;;  %v8888_v39 = vadd.bf16 %v2283_v29, %v1743_v60  ;;  %vm202_vm1 = vcmp.eq.s32.totalorder %v5871_v49, %v8886_v36  ;;  %v11394_v55 = vld [vmem:[#allocation128_spill] sm:$0xff] }
 0x1ae   :  { %vm203_vm10 = vcmp.eq.s32.totalorder %v11214_v0, %v8886_v36  ;;  %v1720_v42 = vpack.c.bf16 %v4630_v8, %v4625_v53  ;;  %v8899_v24 = vsel %vm197_vm9, 1.0, %v11099_v30  ;;  %vm204_vm6 = vcmp.eq.s32.totalorder %v11215_v51, %v8886_v36 }
 0x1af   :  { %11370 = vst [vmem:[#allocation99_spill] sm:$0xff] %v8899_v24  ;;  %v8904_v20 = vsel %vm202_vm1, 1.0, %v11099_v30  ;;  %v4750_v16 = vsel %vm2005_vm14, 1.0, %v11099_v30  ;;  %v8911_v43 = vsel %vm198_vm4, 1.0, %v11099_v30  ;;  %v8914_v26 = vsel %vm199_vm5, 1.0, %v11099_v30 }
 0x1b0   :  { %11371 = vst [vmem:[#allocation27_spill] sm:$0xff] %v8914_v26  ;;  %v8917_v29 = vsel %vm203_vm10, 1.0, %v11099_v30  ;;  %v8920_v53 = vsel %vm204_vm6, 1.0, %v11099_v30  ;;  %v8932_v8 = vsel %vm2513_vm0, 1.0, %v11099_v30  ;;  %v1786_v28 = vadd.bf16 %v1721_v12, %v8765_v10  ;;  %v11376_v26 = vld [vmem:[#allocation81_spill] sm:$0xff] }
 0x1b1   :  { %11372 = vst [vmem:[#allocation71_spill] sm:$0xff] %v8920_v53  ;;  %v2326_v18 = vpack.c.bf16 %v8642_v2, %v4751_v40  ;;  %v1785_v44 = vadd.bf16 %v1720_v42, %v8767_v3  ;;  %v8941_v9 = vsel %vm2518_vm13, 1.0, %v11099_v30  ;;  %vm1407_vm2 = vcmp.eq.s32.totalorder %v5871_v49, %v8669_v33  ;;  %v11373_v3 = vld [vmem:[#allocation43_spill] sm:$0xff] }
 0x1b2   :  { %v2325_v17 = vpack.c.bf16 %v8649_v13, %v4750_v16  ;;  %v4537_v2 = vsel %vm1312_vm15, 1.0, %v11099_v30  ;;  %vm2512_vm14 = vcmp.eq.s32.totalorder %v5871_v49, %v11368_v1  ;;  %v1072_v12 = vpack.c.bf16 %v7890_v37, %v11373_v3  ;;  %v11375_v16 = vld [vmem:[#allocation80_spill] sm:$0xff] }
 0x1b3   :  { %v645_v60 = vpop.permute.xlu1 %644  ;;  %vm2517_vm15 = vcmp.eq.s32.totalorder %v5871_v49, %v11369_v59  ;;  %v532_v42 = vpack.c.bf16 %v7868_v7, %v7760_v5  ;;  %v11378_v3 = vld [vmem:[#allocation108_spill] sm:$0xff]  ;;  %v2391_v57 = vadd.bf16 %v2326_v18, %v1786_v28  ;;  %v4777_v24 = vsel %vm2512_vm14, 1.0, %v11099_v30 }
 0x1b4   :  { %vm742_vm7 = vcmp.eq.s32.totalorder %v5871_v49, %v645_v60  ;;  %vm743_vm11 = vcmp.eq.s32.totalorder %v11214_v0, %v645_v60  ;;  %vm744_vm8 = vcmp.eq.s32.totalorder %v11215_v51, %v645_v60  ;;  %v1677_v25 = vpack.c.bf16 %v11378_v3, %v4537_v2 }
 0x1b5   :  { %v8954_v10 = vsel %vm742_vm7, 1.0, %v11099_v30  ;;  %v8961_v40 = vsel %vm743_vm11, 1.0, %v11099_v30  ;;  %v8964_v13 = vsel %vm744_vm8, 1.0, %v11099_v30  ;;  %v2390_v46 = vadd.bf16 %v2325_v17, %v1785_v44 }
 0x1b6   :  { %11374 = vst [vmem:[#allocation72_spill] sm:$0xff] %v8964_v13  ;;  %v4662_v7 = vsel %vm1917_vm12, 1.0, %v11099_v30  ;;  %vm1408_vm9 = vcmp.eq.s32.totalorder %v11214_v0, %v8669_v33  ;;  %v1137_v5 = vadd.bf16 %v1072_v12, %v532_v42  ;;  %v4667_v18 = vsel %vm1922_vm3, 1.0, %v11099_v30  ;;  %v11403_v13 = vld [vmem:[#allocation57_spill] sm:$0xff] }
 0x1b7   :  { %vm2523_vm12 = vcmp.eq.s32.totalorder %v11214_v0, %v7493_v19  ;;  %vm2528_vm4 = vcmp.eq.s32.totalorder %v11214_v0, %v11207_v11  ;;  %vm741_vm5 = vcmp.eq.s32.totalorder %v5884_v21, %v645_v60  ;;  %vm1928_vm3 = vcmp.eq.s32.totalorder %v11214_v0, %v8025_v50 }
 0x1b8   :  { %v8977_v1 = vpop.permute.xlu1 %2492  ;;  %v1742_v12 = vadd.bf16 %v1677_v25, %v1137_v5  ;;  %vm740_vm1 = vcmp.eq.s32.totalorder %v5861_v62, %v645_v60  ;;  %v4782_v42 = vsel %vm2517_vm15, 1.0, %v11099_v30  ;;  %v2282_v3 = vpack.c.bf16 %v4667_v18, %v4662_v7  ;;  %v11385_v18 = vld [vmem:[#allocation79_spill] sm:$0xff] }
 0x1b9   :  { %11379 = vst [vmem:[#allocation28_spill] sm:$0xff] %v8977_v1  ;;  %vm2611_vm0 = vcmp.eq.s32.totalorder %v5884_v21, %v8977_v1  ;;  %vm2610_vm13 = vcmp.eq.s32.totalorder %v5861_v62, %v8977_v1  ;;  %v11380_v37 = vpack.c.bf16 %v7611_v54, %v7622_v15  ;;  %vm1933_vm10 = vcmp.eq.s32.totalorder %v11214_v0, %v8054_v47 }
 0x1ba   :  { %v4876_v44 = vsel %vm2611_vm0, 1.0, %v11099_v30  ;;  %v4875_v28 = vsel %vm2610_vm13, 1.0, %v11099_v30  ;;  %vm201_vm6 = vcmp.eq.s32.totalorder %v5884_v21, %v8886_v36  ;;  %vm200_vm7 = vcmp.eq.s32.totalorder %v5861_v62, %v8886_v36 }
 0x1bb   :  { %v2931_v17 = vpack.c.bf16 %v8479_v31, %v4876_v44  ;;  %v2930_v2 = vpack.c.bf16 %v8635_v41, %v4875_v28  ;;  %v11381_v31 = vpack.c.bf16 %v7676_v34, %v11227_v35  ;;  %v11383_v28 = vld [vmem:[#allocation120_spill] sm:$0xff]  ;;  %v4446_v54 = vsel %vm741_vm5, 1.0, %v11099_v30 }
 0x1bc   :  { %v1683_v7 = vpack.c.bf16 %v11383_v28, %v8212_v14  ;;  %v4788_v15 = vsel %vm2523_vm12, 1.0, %v11099_v30  ;;  %vm1409_vm11 = vcmp.eq.s32.totalorder %v11215_v51, %v8669_v33  ;;  %v9043_v34 = vsel %vm1407_vm2, 1.0, %v11099_v30  ;;  %v11386_v28 = vld [vmem:[#allocation78_spill] sm:$0xff] }
 0x1bd   :  { %v1143_v44 = vadd.bf16 %v11381_v31, %v11380_v37  ;;  %v9020_v41 = vpop.permute.xlu1 %143  ;;  %v2996_v25 = vadd.bf16 %v2931_v17, %v2391_v57  ;;  %v2995_v5 = vadd.bf16 %v2930_v2, %v2390_v46  ;;  %v4793_v46 = vsel %vm2528_vm4, 1.0, %v11099_v30  ;;  %11384 = vst [vmem:[#allocation18_spill] sm:$0xff] %v9043_v34  ;;  %v9057_v2 = vpop.permute.xlu0 %1851 }
 0x1be   :  { %11382 = vst [vmem:[#allocation112_spill] sm:$0xff] %v9020_v41  ;;  %vm196_vm8 = vcmp.eq.s32.totalorder %v5884_v21, %v8823_v58  ;;  %v4445_v35 = vsel %vm740_vm1, 1.0, %v11099_v30  ;;  %vm195_vm14 = vcmp.eq.s32.totalorder %v5861_v62, %v8823_v58  ;;  %v4321_v14 = vsel %vm201_vm6, 1.0, %v11099_v30 }
 0x1bf   :  { %3445 = vmatprep.mubr.bf16.mxu1 %v2996_v25  ;;  %v2883_v57 = vpack.c.bf16 %v8941_v9, %v8932_v8  ;;  %v2882_v36 = vpack.c.bf16 %v4782_v42, %v4777_v24  ;;  %v4320_v37 = vsel %vm200_vm7, 1.0, %v11099_v30  ;;  %v1086_v17 = vpack.c.bf16 %v4446_v54, %v11385_v18 }
 0x1c0   :  { %3446 = vmatmul.mubr.bf16.gmra.mxu1 %v2995_v5  ;;  %v2888_v31 = vpack.c.bf16 %v4793_v46, %v4788_v15  ;;  %v9059_v60 = vadd.bf16 %v2282_v3, %v1742_v12  ;;  %v4316_v25 = vsel %vm196_vm8, 1.0, %v11099_v30  ;;  %v1085_v58 = vpack.c.bf16 %v4445_v35, %v11386_v28  ;;  %v11392_v28 = vld [vmem:[#allocation130_spill] sm:$0xff] }
 0x1c1   :  { %vm1946_vm2 = vcmp.eq.s32.totalorder %v5884_v21, %v9057_v2  ;;  %v1748_v9 = vadd.bf16 %v1683_v7, %v1143_v44  ;;  %v4315_v24 = vsel %vm195_vm14, 1.0, %v11099_v30  ;;  %v546_v8 = vpack.c.bf16 %v4321_v14, %v4316_v25 }
 0x1c2   :  { %v9065_v5 = vpop.permute.xlu1 %683  ;;  %vm1945_vm15 = vcmp.eq.s32.totalorder %v5861_v62, %v9057_v2  ;;  %vm2522_vm0 = vcmp.eq.s32.totalorder %v5871_v49, %v7493_v19  ;;  %v9076_v12 = vsel %vm1408_vm9, 1.0, %v11099_v30  ;;  %v9082_v42 = vsel %vm1409_vm11, 1.0, %v11099_v30 }
 0x1c3   :  { %11387 = vst [vmem:[#allocation93_spill] sm:$0xff] %v9065_v5  ;;  %11388 = vst [vmem:[#allocation101_spill] sm:$0xff] %v9076_v12  ;;  %v545_v3 = vpack.c.bf16 %v4320_v37, %v4315_v24  ;;  %v9085_v44 = vadd.bf16 %v2883_v57, %v8727_v61  ;;  %v1151_v7 = vadd.bf16 %v1086_v17, %v546_v8  ;;  %v9088_v54 = vsel %vm1946_vm2, 1.0, %v11099_v30 }
 0x1c4   :  { %11389 = vst [vmem:[#allocation98_spill] sm:$0xff] %v9082_v42  ;;  %v9091_v15 = vadd.bf16 %v2882_v36, %v8798_v38  ;;  %v9094_v46 = vadd.bf16 %v2888_v31, %v8888_v39  ;;  %v9097_v14 = vsel %vm1945_vm15, 1.0, %v11099_v30  ;;  %vm2527_vm9 = vcmp.eq.s32.totalorder %v5871_v49, %v11207_v11  ;;  %v11404_v11 = vld [vmem:[#allocation118_spill] sm:$0xff] }
 0x1c5   :  { %v1150_v35 = vadd.bf16 %v1085_v58, %v545_v3  ;;  %v9102_v33 = vsel %vm2522_vm0, 1.0, %v11099_v30  ;;  %vm265_vm13 = vcmp.eq.s32.totalorder %v5861_v62, %v9020_v41  ;;  %vm266_vm12 = vcmp.eq.s32.totalorder %v5884_v21, %v9020_v41 }
 0x1c6   :  { %vm267_vm4 = vcmp.eq.s32.totalorder %v5871_v49, %v9020_v41  ;;  %v4673_v38 = vsel %vm1928_vm3, 1.0, %v11099_v30  ;;  %vm805_vm5 = vcmp.eq.s32.totalorder %v5861_v62, %v9065_v5  ;;  %v4678_v39 = vsel %vm1933_vm10, 1.0, %v11099_v30 }
 0x1c7   :  { %v9110_v61 = vpop.permute.xlu1 %1249  ;;  %vm268_vm7 = vcmp.eq.s32.totalorder %v11214_v0, %v9020_v41  ;;  %vm806_vm3 = vcmp.eq.s32.totalorder %v5884_v21, %v9065_v5  ;;  %v4385_v37 = vsel %vm265_vm13, 1.0, %v11099_v30  ;;  %v4386_v18 = vsel %vm266_vm12, 1.0, %v11099_v30 }
 0x1c8   :  { %vm1345_vm1 = vcmp.eq.s32.totalorder %v5861_v62, %v9110_v61  ;;  %vm1346_vm6 = vcmp.eq.s32.totalorder %v5884_v21, %v9110_v61  ;;  %v9135_v17 = vsel %vm267_vm4, 1.0, %v11099_v30  ;;  %vm807_vm10 = vcmp.eq.s32.totalorder %v5871_v49, %v9065_v5 }
 0x1c9   :  { %v4570_v57 = vsel %vm1345_vm1, 1.0, %v11099_v30  ;;  %v4571_v36 = vsel %vm1346_vm6, 1.0, %v11099_v30  ;;  %11390 = vst [vmem:[#allocation44_spill] sm:$0xff] %v9135_v17  ;;  %vm1927_vm11 = vcmp.eq.s32.totalorder %v5871_v49, %v8025_v50  ;;  %vm808_vm8 = vcmp.eq.s32.totalorder %v11214_v0, %v9065_v5 }
 0x1ca   :  { %v4510_v31 = vsel %vm805_vm5, 1.0, %v11099_v30  ;;  %v1691_v58 = vpack.c.bf16 %v4571_v36, %v11392_v28  ;;  %v2288_v24 = vpack.c.bf16 %v4678_v39, %v4673_v38  ;;  %v9148_v8 = vsel %vm268_vm7, 1.0, %v11099_v30 }
 0x1cb   :  { %v9144_v25 = vpop.permute.xlu1 %1288  ;;  %11393 = vst [vmem:[#allocation119_spill] sm:$0xff] %v9148_v8  ;;  %v4511_v3 = vsel %vm806_vm3, 1.0, %v11099_v30  ;;  %v1690_v53 = vpack.c.bf16 %v4570_v57, %v11394_v55  ;;  %v9156_v42 = vsel %vm2527_vm9, 1.0, %v11099_v30  ;;  %vm1932_vm14 = vcmp.eq.s32.totalorder %v5871_v49, %v8054_v47  ;;  %v11401_v8 = vld [vmem:[#allocation53_spill] sm:$0xff] }
 0x1cc   :  { %11391 = vst [vmem:[#allocation109_spill] sm:$0xff] %v9144_v25  ;;  %v580_v41 = vpack.c.bf16 %v4385_v37, %v4385_v37  ;;  %v581_v34 = vpack.c.bf16 %v4386_v18, %v4386_v18  ;;  %vm1410_vm2 = vcmp.eq.s32.totalorder %v5861_v62, %v9144_v25  ;;  %vm1411_vm15 = vcmp.eq.s32.totalorder %v5884_v21, %v9144_v25 }
 0x1cd   :  { %v9170_v38 = vsel %vm807_vm10, 1.0, %v11099_v30  ;;  %v9176_v39 = vsel %vm808_vm8, 1.0, %v11099_v30  ;;  %v1120_v57 = vpack.c.bf16 %v4510_v31, %v4510_v31  ;;  %v1121_v36 = vpack.c.bf16 %v4511_v3, %v4511_v3 }
 0x1ce   :  { %11395 = vst [vmem:[#allocation43_spill] sm:$0xff] %v9170_v38  ;;  %11396 = vst [vmem:[#allocation80_spill] sm:$0xff] %v9176_v39  ;;  %vm1347_vm0 = vcmp.eq.s32.totalorder %v5871_v49, %v9110_v61  ;;  %vm1348_vm9 = vcmp.eq.s32.totalorder %v11214_v0, %v9110_v61  ;;  %v1756_v37 = vadd.bf16 %v1691_v58, %v1151_v7  ;;  %v4635_v18 = vsel %vm1410_vm2, 1.0, %v11099_v30  ;;  %v11398_v38 = vld [vmem:[#allocation68_spill] sm:$0xff]  ;;  %v11400_v39 = vld [vmem:[#allocation87_spill] sm:$0xff] }
 0x1cf   :  { %v4636_v28 = vsel %vm1411_vm15, 1.0, %v11099_v30  ;;  %v1755_v17 = vadd.bf16 %v1690_v53, %v1150_v35  ;;  %v9186_v1 = vadd.bf16 %v2288_v24, %v1748_v9  ;;  %vm1349_vm12 = vcmp.eq.s32.totalorder %v11215_v51, %v9110_v61  ;;  %v11415_v61 = vld [vmem:[#allocation63_spill] sm:$0xff] }
 0x1d0   :  { %v9184_v55 = vpop.permute.xlu1 %1854  ;;  %v9201_v53 = vsel %vm1347_vm0, 1.0, %v11099_v30  ;;  %v9206_v9 = vsel %vm1348_vm9, 1.0, %v11099_v30  ;;  %v1725_v35 = vpack.c.bf16 %v4635_v18, %v4635_v18  ;;  %v1726_v24 = vpack.c.bf16 %v4636_v28, %v4636_v28 }
 0x1d1   :  { %vm1951_vm13 = vcmp.eq.s32.totalorder %v5884_v21, %v9184_v55  ;;  %vm1950_vm4 = vcmp.eq.s32.totalorder %v5861_v62, %v9184_v55  ;;  %v1186_v7 = vadd.bf16 %v1121_v36, %v581_v34  ;;  %v1185_v58 = vadd.bf16 %v1120_v57, %v580_v41 }
 0x1d2   :  { %v4696_v3 = vsel %vm1951_vm13, 1.0, %v11099_v30  ;;  %v11399_v5 = vpack.c.bf16 %v7608_v56, %v11398_v38  ;;  %v11402_v12 = vpack.c.bf16 %v11400_v39, %v11401_v8  ;;  %v1682_v19 = vpack.c.bf16 %v11404_v11, %v11403_v13 }
 0x1d3   :  { %vm1412_vm5 = vcmp.eq.s32.totalorder %v5871_v49, %v9144_v25  ;;  %v4695_v41 = vsel %vm1950_vm4, 1.0, %v11099_v30  ;;  %v4672_v11 = vsel %vm1927_vm11, 1.0, %v11099_v30  ;;  %v1791_v13 = vadd.bf16 %v1726_v24, %v1186_v7  ;;  %v11408_v24 = vld [vmem:[#allocation62_spill] sm:$0xff] }
 0x1d4   :  { %v9209_v31 = vpop.permute.xlu1 %1893  ;;  %v1142_v22 = vadd.bf16 %v11402_v12, %v11399_v5  ;;  %v2296_v5 = vpack.c.bf16 %v4696_v3, %v9088_v54  ;;  %v1790_v8 = vadd.bf16 %v1725_v35, %v1185_v58  ;;  %vm1413_vm7 = vcmp.eq.s32.totalorder %v11214_v0, %v9144_v25  ;;  %v11405_v3 = vld [vmem:[#allocation173_spill] sm:$0xff] }
 0x1d5   :  { %11397 = vst [vmem:[#allocation81_spill] sm:$0xff] %v9209_v31  ;;  %vm2015_vm1 = vcmp.eq.s32.totalorder %v5861_v62, %v9209_v31  ;;  %vm2016_vm6 = vcmp.eq.s32.totalorder %v5884_v21, %v9209_v31  ;;  %v2295_v39 = vpack.c.bf16 %v4695_v41, %v9097_v14  ;;  %v4677_v54 = vsel %vm1932_vm14, 1.0, %v11099_v30  ;;  %v11429_v25 = vld [vmem:[#allocation65_spill] sm:$0xff] }
 0x1d6   :  { %v4761_v56 = vsel %vm2016_vm6, 1.0, %v11099_v30  ;;  %v4760_v34 = vsel %vm2015_vm1, 1.0, %v11099_v30  ;;  %v1747_v57 = vadd.bf16 %v1682_v19, %v1142_v22  ;;  %vm2533_vm3 = vcmp.eq.s32.totalorder %v11214_v0, %v11405_v3  ;;  %v11406_v19 = vld [vmem:[#allocation149_spill] sm:$0xff]  ;;  %v9250_v22 = vpop.permute.xlu0 %1857 }
 0x1d7   :  { %v2331_v12 = vpack.c.bf16 %v4761_v56, %v4761_v56  ;;  %v2330_v38 = vpack.c.bf16 %v4760_v34, %v4760_v34  ;;  %v2287_v7 = vpack.c.bf16 %v4677_v54, %v4672_v11  ;;  %v2361_v58 = vadd.bf16 %v2296_v5, %v1756_v37  ;;  %v11410_v5 = vld [vmem:[#allocation124_spill] sm:$0xff] }
 0x1d8   :  { %vm2538_vm8 = vcmp.eq.s32.totalorder %v11214_v0, %v11406_v19  ;;  %v11407_v14 = vpack.c.bf16 %v8545_v32, %v8545_v32  ;;  %v11409_v41 = vpack.c.bf16 %v11408_v24, %v11408_v24  ;;  %v9266_v32 = vsel %vm1349_vm12, 1.0, %v11099_v30 }
 0x1d9   :  { %v9240_v36 = vpop.permute.xlu1 %2459  ;;  %v2396_v18 = vadd.bf16 %v2331_v12, %v1791_v13  ;;  %v2395_v28 = vadd.bf16 %v2330_v38, %v1790_v8  ;;  %v2360_v13 = vadd.bf16 %v2295_v39, %v1755_v17  ;;  %v11411_v12 = vld [vmem:[#allocation123_spill] sm:$0xff]  ;;  %v2352_v38 = vadd.bf16 %v2287_v7, %v1747_v57  ;;  %11412 = vst [vmem:[#allocation108_spill] sm:$0xff] %v9266_v32  ;;  %v11414_v57 = vld [vmem:[#allocation190_spill] sm:$0xff] }
 0x1da   :  { %vm2556_vm10 = vcmp.eq.s32.totalorder %v5884_v21, %v9240_v36  ;;  %vm2555_vm11 = vcmp.eq.s32.totalorder %v5861_v62, %v9240_v36  ;;  %v9272_v54 = vsel %vm1412_vm5, 1.0, %v11099_v30  ;;  %v4798_v17 = vsel %vm2533_vm3, 1.0, %v11099_v30  ;;  %v2466_v24 = vpop.permute.xlu0 %2465 }
 0x1db   :  { %v3001_v35 = vadd.bf16 %v11407_v14, %v2396_v18  ;;  %v3000_v56 = vadd.bf16 %v11409_v41, %v2395_v28  ;;  %v4821_v37 = vsel %vm2556_vm10, 1.0, %v11099_v30  ;;  %v4820_v34 = vsel %vm2555_vm11, 1.0, %v11099_v30  ;;  %11413 = vst [vmem:[#allocation120_spill] sm:$0xff] %v9272_v54 }
 0x1dc   :  { %v2901_v11 = vpack.c.bf16 %v4821_v37, %v11410_v5  ;;  %v2900_v8 = vpack.c.bf16 %v4820_v34, %v11411_v12  ;;  %v4803_v39 = vsel %vm2538_vm8, 1.0, %v11099_v30  ;;  %vm1938_vm14 = vcmp.eq.s32.totalorder %v11214_v0, %v11414_v57  ;;  %v11432_v5 = vld [vmem:[#allocation126_spill] sm:$0xff] }
 0x1dd   :  { %3453 = vmatprep.mubr.bf16.mxu1 %v3001_v35  ;;  %vm1943_vm2 = vcmp.eq.s32.totalorder %v11214_v0, %v11415_v61  ;;  %vm2532_vm15 = vcmp.eq.s32.totalorder %v5871_v49, %v11405_v3  ;;  %vm2537_vm0 = vcmp.eq.s32.totalorder %v5871_v49, %v11406_v19  ;;  %v9291_v14 = vsel %vm1413_vm7, 1.0, %v11099_v30 }
 0x1de   :  { %3454 = vmatmul.mubr.bf16.gmra.mxu1 %v3000_v56  ;;  %v108_v18 = vpop.permute.xlu1 %107  ;;  %v2966_v28 = vadd.bf16 %v2901_v11, %v2361_v58  ;;  %v2965_v7 = vadd.bf16 %v2900_v8, %v2360_v13  ;;  %11416 = vst [vmem:[#allocation79_spill] sm:$0xff] %v9291_v14  ;;  %v11417_v58 = vpack.c.bf16 %v9156_v42, %v9102_v33  ;;  %v4802_v42 = vsel %vm2537_vm0, 1.0, %v11099_v30 }
 0x1df   :  { %vm205_vm9 = vcmp.eq.s32.totalorder %v5861_v62, %v108_v18  ;;  %vm206_vm13 = vcmp.eq.s32.totalorder %v5884_v21, %v108_v18  ;;  %3493 = vmatprep.mubr.bf16.mxu1 %v8743_v27  ;;  %vm207_vm12 = vcmp.eq.s32.totalorder %v5871_v49, %v108_v18  ;;  %vm208_vm4 = vcmp.eq.s32.totalorder %v11214_v0, %v108_v18 }
 0x1e0   :  { %v9300_v35 = vadd.bf16 %v11417_v58, %v9059_v60  ;;  %vm209_vm5 = vcmp.eq.s32.totalorder %v11215_v51, %v108_v18  ;;  %3397 = vmatprep.mubr.bf16.mxu0 %v2966_v28  ;;  %v2893_v41 = vpack.c.bf16 %v4803_v39, %v4798_v17  ;;  %v4797_v60 = vsel %vm2532_vm15, 1.0, %v11099_v30  ;;  %v11421_v18 = vld [vmem:[#allocation156_spill] sm:$0xff]  ;;  %v11426_v28 = vld [vmem:[#allocation179_spill] sm:$0xff]  ;;  %v11428_v58 = vld [vmem:[#allocation85_spill] sm:$0xff] }
 0x1e1   :  { %v9308_v27 = vsel %vm209_vm5, 1.0, %v11099_v30  ;;  %3398 = vmatmul.mubr.bf16.gmra.mxu0 %v2965_v7  ;;  %v9319_v33 = vsel %vm205_vm9, 1.0, %v11099_v30  ;;  %v9322_v37 = vsel %vm206_vm13, 1.0, %v11099_v30  ;;  %vm2565_vm1 = vcmp.eq.s32.totalorder %v5861_v62, %v2466_v24  ;;  %v11422_v7 = vld [vmem:[#allocation157_spill] sm:$0xff] }
 0x1e2   :  { %11418 = vst [vmem:[#allocation78_spill] sm:$0xff] %v9308_v27  ;;  %v9330_v13 = vsel %vm207_vm12, 1.0, %v11099_v30  ;;  %v9333_v12 = vsel %vm208_vm4, 1.0, %v11099_v30  ;;  %vm2566_vm6 = vcmp.eq.s32.totalorder %v5884_v21, %v2466_v24  ;;  %v9337_v17 = vadd.bf16 %v2893_v41, %v9186_v1  ;;  %v11424_v41 = vld [vmem:[#allocation159_spill] sm:$0xff] }
 0x1e3   :  { %11420 = vst [vmem:[#allocation130_spill] sm:$0xff] %v9330_v13  ;;  %v648_v8 = vpop.permute.xlu1 %647  ;;  %vm2567_vm7 = vcmp.eq.s32.totalorder %v5871_v49, %v2466_v24  ;;  %vm2568_vm3 = vcmp.eq.s32.totalorder %v11214_v0, %v2466_v24  ;;  %v2892_v39 = vpack.c.bf16 %v4802_v42, %v4797_v60  ;;  %vm2569_vm10 = vcmp.eq.s32.totalorder %v11215_v51, %v2466_v24  ;;  %v11425_v42 = vld [vmem:[#allocation181_spill] sm:$0xff] }
 0x1e4   :  { %v9347_v56 = vsel %vm2565_vm1, 1.0, %v11099_v30  ;;  %v9355_v60 = vsel %vm2566_vm6, 1.0, %v11099_v30  ;;  %v11427_v54 = vpack.c.bf16 %v11425_v42, %v11426_v28  ;;  %v11430_v24 = vpack.c.bf16 %v11428_v58, %v11429_v25 }
 0x1e5   :  { %vm749_vm11 = vcmp.eq.s32.totalorder %v11215_v51, %v648_v8  ;;  %v9366_v27 = vsel %vm2567_vm7, 1.0, %v11099_v30  ;;  %v1688_v34 = vpack.c.bf16 %v11432_v5, %v8829_v45  ;;  %vm745_vm8 = vcmp.eq.s32.totalorder %v5861_v62, %v648_v8 }
 0x1e6   :  { %3494 = vmatmul.mubr.bf16.vlgmr.msra.gmra.mxu1 %v8749_v23  ;;  %v1148_v14 = vadd.bf16 %v11430_v24, %v11427_v54  ;;  %11431 = vst [vmem:[#allocation128_spill] sm:$0xff] %v9366_v27  ;;  %v9369_v23 = vsel %vm2568_vm3, 1.0, %v11099_v30  ;;  %vm746_vm15 = vcmp.eq.s32.totalorder %v5884_v21, %v648_v8  ;;  %v9376_v25 = vsel %vm2569_vm10, 1.0, %v11099_v30 }
 0x1e7   :  { %3501 = vmatprep.mubr.bf16.mxu1 %v9085_v44  ;;  %v651_v1 = vpop.permute.xlu1 %650  ;;  %11433 = vst [vmem:[#allocation68_spill] sm:$0xff] %v9376_v25  ;;  %v9378_v54 = vadd.bf16 %v2892_v39, %v2352_v38  ;;  %vm1956_vm0 = vcmp.eq.s32.totalorder %v5884_v21, %v9250_v22  ;;  %v4683_v45 = vsel %vm1938_vm14, 1.0, %v11099_v30  ;;  %v4688_v44 = vsel %vm1943_vm2, 1.0, %v11099_v30 }
 0x1e8   :  { %vm750_vm9 = vcmp.eq.s32.totalorder %v5861_v62, %v651_v1  ;;  %vm754_vm13 = vcmp.eq.s32.totalorder %v11215_v51, %v651_v1  ;;  %vm747_vm12 = vcmp.eq.s32.totalorder %v5871_v49, %v648_v8  ;;  %v9396_v38 = vsel %vm749_vm11, 1.0, %v11099_v30 }
 0x1e9   :  { %v5006_v5 = vpop.f32.mrf.mxu1  ;;  %11434 = vst [vmem:[#allocation87_spill] sm:$0xff] %v9396_v38  ;;  %vm751_vm4 = vcmp.eq.s32.totalorder %v5884_v21, %v651_v1  ;;  %v9400_v39 = vsel %vm754_vm13, 1.0, %v11099_v30  ;;  %vm748_vm14 = vcmp.eq.s32.totalorder %v11214_v0, %v648_v8  ;;  %vm752_vm5 = vcmp.eq.s32.totalorder %v5871_v49, %v651_v1 }
 0x1ea   :  { %11435 = vst [vmem:[#allocation53_spill] sm:$0xff] %v9400_v39  ;;  %vm753_vm1 = vcmp.eq.s32.totalorder %v11214_v0, %v651_v1  ;;  %vm1955_vm2 = vcmp.eq.s32.totalorder %v5861_v62, %v9250_v22  ;;  %v4450_v42 = vsel %vm745_vm8, 1.0, %v11099_v30  ;;  %v4455_v24 = vsel %vm750_vm9, 1.0, %v11099_v30 }
 0x1eb   :  { %v5007_v58 = vpop.f32.mrf.mxu1  ;;  %v1753_v31 = vadd.bf16 %v1688_v34, %v1148_v14  ;;  %v2293_v32 = vpack.c.bf16 %v4688_v44, %v4683_v45  ;;  %vm1937_vm6 = vcmp.eq.s32.totalorder %v5871_v49, %v11414_v57  ;;  %v4451_v28 = vsel %vm746_vm15, 1.0, %v11099_v30 }
 0x1ec   :  { %v1253_v25 = vpop.permute.xlu1 %1252  ;;  %v9417_v19 = vadd.f32 %v5007_v58, %v5006_v5  ;;  %v9425_v38 = vsel %vm747_vm12, 1.0, %v11099_v30  ;;  %v4456_v39 = vsel %vm751_vm4, 1.0, %v11099_v30  ;;  %vm1942_vm7 = vcmp.eq.s32.totalorder %v5871_v49, %v11415_v61 }
 0x1ed   :  { %11437 = vst [vmem:[#allocation118_spill] sm:$0xff] %v9425_v38  ;;  %v9435_v14 = vsel %vm748_vm14, 1.0, %v11099_v30  ;;  %v9437_v34 = vpop.f32.mrf.mxu1  ;;  %v9442_v45 = vsel %vm752_vm5, 1.0, %v11099_v30  ;;  %v9447_v44 = vsel %vm753_vm1, 1.0, %v11099_v30  ;;  %vm2543_vm3 = vcmp.eq.s32.totalorder %v11214_v0, %v8786_v6 }
 0x1ee   :  { %11436 = vst [vmem:[#allocation57_spill] sm:$0xff] %v9417_v19  ;;  %11438 = vst [vmem:[#allocation62_spill] sm:$0xff] %v9437_v34  ;;  %3502 = vmatmul.mubr.bf16.gmra.mxu1 %v9091_v15  ;;  %v1090_v8 = vpack.c.bf16 %v4455_v24, %v4450_v42  ;;  %vm1350_vm10 = vcmp.eq.s32.totalorder %v5861_v62, %v1253_v25  ;;  %vm1351_vm11 = vcmp.eq.s32.totalorder %v5884_v21, %v1253_v25  ;;  %v11441_v24 = vld [vmem:[#allocation160_spill] sm:$0xff] }
 0x1ef   :  { %11439 = vst [vmem:[#allocation124_spill] sm:$0xff] %v9442_v45  ;;  %3509 = vmatprep.mubr.bf16.mxu1 %v9094_v46  ;;  %v2358_v5 = vadd.bf16 %v2293_v32, %v1753_v31  ;;  %v9455_v58 = vpop.f32.mrf.mxu1  ;;  %v1091_v19 = vpack.c.bf16 %v4456_v39, %v4451_v28  ;;  %vm1352_vm8 = vcmp.eq.s32.totalorder %v5871_v49, %v1253_v25  ;;  %v4808_v46 = vsel %vm2543_vm3, 1.0, %v11099_v30  ;;  %v11449_v45 = vld [vmem:[#allocation64_spill] sm:$0xff] }
 0x1f0   :  { %11440 = vst [vmem:[#allocation123_spill] sm:$0xff] %v9455_v58  ;;  %vm1353_vm15 = vcmp.eq.s32.totalorder %v11214_v0, %v1253_v25  ;;  %vm1354_vm9 = vcmp.eq.s32.totalorder %v11215_v51, %v1253_v25  ;;  %v9464_v42 = vpop.permute.xlu1 %1255  ;;  %vm2548_vm13 = vcmp.eq.s32.totalorder %v11214_v0, %v11441_v24  ;;  %v4575_v32 = vsel %vm1350_vm10, 1.0, %v11099_v30 }
 0x1f1   :  { %v5012_v31 = vpop.f32.mrf.mxu1  ;;  %v4576_v39 = vsel %vm1351_vm11, 1.0, %v11099_v30  ;;  %vm1355_vm12 = vcmp.eq.s32.totalorder %v5861_v62, %v9464_v42  ;;  %vm1356_vm4 = vcmp.eq.s32.totalorder %v5884_v21, %v9464_v42  ;;  %v9476_v25 = vsel %vm1352_vm8, 1.0, %v11099_v30 }
 0x1f2   :  { %11442 = vst [vmem:[#allocation190_spill] sm:$0xff] %v9476_v25  ;;  %v9479_v28 = vsel %vm1353_vm15, 1.0, %v11099_v30  ;;  %v9482_v15 = vsel %vm1354_vm9, 1.0, %v11099_v30  ;;  %v4581_v1 = vsel %vm1356_vm4, 1.0, %v11099_v30  ;;  %vm1357_vm14 = vcmp.eq.s32.totalorder %v5871_v49, %v9464_v42 }
 0x1f3   :  { %11443 = vst [vmem:[#allocation63_spill] sm:$0xff] %v9482_v15  ;;  %v5013_v58 = vpop.f32.mrf.mxu1  ;;  %v4813_v34 = vsel %vm2548_vm13, 1.0, %v11099_v30  ;;  %v11444_v3 = vpack.c.bf16 %v11422_v7, %v9322_v37  ;;  %v4701_v50 = vsel %vm1956_vm0, 1.0, %v11099_v30  ;;  %vm1948_vm5 = vcmp.eq.s32.totalorder %v11214_v0, %v9057_v2  ;;  %v11445_v37 = vld [vmem:[#allocation178_spill] sm:$0xff]  ;;  %v11448_v7 = vld [vmem:[#allocation9_spill] sm:$0xff] }
 0x1f4   :  { %vm1953_vm1 = vcmp.eq.s32.totalorder %v11214_v0, %v9184_v55  ;;  %v9499_v15 = vadd.f32 %v5013_v58, %v5012_v31  ;;  %v4580_v27 = vsel %vm1355_vm12, 1.0, %v11099_v30  ;;  %v2898_v38 = vpack.c.bf16 %v4813_v34, %v4808_v46 }
 0x1f5   :  { %v1156_v47 = vadd.bf16 %v1091_v19, %v11444_v3  ;;  %v9502_v25 = vpop.permute.xlu1 %1860  ;;  %v11446_v3 = vld [vmem:[#allocation177_spill] sm:$0xff]  ;;  %v11450_v13 = vpack.c.bf16 %v11448_v7, %v11449_v45  ;;  %vm1358_vm0 = vcmp.eq.s32.totalorder %v11214_v0, %v9464_v42  ;;  %v1696_v58 = vpack.c.bf16 %v4581_v1, %v4576_v39 }
 0x1f6   :  { %v11447_v19 = vpack.c.bf16 %v11445_v37, %v11446_v3  ;;  %vm1960_vm3 = vcmp.eq.s32.totalorder %v5861_v62, %v9502_v25  ;;  %vm1961_vm10 = vcmp.eq.s32.totalorder %v5884_v21, %v9502_v25  ;;  %3510 = vmatmul.mubr.bf16.gmra.mxu1 %v9300_v35  ;;  %v9521_v34 = vsel %vm1357_vm14, 1.0, %v11099_v30  ;;  %v11452_v39 = vld [vmem:[#allocation125_spill] sm:$0xff] }
 0x1f7   :  { %3517 = vmatprep.mubr.bf16.mxu1 %v9337_v17  ;;  %v11451_v45 = vpack.c.bf16 %v11421_v18, %v9319_v33  ;;  %v4700_v35 = vsel %vm1955_vm2, 1.0, %v11099_v30  ;;  %v1695_v1 = vpack.c.bf16 %v4580_v27, %v4575_v32  ;;  %v4705_v31 = vsel %vm1960_vm3, 1.0, %v11099_v30 }
 0x1f8   :  { %v1147_v11 = vadd.bf16 %v11450_v13, %v11447_v19  ;;  %v4706_v13 = vsel %vm1961_vm10, 1.0, %v11099_v30  ;;  %v1687_v37 = vpack.c.bf16 %v11452_v39, %v8774_v48  ;;  %v4682_v17 = vsel %vm1937_vm6, 1.0, %v11099_v30 }
 0x1f9   :  { %v1155_v46 = vadd.bf16 %v1090_v8, %v11451_v45  ;;  %vm1947_vm11 = vcmp.eq.s32.totalorder %v5871_v49, %v9057_v2  ;;  %vm1952_vm8 = vcmp.eq.s32.totalorder %v5871_v49, %v9184_v55  ;;  %v9547_v27 = vsel %vm1358_vm0, 1.0, %v11099_v30  ;;  %v5528_v45 = vld [vmem:[%s10766_s2 + $0x38] sm:$0xff]  }
 0x1fa   :  { %v2963_v33 = vadd.bf16 %v2898_v38, %v2358_v5  ;;  %v2301_v18 = vpack.c.bf16 %v4706_v13, %v4701_v50  ;;  %v4687_v48 = vsel %vm1942_vm7, 1.0, %v11099_v30  ;;  %v9553_v8 = vpop.permute.xlu1 %2462  ;;  %v1761_v32 = vadd.bf16 %v1696_v58, %v1156_v47  ;;  %5268 = vmatpush3.bf16.msra.mxu1 %v5528_v45  ;;  %v11453_v58 = vld [vmem:[#allocation92_spill] sm:$0xff] }
 0x1fb   :  { %v2300_v3 = vpack.c.bf16 %v4705_v31, %v4700_v35  ;;  %v1752_v19 = vadd.bf16 %v1687_v37, %v1147_v11  ;;  %v2292_v7 = vpack.c.bf16 %v4687_v48, %v4682_v17  ;;  %vm2560_vm2 = vcmp.eq.s32.totalorder %v5861_v62, %v9553_v8  ;;  %5269 = vmatprep.subr.bf16.mxu1 %v11099_v30  ;;  %v11456_v37 = vld [vmem:[#allocation132_spill] sm:$0xff] }
 0x1fc   :  { %vm2561_vm6 = vcmp.eq.s32.totalorder %v5884_v21, %v9553_v8  ;;  %vm2562_vm15 = vcmp.eq.s32.totalorder %v5871_v49, %v9553_v8  ;;  %vm2542_vm7 = vcmp.eq.s32.totalorder %v5871_v49, %v8786_v6  ;;  %vm1958_vm9 = vcmp.eq.s32.totalorder %v11214_v0, %v9250_v22  ;;  %v5529_v21 = vld [vmem:[%s10766_s2 + $0x30] sm:$0xff]  }
 0x1fd   :  { %vm1963_vm13 = vcmp.eq.s32.totalorder %v11214_v0, %v9502_v25  ;;  %v4825_v50 = vsel %vm2560_vm2, 1.0, %v11099_v30  ;;  %v4826_v47 = vsel %vm2561_vm6, 1.0, %v11099_v30  ;;  %v1760_v62 = vadd.bf16 %v1695_v1, %v1155_v46 }
 0x1fe   :  { %vm2547_vm12 = vcmp.eq.s32.totalorder %v5871_v49, %v11441_v24  ;;  %vm2563_vm4 = vcmp.eq.s32.totalorder %v11214_v0, %v9553_v8  ;;  %v9580_v11 = vsel %vm2562_vm15, 1.0, %v11099_v30  ;;  %v2366_v38 = vadd.bf16 %v2301_v18, %v1761_v32  ;;  %3518 = vmatmul.mubr.bf16.gmra.mxu1 %v9378_v54 }
 0x1ff   :  { %v2906_v5 = vpack.c.bf16 %v9355_v60, %v4826_v47  ;;  %vm1304_vm14 = vcmp.eq.s32.totalorder %v11215_v51, %v11453_v58  ;;  %v2365_v13 = vadd.bf16 %v2300_v3, %v1760_v62  ;;  %v2905_v46 = vpack.c.bf16 %v9347_v56, %v4825_v50  ;;  %3525 = vmatprep.mubr.bf16.mxu1 %v2963_v33  ;;  %v11458_v50 = vld [vmem:[#allocation37_spill] sm:$0xff]  ;;  %v11459_v47 = vld [vmem:[#allocation162_spill] sm:$0xff]  ;;  %v11460_v62 = vld [vmem:[#allocation84_spill] sm:$0xff] }
 0x200   :  { %v2357_v35 = vadd.bf16 %v2292_v7, %v1752_v19  ;;  %v4807_v1 = vsel %vm2542_vm7, 1.0, %v11099_v30  ;;  %vm1909_vm0 = vcmp.eq.s32.totalorder %v11215_v51, %v7326_v52  ;;  %v4812_v31 = vsel %vm2547_vm12, 1.0, %v11099_v30  ;;  %5270 = vmatpush3.bf16.msra.mxu1 %v5529_v21 }
 0x201   :  { %v2971_v60 = vadd.bf16 %v2906_v5, %v2366_v38  ;;  %v11454_v54 = vpack.c.bf16 %v8917_v29, %v8911_v43  ;;  %v11455_v56 = vpack.c.bf16 %v8961_v40, %v11376_v26  ;;  %v1693_v17 = vpack.c.bf16 %v9206_v9, %v11456_v37  ;;  %v11457_v29 = vld [vmem:[#allocation77_spill] sm:$0xff]  ;;  %5271 = vmatprep.subr.bf16.mxu1 %v11099_v30  ;;  %v11462_v5 = vld [vmem:[#allocation10_spill] sm:$0xff] }
 0x202   :  { %v2970_v18 = vadd.bf16 %v2905_v46, %v2365_v13  ;;  %v2897_v48 = vpack.c.bf16 %v4812_v31, %v4807_v1  ;;  %v4693_v33 = vsel %vm1948_vm5, 1.0, %v11099_v30  ;;  %v4698_v32 = vsel %vm1953_vm1, 1.0, %v11099_v30  ;;  %v11463_v13 = vld [vmem:[#allocation99_spill] sm:$0xff] }
 0x203   :  { %v1153_v39 = vadd.bf16 %v11455_v56, %v11454_v54  ;;  %3405 = vmatprep.mubr.bf16.mxu0 %v2971_v60  ;;  %v2298_v26 = vpack.c.bf16 %v4698_v32, %v4693_v33  ;;  %vm2553_vm3 = vcmp.eq.s32.totalorder %v11214_v0, %v11457_v29  ;;  %vm2558_vm10 = vcmp.eq.s32.totalorder %v11214_v0, %v9240_v36  ;;  %v11466_v60 = vld [vmem:[#allocation131_spill] sm:$0xff]  ;;  %v9671_v32 = vpop.f32.mrf.mxu1 }
 0x204   :  { %vm1957_vm2 = vcmp.eq.s32.totalorder %v5871_v49, %v9250_v22  ;;  %v9624_v40 = vsel %vm2563_vm4, 1.0, %v11099_v30  ;;  %3406 = vmatmul.mubr.bf16.gmra.mxu0 %v2970_v18  ;;  %v2962_v9 = vadd.bf16 %v2897_v48, %v2357_v35  ;;  %v4818_v3 = vsel %vm2553_vm3, 1.0, %v11099_v30 }
 0x205   :  { %v1758_v43 = vadd.bf16 %v1693_v17, %v1153_v39  ;;  %v4823_v19 = vsel %vm2558_vm10, 1.0, %v11099_v30  ;;  %vm1962_vm5 = vcmp.eq.s32.totalorder %v5871_v49, %v9502_v25  ;;  %v11461_v21 = vpack.c.bf16 %v11459_v47, %v11460_v62  ;;  %v11467_v39 = vld [vmem:[#allocation12_spill] sm:$0xff]  ;;  %v11475_v47 = vld [vmem:[#allocation115_spill] sm:$0xff] }
 0x206   :  { %v2903_v45 = vpack.c.bf16 %v4823_v19, %v4818_v3  ;;  %vm1363_vm1 = vcmp.eq.s32.totalorder %v11214_v0, %v11462_v5  ;;  %vm5604_vm6 = vmmov 0   ;;  %v11464_v46 = vpack.c.bf16 %v8904_v20, %v11463_v13  ;;  %v11468_v20 = vld [vmem:[#allocation90_spill] sm:$0xff]  ;;  %3526 = vmatmul.mubr.bf16.gmra.mxu1 %v2962_v9 }
 0x207   :  { %v2363_v7 = vadd.bf16 %v2298_v26, %v1758_v43  ;;  %v2944_v38 = vadd.bf16 %v11461_v21, %v11458_v50  ;;  %5215 = vmatprep.mubr.msk.bf16.mxu0 %vm5604_vm6, %v11099_v30  ;;  %v11465_v35 = vpack.c.bf16 %v8954_v10, %v11375_v16  ;;  %v1692_v31 = vpack.c.bf16 %v9201_v53, %v11466_v60  ;;  %v11474_v50 = vld [vmem:[#allocation30_spill] sm:$0xff]  ;;  %v9716_v60 = vpop.f32.mrf.mxu1 }
 0x208   :  { %v4692_v54 = vsel %vm1947_vm11, 1.0, %v11099_v30  ;;  %v4697_v56 = vsel %vm1952_vm8, 1.0, %v11099_v30  ;;  %vm1368_vm15 = vcmp.eq.s32.totalorder %v11214_v0, %v11467_v39  ;;  %vm1973_vm7 = vcmp.eq.s32.totalorder %v11214_v0, %v11468_v20  ;;  %v11476_v13 = vld [vmem:[#allocation114_spill] sm:$0xff] }
 0x209   :  { %v1152_v1 = vadd.bf16 %v11465_v35, %v11464_v46  ;;  %v2968_v10 = vadd.bf16 %v2903_v45, %v2363_v7  ;;  %v2297_v16 = vpack.c.bf16 %v4697_v56, %v4692_v54  ;;  %vm2552_vm12 = vcmp.eq.s32.totalorder %v5871_v49, %v11457_v29  ;;  %v11473_v7 = vld [vmem:[#allocation24_spill] sm:$0xff]  ;;  %v11478_v56 = vld [vmem:[#allocation134_spill] sm:$0xff] }
 0x20a   :  { %vm2557_vm4 = vcmp.eq.s32.totalorder %v5871_v49, %v9240_v36  ;;  %v4817_v37 = vsel %vm2552_vm12, 1.0, %v11099_v30  ;;  %v11469_v18 = vpack.c.bf16 %v11424_v41, %v9333_v12  ;;  %v11470_v48 = vpack.c.bf16 %v9447_v44, %v9435_v14  ;;  %v5530_v41 = vld [vmem:[%s10766_s2 + $0x28] sm:$0xff]  }
 0x20b   :  { %v1757_v53 = vadd.bf16 %v1692_v31, %v1152_v1  ;;  %v4822_v17 = vsel %vm2557_vm4, 1.0, %v11099_v30  ;;  %vm1359_vm11 = vcmp.eq.s32.totalorder %v11215_v51, %v9464_v42  ;;  %3533 = vmatprep.mubr.bf16.mxu1 %v2968_v10  ;;  %v1698_v26 = vpack.c.bf16 %v9547_v27, %v9479_v28  ;;  %v11471_v28 = vld [vmem:[#allocation96_spill] sm:$0xff]  ;;  %5272 = vmatpush3.bf16.msra.mxu1 %v5530_v41  ;;  %v11479_v10 = vld [vmem:[#allocation158_spill] sm:$0xff] }
 0x20c   :  { %v1158_v33 = vadd.bf16 %v11470_v48, %v11469_v18  ;;  %v2902_v43 = vpack.c.bf16 %v4822_v17, %v4817_v37  ;;  %v4703_v9 = vsel %vm1958_vm9, 1.0, %v11099_v30  ;;  %v4708_v12 = vsel %vm1963_vm13, 1.0, %v11099_v30  ;;  %v11472_v27 = vld [vmem:[#allocation104_spill] sm:$0xff]  ;;  %5216 = vmatmul.mubr.bf16.vlgmr.msra.gmra.mxu0 %v2944_v38  ;;  %5273 = vmatprep.subr.bf16.mxu1 %v11099_v30  ;;  %v11483_v17 = vld [vmem:[#allocation118_spill] sm:$0xff] }
 0x20d   :  { %v2362_v14 = vadd.bf16 %v2297_v16, %v1757_v53  ;;  %v2303_v44 = vpack.c.bf16 %v4708_v12, %v4703_v9  ;;  %v2908_v3 = vpack.c.bf16 %v9369_v23, %v9624_v40  ;;  %v529_v19 = vpack.c.bf16 %v11472_v27, %v11471_v28  ;;  %v5531_v23 = vld [vmem:[%s10766_s2 + $0x20] sm:$0xff]   ;;  %v11477_v46 = vld [vmem:[#allocation100_spill] sm:$0xff]  ;;  %5219 = vmatprep.mubr.msk.bf16.mxu0 %vm5604_vm6, %v11099_v30  ;;  %v11480_v16 = vld [vmem:[#allocation130_spill] sm:$0xff] }
 0x20e   :  { %vm1314_vm8 = vcmp.eq.s32.totalorder %v11215_v51, %v11473_v7  ;;  %v1763_v45 = vadd.bf16 %v1698_v26, %v1158_v33  ;;  %v1069_v62 = vpack.c.bf16 %v11475_v47, %v11474_v50  ;;  %v4529_v21 = vsel %vm1304_vm14, 1.0, %v11099_v30  ;;  %v11482_v37 = vld [vmem:[#allocation124_spill] sm:$0xff]  ;;  %v11485_v33 = vld [vmem:[#allocation190_spill] sm:$0xff]  ;;  %v5018_v26 = vpop.f32.mrf.mxu1  ;;  %v11487_v50 = vld [vmem:[#allocation21_spill] sm:$0xff] }
 0x20f   :  { %vm1914_vm9 = vcmp.eq.s32.totalorder %v11215_v51, %v11476_v13  ;;  %vm1919_vm13 = vcmp.eq.s32.totalorder %v11215_v51, %v7445_v63  ;;  %v2967_v40 = vadd.bf16 %v2902_v43, %v2362_v14  ;;  %v1674_v35 = vpack.c.bf16 %v11477_v46, %v4529_v21  ;;  %5274 = vmatpush3.bf16.msra.mxu1 %v5531_v23  ;;  %v11488_v47 = vld [vmem:[#allocation39_spill] sm:$0xff]  ;;  %v11490_v23 = vld [vmem:[#allocation20_spill] sm:$0xff] }
 0x210   :  { %v4654_v58 = vsel %vm1909_vm0, 1.0, %v11099_v30  ;;  %v4659_v1 = vsel %vm1914_vm9, 1.0, %v11099_v30  ;;  %vm1924_vm14 = vcmp.eq.s32.totalorder %v11215_v51, %v7407_v4  ;;  %v2368_v31 = vadd.bf16 %v2303_v44, %v1763_v45  ;;  %5275 = vmatprep.subr.bf16.mxu1 %v11099_v30  ;;  %v5019_v27 = vpop.f32.mrf.mxu1 }
 0x211   :  { %v1134_v38 = vadd.bf16 %v1069_v62, %v529_v19  ;;  %v2279_v54 = vpack.c.bf16 %v4659_v1, %v4654_v58  ;;  %vm2514_vm3 = vcmp.eq.s32.totalorder %v11215_v51, %v11478_v56  ;;  %vm2519_vm0 = vcmp.eq.s32.totalorder %v11215_v51, %v11369_v59  ;;  %3534 = vmatmul.mubr.bf16.gmra.mxu1 %v2967_v40  ;;  %v11491_v58 = vld [vmem:[#allocation16_spill] sm:$0xff]  ;;  %v11492_v1 = vld [vmem:[#allocation147_spill] sm:$0xff]  ;;  %v11494_v56 = vld [vmem:[#allocation97_spill] sm:$0xff] }
 0x212   :  { %v4779_v52 = vsel %vm2514_vm3, 1.0, %v11099_v30  ;;  %v11481_v53 = vpack.c.bf16 %v11479_v10, %v11480_v16  ;;  %v11484_v18 = vpack.c.bf16 %v11482_v37, %v11483_v17  ;;  %v1697_v43 = vpack.c.bf16 %v9521_v34, %v11485_v33  ;;  %v11497_v37 = vld [vmem:[#allocation111_spill] sm:$0xff]  ;;  %v11498_v33 = vld [vmem:[#allocation42_spill] sm:$0xff] }
 0x213   :  { %vm1362_vm10 = vcmp.eq.s32.totalorder %v5871_v49, %v11462_v5  ;;  %v2973_v9 = vadd.bf16 %v2908_v3, %v2368_v31  ;;  %v1739_v12 = vadd.bf16 %v1674_v35, %v1134_v38  ;;  %v4784_v59 = vsel %vm2519_vm0, 1.0, %v11099_v30  ;;  %v11486_v3 = vld [vmem:[#allocation128_spill] sm:$0xff] }
 0x214   :  { %v1157_v48 = vadd.bf16 %v11484_v18, %v11481_v53  ;;  %v4702_v41 = vsel %vm1957_vm2, 1.0, %v11099_v30  ;;  %vm1367_vm12 = vcmp.eq.s32.totalorder %v5871_v49, %v11467_v39  ;;  %vm1972_vm4 = vcmp.eq.s32.totalorder %v5871_v49, %v11468_v20  ;;  %v11496_v53 = vld [vmem:[#allocation61_spill] sm:$0xff] }
 0x215   :  { %v2884_v34 = vpack.c.bf16 %v4784_v59, %v4779_v52  ;;  %v4707_v44 = vsel %vm1962_vm5, 1.0, %v11099_v30  ;;  %v2907_v28 = vpack.c.bf16 %v11486_v3, %v9580_v11  ;;  %3541 = vmatprep.mubr.bf16.mxu1 %v2973_v9  ;;  %v2344_v19 = vadd.bf16 %v2279_v54, %v1739_v12  ;;  %v11495_v52 = vld [vmem:[#allocation106_spill] sm:$0xff]  ;;  %v11500_v9 = vld [vmem:[#allocation23_spill] sm:$0xff]  ;;  %v11501_v59 = vld [vmem:[#allocation45_spill] sm:$0xff] }
 0x216   :  { %v1762_v14 = vadd.bf16 %v1697_v43, %v1157_v48  ;;  %v2302_v45 = vpack.c.bf16 %v4707_v44, %v4702_v41  ;;  %v1098_v62 = vpack.c.bf16 %v11488_v47, %v11487_v50  ;;  %v4588_v21 = vsel %vm1363_vm1, 1.0, %v11099_v30  ;;  %v11499_v43 = vld [vmem:[#allocation47_spill] sm:$0xff]  ;;  %v11502_v41 = vld [vmem:[#allocation46_spill] sm:$0xff]  ;;  %v11505_v50 = vld [vmem:[#allocation169_spill] sm:$0xff] }
 0x217   :  { %v9757_v13 = vadd.f32 %v5019_v27, %v5018_v26  ;;  %v4593_v11 = vsel %vm1368_vm15, 1.0, %v11099_v30  ;;  %vm1968_vm2 = vcmp.eq.s32.totalorder %v11214_v0, %v11490_v23  ;;  %v4718_v40 = vsel %vm1973_vm7, 1.0, %v11099_v30 }
 0x218   :  { %v2949_v46 = vadd.bf16 %v2884_v34, %v2344_v19  ;;  %v2367_v35 = vadd.bf16 %v2302_v45, %v1762_v14  ;;  %v11493_v31 = vpack.c.bf16 %v11491_v58, %v11492_v1  ;;  %v1703_v54 = vpack.c.bf16 %v4593_v11, %v4588_v21  ;;  %v11504_v45 = vld [vmem:[#allocation164_spill] sm:$0xff]  ;;  %v11507_v21 = vld [vmem:[#allocation135_spill] sm:$0xff] }
 0x219   :  { %11489 = vst [vmem:[#allocation156_spill] sm:$0xff] %v9757_v13  ;;  %vm1373_vm5 = vcmp.eq.s32.totalorder %v11214_v0, %v11494_v56  ;;  %vm1378_vm1 = vcmp.eq.s32.totalorder %v11214_v0, %v11495_v52  ;;  %v9780_v10 = vsel %vm1359_vm11, 1.0, %v11099_v30  ;;  %v4713_v16 = vsel %vm1968_vm2, 1.0, %v11099_v30  ;;  %v11508_v1 = vld [vmem:[#allocation19_spill] sm:$0xff]  ;;  %v11615_v13 = vld [vmem:[#allocation18_spill] sm:$0xff] }
 0x21a   :  { %v1163_v38 = vadd.bf16 %v1098_v62, %v11493_v31  ;;  %vm2573_vm15 = vcmp.eq.s32.totalorder %v11214_v0, %v11496_v53  ;;  %vm2578_vm7 = vcmp.eq.s32.totalorder %v11214_v0, %v11497_v37  ;;  %5220 = vmatmul.mubr.bf16.gmra.mxu0 %v2949_v46  ;;  %v2972_v17 = vadd.bf16 %v2907_v28, %v2367_v35  ;;  %v11503_v28 = vld [vmem:[#allocation110_spill] sm:$0xff]  ;;  %v11506_v62 = vld [vmem:[#allocation67_spill] sm:$0xff] }
 0x21b   :  { %v2308_v48 = vpack.c.bf16 %v4718_v40, %v4713_v16  ;;  %v534_v26 = vpack.c.bf16 %v11499_v43, %v11498_v33  ;;  %vm1983_vm9 = vcmp.eq.s32.totalorder %v11214_v0, %v11500_v9  ;;  %v4838_v42 = vsel %vm2573_vm15, 1.0, %v11099_v30  ;;  %5223 = vmatprep.mubr.msk.bf16.mxu0 %vm5604_vm6, %v11099_v30  ;;  %v11509_v31 = vld [vmem:[#allocation38_spill] sm:$0xff] }
 0x21c   :  { %v1768_v18 = vadd.bf16 %v1703_v54, %v1163_v38  ;;  %v4843_v12 = vsel %vm2578_vm7, 1.0, %v11099_v30  ;;  %v1074_v34 = vpack.c.bf16 %v11502_v41, %v11501_v59  ;;  %v4539_v14 = vsel %vm1314_vm8, 1.0, %v11099_v30  ;;  %3542 = vmatmul.mubr.bf16.gmra.mxu1 %v2972_v17  ;;  %v11513_v41 = vld [vmem:[#allocation138_spill] sm:$0xff] }
 0x21d   :  { %v2913_v3 = vpack.c.bf16 %v4843_v12, %v4838_v42  ;;  %v1679_v27 = vpack.c.bf16 %v11503_v28, %v4539_v14  ;;  %v4664_v19 = vsel %vm1919_vm13, 1.0, %v11099_v30  ;;  %vm1929_vm11 = vcmp.eq.s32.totalorder %v11215_v51, %v11504_v45 }
 0x21e   :  { %v2373_v44 = vadd.bf16 %v2308_v48, %v1768_v18  ;;  %vm1934_vm3 = vcmp.eq.s32.totalorder %v11215_v51, %v11505_v50  ;;  %v1139_v47 = vadd.bf16 %v1074_v34, %v534_v26  ;;  %v4669_v7 = vsel %vm1924_vm14, 1.0, %v11099_v30  ;;  %v11510_v18 = vld [vmem:[#allocation15_spill] sm:$0xff]  ;;  %v11511_v48 = vld [vmem:[#allocation145_spill] sm:$0xff] }
 0x21f   :  { %vm2524_vm8 = vcmp.eq.s32.totalorder %v11215_v51, %v11506_v62  ;;  %vm2529_vm0 = vcmp.eq.s32.totalorder %v11215_v51, %v11507_v21  ;;  %v2284_v11 = vpack.c.bf16 %v4669_v7, %v4664_v19  ;;  %v1097_v38 = vpack.c.bf16 %v11509_v31, %v11508_v1  ;;  %v11514_v34 = vld [vmem:[#allocation141_spill] sm:$0xff]  ;;  %v11516_v19 = vld [vmem:[#allocation151_spill] sm:$0xff]  ;;  %v11519_v1 = vld [vmem:[#allocation86_spill] sm:$0xff] }
 0x220   :  { %v2978_v63 = vadd.bf16 %v2913_v3, %v2373_v44  ;;  %v4789_v40 = vsel %vm2524_vm8, 1.0, %v11099_v30  ;;  %v4794_v46 = vsel %vm2529_vm0, 1.0, %v11099_v30  ;;  %v1744_v35 = vadd.bf16 %v1679_v27, %v1139_v47  ;;  %v11515_v27 = vld [vmem:[#allocation35_spill] sm:$0xff]  ;;  %v11531_v50 = vld [vmem:[#allocation149_spill] sm:$0xff] }
 0x221   :  { %v2889_v58 = vpack.c.bf16 %v4794_v46, %v4789_v40  ;;  %v4587_v4 = vsel %vm1362_vm10, 1.0, %v11099_v30  ;;  %vm1372_vm13 = vcmp.eq.s32.totalorder %v5871_v49, %v11494_v56  ;;  %v4592_v54 = vsel %vm1367_vm12, 1.0, %v11099_v30 }
 0x222   :  { %3549 = vmatprep.mubr.bf16.mxu1 %v2978_v63  ;;  %vm1967_vm14 = vcmp.eq.s32.totalorder %v5871_v49, %v11490_v23  ;;  %v4717_v16 = vsel %vm1972_vm4, 1.0, %v11099_v30  ;;  %vm2572_vm10 = vcmp.eq.s32.totalorder %v5871_v49, %v11496_v53  ;;  %vm1377_vm2 = vcmp.eq.s32.totalorder %v5871_v49, %v11495_v52  ;;  %v11517_v63 = vld [vmem:[#allocation121_spill] sm:$0xff] }
 0x223   :  { %v2349_v17 = vadd.bf16 %v2284_v11, %v1744_v35  ;;  %v11512_v33 = vpack.c.bf16 %v11510_v18, %v11511_v48  ;;  %v1702_v26 = vpack.c.bf16 %v4592_v54, %v4587_v4  ;;  %v4712_v42 = vsel %vm1967_vm14, 1.0, %v11099_v30  ;;  %v11518_v11 = vld [vmem:[#allocation69_spill] sm:$0xff]  ;;  %v11522_v54 = vld [vmem:[#allocation70_spill] sm:$0xff]  ;;  %v11525_v18 = vld [vmem:[#allocation32_spill] sm:$0xff] }
 0x224   :  { %vm1982_vm12 = vcmp.eq.s32.totalorder %v5871_v49, %v11500_v9  ;;  %v2307_v12 = vpack.c.bf16 %v4717_v16, %v4712_v42  ;;  %vm2577_vm4 = vcmp.eq.s32.totalorder %v5871_v49, %v11497_v37  ;;  %v4837_v59 = vsel %vm2572_vm10, 1.0, %v11099_v30  ;;  %v11521_v4 = vld [vmem:[#allocation129_spill] sm:$0xff]  ;;  %v11526_v48 = vld [vmem:[#allocation55_spill] sm:$0xff] }
 0x225   :  { %v1162_v43 = vadd.bf16 %v1097_v38, %v11512_v33  ;;  %v563_v14 = vpack.c.bf16 %v11514_v34, %v11513_v41  ;;  %v2954_v44 = vadd.bf16 %v2889_v58, %v2349_v17  ;;  %v4842_v28 = vsel %vm2577_vm4, 1.0, %v11099_v30  ;;  %v11520_v38 = vld [vmem:[#allocation163_spill] sm:$0xff]  ;;  %v11523_v16 = vld [vmem:[#allocation33_spill] sm:$0xff] }
 0x226   :  { %v1103_v47 = vpack.c.bf16 %v11516_v19, %v11515_v27  ;;  %v2912_v7 = vpack.c.bf16 %v4842_v28, %v4837_v59  ;;  %v4598_v62 = vsel %vm1373_vm5, 1.0, %v11099_v30  ;;  %v4603_v21 = vsel %vm1378_vm1, 1.0, %v11099_v30  ;;  %v11528_v34 = vld [vmem:[#allocation175_spill] sm:$0xff]  ;;  %v5532_v27 = vld [vmem:[%s10766_s2 + $0x18] sm:$0xff]  }
 0x227   :  { %v1767_v3 = vadd.bf16 %v1702_v26, %v1162_v43  ;;  %vm1978_vm15 = vcmp.eq.s32.totalorder %v11214_v0, %v11517_v63  ;;  %vm1988_vm7 = vcmp.eq.s32.totalorder %v11214_v0, %v11518_v11  ;;  %5224 = vmatmul.mubr.bf16.gmra.mxu0 %v2954_v44  ;;  %v1708_v35 = vpack.c.bf16 %v4603_v21, %v4598_v62 }
 0x228   :  { %v1168_v46 = vadd.bf16 %v1103_v47, %v563_v14  ;;  %v4723_v58 = vsel %vm1978_vm15, 1.0, %v11099_v30  ;;  %vm1993_vm5 = vcmp.eq.s32.totalorder %v11214_v0, %v11519_v1  ;;  %v4728_v31 = vsel %vm1983_vm9, 1.0, %v11099_v30  ;;  %5227 = vmatprep.mubr.msk.bf16.mxu0 %vm5604_vm6, %v11099_v30  ;;  %v11529_v14 = vld [vmem:[#allocation122_spill] sm:$0xff]  ;;  %5276 = vmatpush3.bf16.msra.mxu1 %v5532_v27  ;;  %v11537_v27 = vld [vmem:[#allocation52_spill] sm:$0xff] }
 0x229   :  { %v2372_v40 = vadd.bf16 %v2307_v12, %v1767_v3  ;;  %vm2583_vm1 = vcmp.eq.s32.totalorder %v11214_v0, %v11520_v38  ;;  %vm2588_vm8 = vcmp.eq.s32.totalorder %v11214_v0, %v11521_v4  ;;  %v11524_v17 = vpack.c.bf16 %v11522_v54, %v11523_v16  ;;  %v11534_v54 = vld [vmem:[#allocation34_spill] sm:$0xff]  ;;  %5277 = vmatprep.subr.bf16.mxu1 %v11099_v30 }
 0x22a   :  { %v11527_v33 = vpack.c.bf16 %v11525_v18, %v11526_v48  ;;  %v1773_v42 = vadd.bf16 %v1708_v35, %v1168_v46  ;;  %v2313_v12 = vpack.c.bf16 %v4728_v31, %v4723_v58  ;;  %v4848_v59 = vsel %vm2583_vm1, 1.0, %v11099_v30  ;;  %v11533_v46 = vld [vmem:[#allocation140_spill] sm:$0xff]  ;;  %v11535_v16 = vld [vmem:[#allocation150_spill] sm:$0xff] }
 0x22b   :  { %v2977_v26 = vadd.bf16 %v2912_v7, %v2372_v40  ;;  %v4853_v41 = vsel %vm2588_vm8, 1.0, %v11099_v30  ;;  %v1684_v44 = vpack.c.bf16 %v11529_v14, %v11528_v34  ;;  %v4674_v3 = vsel %vm1929_vm11, 1.0, %v11099_v30  ;;  %v11530_v7 = vld [vmem:[#allocation173_spill] sm:$0xff] }
 0x22c   :  { %v1144_v43 = vadd.bf16 %v11527_v33, %v11524_v17  ;;  %v4679_v28 = vsel %vm1934_vm3, 1.0, %v11099_v30  ;;  %vm1939_vm9 = vcmp.eq.s32.totalorder %v11215_v51, %v11414_v57  ;;  %vm1944_vm0 = vcmp.eq.s32.totalorder %v11215_v51, %v11415_v61  ;;  %v11532_v40 = vld [vmem:[#allocation137_spill] sm:$0xff]  ;;  %v11554_v61 = vld [vmem:[#allocation83_spill] sm:$0xff] }
 0x22d   :  { %3550 = vmatmul.mubr.bf16.gmra.mxu1 %v2977_v26  ;;  %v2378_v19 = vadd.bf16 %v2313_v12, %v1773_v42  ;;  %v2918_v47 = vpack.c.bf16 %v4853_v41, %v4848_v59  ;;  %v2289_v45 = vpack.c.bf16 %v4679_v28, %v4674_v3  ;;  %vm2534_vm11 = vcmp.eq.s32.totalorder %v11215_v51, %v11530_v7  ;;  %v11536_v28 = vld [vmem:[#allocation161_spill] sm:$0xff] }
 0x22e   :  { %v1749_v62 = vadd.bf16 %v1684_v44, %v1144_v43  ;;  %vm2539_vm3 = vcmp.eq.s32.totalorder %v11215_v51, %v11531_v50  ;;  %v4799_v21 = vsel %vm2534_vm11, 1.0, %v11099_v30  ;;  %v562_v35 = vpack.c.bf16 %v11533_v46, %v11532_v40  ;;  %v11541_v50 = vld [vmem:[#allocation165_spill] sm:$0xff]  ;;  %v11542_v40 = vld [vmem:[#allocation116_spill] sm:$0xff] }
 0x22f   :  { %v2983_v58 = vadd.bf16 %v2918_v47, %v2378_v19  ;;  %v4804_v31 = vsel %vm2539_vm3, 1.0, %v11099_v30  ;;  %v1102_v17 = vpack.c.bf16 %v11535_v16, %v11534_v54  ;;  %v4597_v18 = vsel %vm1372_vm13, 1.0, %v11099_v30  ;;  %v11538_v47 = vld [vmem:[#allocation174_spill] sm:$0xff]  ;;  %v11543_v46 = vld [vmem:[#allocation172_spill] sm:$0xff]  ;;  %v5533_v57 = vld [vmem:[%s10766_s2 + $0x10] sm:$0xff]  }
 0x230   :  { %vm1987_vm14 = vcmp.eq.s32.totalorder %v5871_v49, %v11518_v11  ;;  %v2354_v48 = vadd.bf16 %v2289_v45, %v1749_v62  ;;  %v2894_v33 = vpack.c.bf16 %v4804_v31, %v4799_v21  ;;  %v4602_v43 = vsel %vm1377_vm2, 1.0, %v11099_v30  ;;  %v11539_v45 = vld [vmem:[#allocation170_spill] sm:$0xff]  ;;  %v11540_v62 = vld [vmem:[#allocation49_spill] sm:$0xff]  ;;  %5278 = vmatpush3.bf16.msra.mxu1 %v5533_v57 }
 0x231   :  { %vm1977_vm10 = vcmp.eq.s32.totalorder %v5871_v49, %v11517_v63  ;;  %vm1992_vm4 = vcmp.eq.s32.totalorder %v5871_v49, %v11519_v1  ;;  %3557 = vmatprep.mubr.bf16.mxu1 %v2983_v58  ;;  %v1167_v26 = vadd.bf16 %v1102_v17, %v562_v35  ;;  %v1707_v42 = vpack.c.bf16 %v4602_v43, %v4597_v18  ;;  %v11544_v16 = vld [vmem:[#allocation146_spill] sm:$0xff]  ;;  %v11545_v17 = vld [vmem:[#allocation144_spill] sm:$0xff] }
 0x232   :  { %v4722_v12 = vsel %vm1977_vm10, 1.0, %v11099_v30  ;;  %v4727_v59 = vsel %vm1982_vm12, 1.0, %v11099_v30  ;;  %v2959_v41 = vadd.bf16 %v2894_v33, %v2354_v48  ;;  %vm2582_vm13 = vcmp.eq.s32.totalorder %v5871_v49, %v11520_v38  ;;  %5279 = vmatprep.subr.bf16.mxu1 %v11099_v30 }
 0x233   :  { %v2312_v34 = vpack.c.bf16 %v4727_v59, %v4722_v12  ;;  %vm2587_vm2 = vcmp.eq.s32.totalorder %v5871_v49, %v11521_v4  ;;  %v1772_v14 = vadd.bf16 %v1707_v42, %v1167_v26  ;;  %v4847_v44 = vsel %vm2582_vm13, 1.0, %v11099_v30  ;;  %v11546_v12 = vld [vmem:[#allocation182_spill] sm:$0xff]  ;;  %v11547_v59 = vld [vmem:[#allocation180_spill] sm:$0xff] }
 0x234   :  { %v4852_v3 = vsel %vm2587_vm2, 1.0, %v11099_v30  ;;  %v568_v19 = vpack.c.bf16 %v11537_v27, %v11536_v28  ;;  %vm2003_vm15 = vcmp.eq.s32.totalorder %v11214_v0, %v11538_v47  ;;  %vm1998_vm12 = vcmp.eq.s32.totalorder %v11214_v0, %v11539_v45  ;;  %5228 = vmatmul.mubr.bf16.gmra.mxu0 %v2959_v41  ;;  %v11552_v28 = vld [vmem:[#allocation29_spill] sm:$0xff]  ;;  %v11553_v27 = vld [vmem:[#allocation127_spill] sm:$0xff] }
 0x235   :  { %v2917_v7 = vpack.c.bf16 %v4852_v3, %v4847_v44  ;;  %v1108_v21 = vpack.c.bf16 %v11541_v50, %v11540_v62  ;;  %v1713_v35 = vpack.c.bf16 %v11543_v46, %v11542_v40  ;;  %v4733_v58 = vsel %vm1988_vm7, 1.0, %v11099_v30  ;;  %5231 = vmatprep.mubr.msk.bf16.mxu0 %vm5604_vm6, %v11099_v30 }
 0x236   :  { %v2377_v31 = vadd.bf16 %v2312_v34, %v1772_v14  ;;  %v4738_v54 = vsel %vm1993_vm5, 1.0, %v11099_v30  ;;  %vm2593_vm1 = vcmp.eq.s32.totalorder %v11214_v0, %v11544_v16  ;;  %vm2598_vm8 = vcmp.eq.s32.totalorder %v11214_v0, %v11545_v17  ;;  %v11549_v34 = vld [vmem:[#allocation183_spill] sm:$0xff]  ;;  %v11550_v14 = vld [vmem:[#allocation66_spill] sm:$0xff] }
 0x237   :  { %v1173_v18 = vadd.bf16 %v1108_v21, %v568_v19  ;;  %v2318_v48 = vpack.c.bf16 %v4738_v54, %v4733_v58  ;;  %v4858_v33 = vsel %vm2593_vm1, 1.0, %v11099_v30  ;;  %v4863_v43 = vsel %vm2598_vm8, 1.0, %v11099_v30 }
 0x238   :  { %vm1949_vm7 = vcmp.eq.s32.totalorder %v11215_v51, %v9057_v2  ;;  %v2982_v26 = vadd.bf16 %v2917_v7, %v2377_v31  ;;  %v2923_v42 = vpack.c.bf16 %v4863_v43, %v4858_v33  ;;  %v11548_v41 = vpack.c.bf16 %v11546_v12, %v11547_v59  ;;  %v11555_v31 = vld [vmem:[#allocation155_spill] sm:$0xff] }
 0x239   :  { %v11551_v44 = vpack.c.bf16 %v11549_v34, %v11550_v14  ;;  %v1689_v19 = vpack.c.bf16 %v11553_v27, %v11552_v28  ;;  %vm1954_vm5 = vcmp.eq.s32.totalorder %v11215_v51, %v9184_v55  ;;  %v1778_v62 = vadd.bf16 %v1713_v35, %v1173_v18  ;;  %v11556_v18 = vld [vmem:[#allocation48_spill] sm:$0xff]  ;;  %v11559_v12 = vld [vmem:[#allocation171_spill] sm:$0xff] }
 0x23a   :  { %v4684_v7 = vsel %vm1939_vm9, 1.0, %v11099_v30  ;;  %v4689_v50 = vsel %vm1944_vm0, 1.0, %v11099_v30  ;;  %vm2544_vm11 = vcmp.eq.s32.totalorder %v11215_v51, %v8786_v6  ;;  %3558 = vmatmul.mubr.bf16.gmra.mxu1 %v2982_v26  ;;  %vm2549_vm3 = vcmp.eq.s32.totalorder %v11215_v51, %v11441_v24  ;;  %v11557_v6 = vld [vmem:[#allocation51_spill] sm:$0xff] }
 0x23b   :  { %v1149_v3 = vadd.bf16 %v11551_v44, %v11548_v41  ;;  %v2294_v40 = vpack.c.bf16 %v4689_v50, %v4684_v7  ;;  %v4809_v46 = vsel %vm2544_vm11, 1.0, %v11099_v30  ;;  %v2383_v35 = vadd.bf16 %v2318_v48, %v1778_v62  ;;  %v11558_v26 = vld [vmem:[#allocation167_spill] sm:$0xff]  ;;  %v10018_v44 = vpop.f32.mrf.mxu0 }
 0x23c   :  { %v4814_v58 = vsel %vm2549_vm3, 1.0, %v11099_v30  ;;  %v567_v54 = vpack.c.bf16 %v11555_v31, %v11554_v61  ;;  %v1107_v33 = vpack.c.bf16 %v11557_v6, %v11556_v18  ;;  %vm2002_vm9 = vcmp.eq.s32.totalorder %v5871_v49, %v11538_v47  ;;  %v11560_v27 = vld [vmem:[#allocation103_spill] sm:$0xff]  ;;  %v11568_v61 = vld [vmem:[#allocation88_spill] sm:$0xff] }
 0x23d   :  { %v1754_v21 = vadd.bf16 %v1689_v19, %v1149_v3  ;;  %vm1997_vm0 = vcmp.eq.s32.totalorder %v5871_v49, %v11539_v45  ;;  %v2899_v43 = vpack.c.bf16 %v4814_v58, %v4809_v46  ;;  %v1712_v59 = vpack.c.bf16 %v11559_v12, %v11558_v26  ;;  %v11561_v7 = vld [vmem:[#allocation11_spill] sm:$0xff]  ;;  %v11567_v58 = vld [vmem:[#allocation26_spill] sm:$0xff] }
 0x23e   :  { %v4732_v48 = vsel %vm1987_vm14, 1.0, %v11099_v30  ;;  %v2988_v41 = vadd.bf16 %v2923_v42, %v2383_v35  ;;  %v1172_v34 = vadd.bf16 %v1107_v33, %v567_v54  ;;  %v4737_v14 = vsel %vm1992_vm4, 1.0, %v11099_v30  ;;  %v11562_v50 = vld [vmem:[#allocation107_spill] sm:$0xff]  ;;  %v11569_v54 = vld [vmem:[#allocation194_spill] sm:$0xff] }
 0x23f   :  { %v2359_v24 = vadd.bf16 %v2294_v40, %v1754_v21  ;;  %vm2592_vm10 = vcmp.eq.s32.totalorder %v5871_v49, %v11544_v16  ;;  %v2317_v28 = vpack.c.bf16 %v4737_v14, %v4732_v48  ;;  %vm2597_vm14 = vcmp.eq.s32.totalorder %v5871_v49, %v11545_v17  ;;  %v11564_v40 = vld [vmem:[#allocation143_spill] sm:$0xff]  ;;  %v10052_v48 = vpop.f32.mrf.mxu0 }
 0x240   :  { %v4857_v42 = vsel %vm2592_vm10, 1.0, %v11099_v30  ;;  %vm2008_vm13 = vcmp.eq.s32.totalorder %v11214_v0, %v11560_v27  ;;  %3565 = vmatprep.mubr.bf16.mxu1 %v2988_v41  ;;  %v1777_v19 = vadd.bf16 %v1712_v59, %v1172_v34  ;;  %v4862_v62 = vsel %vm2597_vm14, 1.0, %v11099_v30  ;;  %v11565_v46 = vld [vmem:[#allocation59_spill] sm:$0xff]  ;;  %v11571_v59 = vld [vmem:[#allocation154_spill] sm:$0xff] }
 0x241   :  { %v2964_v3 = vadd.bf16 %v2899_v43, %v2359_v24  ;;  %v11563_v21 = vpack.c.bf16 %v11561_v7, %v11562_v50  ;;  %v11566_v57 = vpack.c.bf16 %v11564_v40, %v11565_v46  ;;  %v1718_v31 = vpack.c.bf16 %v11568_v61, %v11567_v58  ;;  %v11570_v24 = vld [vmem:[#allocation184_spill] sm:$0xff]  ;;  %v11572_v14 = vld [vmem:[#allocation71_spill] sm:$0xff]  ;;  %v11578_v50 = vld [vmem:[#allocation133_spill] sm:$0xff] }
 0x242   :  { %vm2013_vm4 = vcmp.eq.s32.totalorder %v11214_v0, %v11569_v54  ;;  %v2922_v18 = vpack.c.bf16 %v4862_v62, %v4857_v42  ;;  %v4743_v6 = vsel %vm1998_vm12, 1.0, %v11099_v30  ;;  %v4748_v33 = vsel %vm2003_vm15, 1.0, %v11099_v30  ;;  %v11575_v42 = vld [vmem:[#allocation72_spill] sm:$0xff] }
 0x243   :  { %v1178_v35 = vadd.bf16 %v11566_v57, %v11563_v21  ;;  %5232 = vmatmul.mubr.bf16.gmra.mxu0 %v2964_v3  ;;  %vm2603_vm2 = vcmp.eq.s32.totalorder %v11214_v0, %v11570_v24  ;;  %v2382_v43 = vadd.bf16 %v2317_v28, %v1777_v19  ;;  %v2323_v12 = vpack.c.bf16 %v4748_v33, %v4743_v6  ;;  %v11573_v3 = vld [vmem:[#allocation27_spill] sm:$0xff]  ;;  %v11576_v19 = vld [vmem:[#allocation82_spill] sm:$0xff]  ;;  %v11579_v21 = vld [vmem:[#allocation108_spill] sm:$0xff] }
 0x244   :  { %vm2608_vm1 = vcmp.eq.s32.totalorder %v11214_v0, %v11571_v59  ;;  %5235 = vmatprep.mubr.msk.bf16.mxu0 %vm5604_vm6, %v11099_v30  ;;  %vm1959_vm12 = vcmp.eq.s32.totalorder %v11215_v51, %v9250_v22  ;;  %vm1964_vm15 = vcmp.eq.s32.totalorder %v11215_v51, %v9502_v25  ;;  %v4868_v41 = vsel %vm2603_vm2, 1.0, %v11099_v30  ;;  %v11612_v25 = vld [vmem:[#allocation73_spill] sm:$0xff] }
 0x245   :  { %v1783_v26 = vadd.bf16 %v1718_v31, %v1178_v35  ;;  %v4873_v34 = vsel %vm2608_vm1, 1.0, %v11099_v30  ;;  %v11574_v28 = vpack.c.bf16 %v11572_v14, %v11573_v3  ;;  %v11577_v62 = vpack.c.bf16 %v11575_v42, %v11576_v19  ;;  %v11586_v3 = vld [vmem:[#allocation176_spill] sm:$0xff] }
 0x246   :  { %v1694_v40 = vpack.c.bf16 %v11579_v21, %v11578_v50  ;;  %v2987_v46 = vadd.bf16 %v2922_v18, %v2382_v43  ;;  %v2928_v35 = vpack.c.bf16 %v4873_v34, %v4868_v41  ;;  %v4694_v58 = vsel %vm1949_vm7, 1.0, %v11099_v30  ;;  %v10084_v43 = vpop.f32.mrf.mxu0  ;;  %v11584_v41 = vld [vmem:[#allocation58_spill] sm:$0xff]  ;;  %v5534_v19 = vld [vmem:[%s10766_s2 + $0x8] sm:$0xff]  }
 0x247   :  { %v1154_v7 = vadd.bf16 %v11577_v62, %v11574_v28  ;;  %v2388_v57 = vadd.bf16 %v2323_v12, %v1783_v26  ;;  %vm2007_vm8 = vcmp.eq.s32.totalorder %v5871_v49, %v11560_v27  ;;  %v4699_v31 = vsel %vm1954_vm5, 1.0, %v11099_v30  ;;  %v11581_v26 = vld [vmem:[#allocation41_spill] sm:$0xff]  ;;  %5280 = vmatpush3.bf16.msra.mxu1 %v5534_v19  ;;  %v11599_v19 = vld [vmem:[#allocation8_spill] sm:$0xff] }
 0x248   :  { %vm2554_vm11 = vcmp.eq.s32.totalorder %v11215_v51, %v11457_v29  ;;  %vm2559_vm3 = vcmp.eq.s32.totalorder %v11215_v51, %v9240_v36  ;;  %vm2012_vm10 = vcmp.eq.s32.totalorder %v5871_v49, %v11569_v54  ;;  %3566 = vmatmul.mubr.bf16.gmra.mxu1 %v2987_v46  ;;  %v2299_v18 = vpack.c.bf16 %v4699_v31, %v4694_v58  ;;  %v11580_v29 = vld [vmem:[#allocation105_spill] sm:$0xff]  ;;  %v11589_v31 = vld [vmem:[#allocation188_spill] sm:$0xff] }
 0x249   :  { %v1759_v61 = vadd.bf16 %v1694_v40, %v1154_v7  ;;  %v2993_v2 = vadd.bf16 %v2928_v35, %v2388_v57  ;;  %v4819_v6 = vsel %vm2554_vm11, 1.0, %v11099_v30  ;;  %v4824_v33 = vsel %vm2559_vm3, 1.0, %v11099_v30  ;;  %v11583_v36 = vld [vmem:[#allocation25_spill] sm:$0xff]  ;;  %5281 = vmatprep.subr.bf16.mxu1 %v11099_v30 }
 0x24a   :  { %vm2564_vm7 = vcmp.eq.s32.totalorder %v11215_v51, %v9553_v8  ;;  %v2904_v55 = vpack.c.bf16 %v4824_v33, %v4819_v6  ;;  %v11582_v12 = vpack.c.bf16 %v11580_v29, %v11581_v26  ;;  %v11585_v34 = vpack.c.bf16 %v11583_v36, %v11584_v41  ;;  %v11587_v28 = vld [vmem:[#allocation89_spill] sm:$0xff]  ;;  %v11592_v6 = vld [vmem:[#allocation192_spill] sm:$0xff]  ;;  %v11593_v33 = vld [vmem:[#allocation74_spill] sm:$0xff]  ;;  %v10132_v36 = vpop.f32.mrf.mxu1 }
 0x24b   :  { %v1717_v42 = vpack.c.bf16 %v11587_v28, %v11586_v3  ;;  %v11588_v62 = vld [vmem:[#allocation81_spill] sm:$0xff]  ;;  %3573 = vmatprep.mubr.bf16.mxu1 %v2993_v2  ;;  %v2364_v7 = vadd.bf16 %v2299_v18, %v1759_v61  ;;  %v4742_v50 = vsel %vm1997_vm0, 1.0, %v11099_v30  ;;  %v4747_v21 = vsel %vm2002_vm9, 1.0, %v11099_v30  ;;  %v11590_v2 = vld [vmem:[#allocation186_spill] sm:$0xff]  ;;  %11595 = vst [vmem:[#allocation157_spill] sm:$0xff] %v10132_v36 }
 0x24c   :  { %v1177_v14 = vadd.bf16 %v11585_v34, %v11582_v12  ;;  %vm2018_vm5 = vcmp.eq.s32.totalorder %v11214_v0, %v11588_v62  ;;  %vm2602_vm14 = vcmp.eq.s32.totalorder %v5871_v49, %v11570_v24  ;;  %v2322_v46 = vpack.c.bf16 %v4747_v21, %v4742_v50  ;;  %v10130_v12 = vpop.f32.mrf.mxu0  ;;  %v11596_v41 = vld [vmem:[#allocation94_spill] sm:$0xff]  ;;  %v11597_v34 = vld [vmem:[#allocation101_spill] sm:$0xff] }
 0x24d   :  { %vm2607_vm2 = vcmp.eq.s32.totalorder %v5871_v49, %v11571_v59  ;;  %v4867_v57 = vsel %vm2602_vm14, 1.0, %v11099_v30  ;;  %vm1364_vm1 = vcmp.eq.s32.totalorder %v11215_v51, %v11462_v5  ;;  %v4829_v35 = vsel %vm2564_vm7, 1.0, %v11099_v30  ;;  %v11601_v50 = vld [vmem:[#allocation78_spill] sm:$0xff] }
 0x24e   :  { %v1782_v40 = vadd.bf16 %v1717_v42, %v1177_v14  ;;  %v2969_v58 = vadd.bf16 %v2904_v55, %v2364_v7  ;;  %v4872_v61 = vsel %vm2607_vm2, 1.0, %v11099_v30  ;;  %v11591_v18 = vpack.c.bf16 %v11589_v31, %v11590_v2  ;;  %v11598_v42 = vld [vmem:[#allocation28_spill] sm:$0xff] }
 0x24f   :  { %v11594_v29 = vpack.c.bf16 %v11592_v6, %v11593_v33  ;;  %vm1369_vm9 = vcmp.eq.s32.totalorder %v11215_v51, %v11467_v39  ;;  %v2927_v55 = vpack.c.bf16 %v4872_v61, %v4867_v57  ;;  %v1723_v14 = vpack.c.bf16 %v11597_v34, %v11596_v41  ;;  %v11600_v7 = vld [vmem:[#allocation136_spill] sm:$0xff]  ;;  %v11606_v33 = vld [vmem:[#allocation63_spill] sm:$0xff]  ;;  %v11625_v39 = vld [vmem:[#allocation17_spill] sm:$0xff] }
 0x250   :  { %v2387_v8 = vadd.bf16 %v2322_v46, %v1782_v40  ;;  %v4753_v3 = vsel %vm2008_vm13, 1.0, %v11099_v30  ;;  %5236 = vmatmul.mubr.bf16.gmra.mxu0 %v2969_v58  ;;  %v4758_v28 = vsel %vm2013_vm4, 1.0, %v11099_v30  ;;  %vm2613_vm0 = vcmp.eq.s32.totalorder %v11214_v0, %v11598_v42  ;;  %v11603_v40 = vld [vmem:[#allocation53_spill] sm:$0xff]  ;;  %v11604_v46 = vld [vmem:[#allocation87_spill] sm:$0xff] }
 0x251   :  { %v1183_v26 = vadd.bf16 %v11594_v29, %v11591_v18  ;;  %vm2618_vm11 = vcmp.eq.s32.totalorder %v11214_v0, %v11599_v19  ;;  %v11602_v21 = vpack.c.bf16 %v11600_v7, %v11601_v50  ;;  %v11605_v57 = vpack.c.bf16 %v11603_v40, %v11604_v46  ;;  %5239 = vmatprep.mubr.msk.bf16.mxu0 %vm5604_vm6, %v11099_v30  ;;  %v11608_v7 = vld [vmem:[#allocation185_spill] sm:$0xff]  ;;  %v11609_v50 = vld [vmem:[#allocation91_spill] sm:$0xff] }
 0x252   :  { %vm1974_vm13 = vcmp.eq.s32.totalorder %v11215_v51, %v11468_v20  ;;  %v2992_v58 = vadd.bf16 %v2927_v55, %v2387_v8  ;;  %v2328_v2 = vpack.c.bf16 %v4758_v28, %v4753_v3  ;;  %v4878_v18 = vsel %vm2613_vm0, 1.0, %v11099_v30  ;;  %v10172_v8 = vpop.f32.mrf.mxu0  ;;  %v10174_v55 = vpop.f32.mrf.mxu1  ;;  %v11607_v3 = vld [vmem:[#allocation68_spill] sm:$0xff]  ;;  %v11611_v40 = vld [vmem:[#allocation191_spill] sm:$0xff] }
 0x253   :  { %v1159_v61 = vadd.bf16 %v11605_v57, %v11602_v21  ;;  %v1788_v31 = vadd.bf16 %v1723_v14, %v1183_v26  ;;  %v4883_v6 = vsel %vm2618_vm11, 1.0, %v11099_v30  ;;  %v1699_v29 = vpack.c.bf16 %v9780_v10, %v11606_v33  ;;  %v11614_v33 = vld [vmem:[#allocation113_spill] sm:$0xff] }
 0x254   :  { %v4704_v41 = vsel %vm1959_vm12, 1.0, %v11099_v30  ;;  %v4709_v26 = vsel %vm1964_vm15, 1.0, %v11099_v30  ;;  %vm2017_vm4 = vcmp.eq.s32.totalorder %v5871_v49, %v11588_v62  ;;  %3574 = vmatmul.mubr.bf16.gmra.mxu1 %v2992_v58  ;;  %v2933_v10 = vpack.c.bf16 %v4883_v6, %v4878_v18 }
 0x255   :  { %v2393_v34 = vadd.bf16 %v2328_v2, %v1788_v31  ;;  %v2304_v14 = vpack.c.bf16 %v4709_v26, %v4704_v41  ;;  %v2909_v28 = vpack.c.bf16 %v11607_v3, %v4829_v35  ;;  %v1764_v22 = vadd.bf16 %v1699_v29, %v1159_v61  ;;  %v5024_v61 = vpop.f32.mrf.mxu1  ;;  %v10204_v29 = vpop.f32.mrf.mxu0  ;;  %v11616_v26 = vld [vmem:[#allocation119_spill] sm:$0xff] }
 0x256   :  { %v11610_v21 = vpack.c.bf16 %v11608_v7, %v11609_v50  ;;  %v11613_v46 = vpack.c.bf16 %v11611_v40, %v11612_v25  ;;  %v1722_v36 = vpack.c.bf16 %v11615_v13, %v11614_v33  ;;  %v4752_v58 = vsel %vm2007_vm8, 1.0, %v11099_v30  ;;  %v11621_v25 = vld [vmem:[#allocation79_spill] sm:$0xff] }
 0x257   :  { %v2998_v31 = vadd.bf16 %v2933_v10, %v2393_v34  ;;  %v4757_v35 = vsel %vm2012_vm10, 1.0, %v11099_v30  ;;  %vm2612_vm12 = vcmp.eq.s32.totalorder %v5871_v49, %v11598_v42  ;;  %vm2617_vm15 = vcmp.eq.s32.totalorder %v5871_v49, %v11599_v19  ;;  %v11618_v10 = vld [vmem:[#allocation80_spill] sm:$0xff]  ;;  %v10242_v5 = vpop.f32.mrf.mxu0 }
 0x258   :  { %v1182_v57 = vadd.bf16 %v11613_v46, %v11610_v21  ;;  %vm1374_vm3 = vcmp.eq.s32.totalorder %v11215_v51, %v11494_v56  ;;  %vm1379_vm7 = vcmp.eq.s32.totalorder %v11215_v51, %v11495_v52  ;;  %v2369_v13 = vadd.bf16 %v2304_v14, %v1764_v22  ;;  %v11620_v14 = vld [vmem:[#allocation76_spill] sm:$0xff] }
 0x259   :  { %v2327_v18 = vpack.c.bf16 %v4757_v35, %v4752_v58  ;;  %v4877_v6 = vsel %vm2612_vm12, 1.0, %v11099_v30  ;;  %vm1984_vm8 = vcmp.eq.s32.totalorder %v11215_v51, %v11500_v9  ;;  %3581 = vmatprep.mubr.bf16.mxu1 %v2998_v31  ;;  %v4882_v41 = vsel %vm2617_vm15, 1.0, %v11099_v30  ;;  %v11623_v58 = vld [vmem:[#allocation22_spill] sm:$0xff]  ;;  %v11624_v31 = vld [vmem:[#allocation40_spill] sm:$0xff] }
 0x25a   :  { %v1787_v2 = vadd.bf16 %v1722_v36, %v1182_v57  ;;  %v11617_v34 = vpack.c.bf16 %v11616_v26, %v11616_v26  ;;  %v11619_v3 = vpack.c.bf16 %v11618_v10, %v11618_v10  ;;  %v4763_v36 = vsel %vm2018_vm5, 1.0, %v11099_v30 }
 0x25b   :  { %vm2623_vm10 = vcmp.eq.s32.totalorder %v11214_v0, %v11620_v14  ;;  %v2974_v22 = vadd.bf16 %v2909_v28, %v2369_v13  ;;  %v2932_v21 = vpack.c.bf16 %v4882_v41, %v4877_v6  ;;  %v2333_v40 = vpack.c.bf16 %v4763_v36, %v4763_v36  ;;  %v11626_v6 = vld [vmem:[#allocation153_spill] sm:$0xff] }
 0x25c   :  { %v1188_v7 = vadd.bf16 %v11619_v3, %v11617_v34  ;;  %v2392_v50 = vadd.bf16 %v2327_v18, %v1787_v2  ;;  %v11622_v46 = vpack.c.bf16 %v11621_v25, %v11621_v25  ;;  %v4888_v33 = vsel %vm2623_vm10, 1.0, %v11099_v30  ;;  %v5025_v34 = vpop.f32.mrf.mxu1  ;;  %v5535_v2 = vld [vmem:[%s10766_s2] sm:$0xff]  }
 0x25d   :  { %v1099_v35 = vpack.c.bf16 %v11624_v31, %v11623_v58  ;;  %v4589_v26 = vsel %vm1364_vm1, 1.0, %v11099_v30  ;;  %5240 = vmatmul.mubr.bf16.gmra.mxu0 %v2974_v22  ;;  %v2938_v28 = vpack.c.bf16 %v4888_v33, %v4888_v33  ;;  %v4594_v13 = vsel %vm1369_vm9, 1.0, %v11099_v30  ;;  %v11628_v22 = vld [vmem:[#allocation112_spill] sm:$0xff]  ;;  %5282 = vmatpush3.bf16.msra.mxu1 %v5535_v2  ;;  %v10282_v31 = vpop.f32.mrf.mxu0 }
 0x25e   :  { %v1793_v57 = vadd.bf16 %v11622_v46, %v1188_v7  ;;  %v2997_v0 = vadd.bf16 %v2932_v21, %v2392_v50  ;;  %vm1969_vm5 = vcmp.eq.s32.totalorder %v11215_v51, %v11490_v23  ;;  %vm1994_vm14 = vcmp.eq.s32.totalorder %v11215_v51, %v11519_v1  ;;  %5243 = vmatprep.mubr.msk.bf16.mxu0 %vm5604_vm6, %v11099_v30  ;;  %v11629_v50 = vld [vmem:[#allocation93_spill] sm:$0xff]  ;;  %v11632_v46 = vld [vmem:[#allocation43_spill] sm:$0xff] }
 0x25f   :  { %vm1989_vm2 = vcmp.eq.s32.totalorder %v11215_v51, %v11518_v11  ;;  %v11627_v41 = vpack.c.bf16 %v11625_v39, %v11626_v6  ;;  %v1704_v10 = vpack.c.bf16 %v4594_v13, %v4589_v26  ;;  %v4714_v3 = vsel %vm1969_vm5, 1.0, %v11099_v30  ;;  %v11635_v13 = vld [vmem:[#allocation120_spill] sm:$0xff]  ;;  %v11638_v6 = vld [vmem:[#allocation142_spill] sm:$0xff] }
 0x260   :  { %v2398_v18 = vadd.bf16 %v2333_v40, %v1793_v57  ;;  %3582 = vmatmul.mubr.bf16.gmra.mxu1 %v2997_v0  ;;  %v4719_v7 = vsel %vm1974_vm13, 1.0, %v11099_v30  ;;  %vm2574_vm1 = vcmp.eq.s32.totalorder %v11215_v51, %v11496_v53  ;;  %vm2579_vm9 = vcmp.eq.s32.totalorder %v11215_v51, %v11497_v37  ;;  %v11630_v37 = vld [vmem:[#allocation44_spill] sm:$0xff] }
 0x261   :  { %v1164_v23 = vadd.bf16 %v1099_v35, %v11627_v41  ;;  %v10258_v36 = vadd.f32 %v5025_v34, %v5024_v61  ;;  %vm269_vm0 = vcmp.eq.s32.totalorder %v11215_v51, %v11628_v22  ;;  %vm809_vm11 = vcmp.eq.s32.totalorder %v11215_v51, %v11629_v50 }
 0x262   :  { %v3003_v21 = vadd.bf16 %v2938_v28, %v2398_v18  ;;  %v2309_v25 = vpack.c.bf16 %v4719_v7, %v4714_v3  ;;  %v4839_v20 = vsel %vm2574_vm1, 1.0, %v11099_v30  ;;  %vm1999_vm13 = vcmp.eq.s32.totalorder %v11215_v51, %v11539_v45  ;;  %v11634_v28 = vld [vmem:[#allocation109_spill] sm:$0xff]  ;;  %v11639_v3 = vld [vmem:[#allocation36_spill] sm:$0xff] }
 0x263   :  { %v1769_v40 = vadd.bf16 %v1704_v10, %v1164_v23  ;;  %v4844_v53 = vsel %vm2579_vm9, 1.0, %v11099_v30  ;;  %v11631_v61 = vpack.c.bf16 %v11630_v37, %v11630_v37  ;;  %v11633_v57 = vpack.c.bf16 %v11632_v46, %v11632_v46  ;;  %v10294_v23 = vpop.f32.mrf.mxu0  ;;  %v11640_v7 = vld [vmem:[#allocation152_spill] sm:$0xff]  ;;  %v11655_v45 = vld [vmem:[#allocation189_spill] sm:$0xff] }
 0x264   :  { %v4762_v58 = vsel %vm2017_vm4, 1.0, %v11099_v30  ;;  %vm2622_vm12 = vcmp.eq.s32.totalorder %v5871_v49, %v11620_v14  ;;  %vm2004_vm15 = vcmp.eq.s32.totalorder %v11215_v51, %v11538_v47  ;;  %3589 = vmatprep.mubr.bf16.mxu1 %v3003_v21  ;;  %v2914_v26 = vpack.c.bf16 %v4844_v53, %v4839_v20  ;;  %v11637_v49 = vld [vmem:[#allocation139_spill] sm:$0xff]  ;;  %v11661_v47 = vld [vmem:[#allocation102_spill] sm:$0xff] }
 0x265   :  { %v1187_v33 = vadd.bf16 %v11633_v57, %v11631_v61  ;;  %v2374_v35 = vadd.bf16 %v2309_v25, %v1769_v40  ;;  %v2332_v34 = vpack.c.bf16 %v4762_v58, %v4762_v58  ;;  %v4887_v0 = vsel %vm2622_vm12, 1.0, %v11099_v30  ;;  %v10323_v57 = vpop.f32.mrf.mxu0 }
 0x266   :  { %vm1414_vm10 = vcmp.eq.s32.totalorder %v11215_v51, %v11634_v28  ;;  %v11636_v2 = vpack.c.bf16 %v11635_v13, %v11635_v13  ;;  %v2937_v39 = vpack.c.bf16 %v4887_v0, %v4887_v0  ;;  %v564_v41 = vpack.c.bf16 %v11638_v6, %v11637_v49  ;;  %v11644_v0 = vld [vmem:[#allocation166_spill] sm:$0xff] }
 0x267   :  { %vm2009_vm4 = vcmp.eq.s32.totalorder %v11215_v51, %v11560_v27  ;;  %v2979_v10 = vadd.bf16 %v2914_v26, %v2374_v35  ;;  %v1104_v21 = vpack.c.bf16 %v11640_v7, %v11639_v3  ;;  %v4599_v40 = vsel %vm1374_vm3, 1.0, %v11099_v30  ;;  %v11641_v35 = vld [vmem:[#allocation148_spill] sm:$0xff]  ;;  %v11642_v26 = vld [vmem:[#allocation117_spill] sm:$0xff] }
 0x268   :  { %v1792_v18 = vadd.bf16 %v11636_v2, %v1187_v33  ;;  %v4604_v25 = vsel %vm1379_vm7, 1.0, %v11099_v30  ;;  %vm2014_vm5 = vcmp.eq.s32.totalorder %v11215_v51, %v11569_v54  ;;  %vm1979_vm1 = vcmp.eq.s32.totalorder %v11215_v51, %v11517_v63  ;;  %v11646_v2 = vld [vmem:[#allocation56_spill] sm:$0xff]  ;;  %v11648_v3 = vld [vmem:[#allocation13_spill] sm:$0xff] }
 0x269   :  { %v1709_v53 = vpack.c.bf16 %v4604_v25, %v4599_v40  ;;  %v4729_v37 = vsel %vm1984_vm8, 1.0, %v11099_v30  ;;  %5244 = vmatmul.mubr.bf16.gmra.mxu0 %v2979_v10  ;;  %v1169_v56 = vadd.bf16 %v1104_v21, %v564_v41  ;;  %v4724_v61 = vsel %vm1979_vm1, 1.0, %v11099_v30  ;;  %v11650_v21 = vld [vmem:[#allocation54_spill] sm:$0xff]  ;;  %v11651_v40 = vld [vmem:[#allocation60_spill] sm:$0xff] }
 0x26a   :  { %v2397_v20 = vadd.bf16 %v2332_v34, %v1792_v18  ;;  %vm2584_vm3 = vcmp.eq.s32.totalorder %v11215_v51, %v11520_v38  ;;  %vm2589_vm7 = vcmp.eq.s32.totalorder %v11215_v51, %v11521_v4  ;;  %5247 = vmatprep.mubr.msk.bf16.mxu0 %vm5604_vm6, %v11099_v30  ;;  %v2314_v63 = vpack.c.bf16 %v4729_v37, %v4724_v61  ;;  %v11643_v38 = vld [vmem:[#allocation50_spill] sm:$0xff]  ;;  %v11645_v4 = vld [vmem:[#allocation168_spill] sm:$0xff] }
 0x26b   :  { %v4849_v46 = vsel %vm2584_vm3, 1.0, %v11099_v30  ;;  %v4854_v9 = vsel %vm2589_vm7, 1.0, %v11099_v30  ;;  %v1774_v33 = vadd.bf16 %v1709_v53, %v1169_v56  ;;  %v569_v34 = vpack.c.bf16 %v11642_v26, %v11641_v35  ;;  %v11654_v53 = vld [vmem:[#allocation14_spill] sm:$0xff]  ;;  %v10365_v56 = vpop.f32.mrf.mxu0 }
 0x26c   :  { %v3002_v52 = vadd.bf16 %v2937_v39, %v2397_v20  ;;  %v2919_v58 = vpack.c.bf16 %v4854_v9, %v4849_v46  ;;  %v1109_v13 = vpack.c.bf16 %v11644_v0, %v11643_v38  ;;  %v1714_v18 = vpack.c.bf16 %v11646_v2, %v11645_v4  ;;  %v11653_v20 = vld [vmem:[#allocation31_spill] sm:$0xff]  ;;  %v11658_v0 = vld [vmem:[#allocation193_spill] sm:$0xff] }
 0x26d   :  { %v4734_v39 = vsel %vm1989_vm2, 1.0, %v11099_v30  ;;  %v4739_v49 = vsel %vm1994_vm14, 1.0, %v11099_v30  ;;  %vm2594_vm8 = vcmp.eq.s32.totalorder %v11215_v51, %v11544_v16  ;;  %v2379_v6 = vadd.bf16 %v2314_v63, %v1774_v33  ;;  %v11647_v16 = vld [vmem:[#allocation95_spill] sm:$0xff] }
 0x26e   :  { %3590 = vmatmul.mubr.bf16.gmra.mxu1 %v3002_v52  ;;  %v1174_v41 = vadd.bf16 %v1109_v13, %v569_v34  ;;  %v2319_v10 = vpack.c.bf16 %v4739_v49, %v4734_v39  ;;  %vm2599_vm9 = vcmp.eq.s32.totalorder %v11215_v51, %v11545_v17  ;;  %v4389_v11 = vsel %vm269_vm0, 1.0, %v11099_v30  ;;  %v11656_v34 = vld [vmem:[#allocation187_spill] sm:$0xff] }
 0x26f   :  { %5283 = vmatprep.mubr.msk.bf16.mxu1 %vm5604_vm6, %v11099_v30  ;;  %v4514_v1 = vsel %vm809_vm11, 1.0, %v11099_v30  ;;  %v11649_v7 = vpack.c.bf16 %v11647_v16, %v11648_v3  ;;  %v11652_v25 = vpack.c.bf16 %v11650_v21, %v11651_v40  ;;  %v1719_v37 = vpack.c.bf16 %v11654_v53, %v11653_v20  ;;  %v11659_v13 = vld [vmem:[#allocation75_spill] sm:$0xff] }
 0x270   :  { %v4639_v22 = vsel %vm1414_vm10, 1.0, %v11099_v30  ;;  %v2984_v61 = vadd.bf16 %v2919_v58, %v2379_v6  ;;  %v1779_v50 = vadd.bf16 %v1714_v18, %v1174_v41  ;;  %v4744_v52 = vsel %vm1999_vm13, 1.0, %v11099_v30  ;;  %v11662_v18 = vld [vmem:[#allocation98_spill] sm:$0xff]  ;;  %v10393_v41 = vpop.f32.mrf.mxu0 }
 0x271   :  { %v1179_v17 = vadd.bf16 %v11652_v25, %v11649_v7  ;;  %v4859_v63 = vsel %vm2594_vm8, 1.0, %v11099_v30  ;;  %v4864_v46 = vsel %vm2599_vm9, 1.0, %v11099_v30  ;;  %v4749_v28 = vsel %vm2004_vm15, 1.0, %v11099_v30 }
 0x272   :  { %v584_v33 = vpack.c.bf16 %v4389_v11, %v4389_v11  ;;  %v1124_v35 = vpack.c.bf16 %v4514_v1, %v4514_v1  ;;  %5248 = vmatmul.mubr.bf16.gmra.mxu0 %v2984_v61  ;;  %v2384_v58 = vadd.bf16 %v2319_v10, %v1779_v50  ;;  %v2324_v26 = vpack.c.bf16 %v4749_v28, %v4744_v52  ;;  %v10399_v7 = vpop.f32.mrf.mxu0 }
 0x273   :  { %v1784_v9 = vadd.bf16 %v1719_v37, %v1179_v17  ;;  %vm2019_vm14 = vcmp.eq.s32.totalorder %v11215_v51, %v11588_v62  ;;  %5251 = vmatprep.mubr.msk.bf16.mxu0 %vm5604_vm6, %v11099_v30  ;;  %v11657_v38 = vpack.c.bf16 %v11655_v45, %v11656_v34  ;;  %v11660_v4 = vpack.c.bf16 %v11658_v0, %v11659_v13 }
 0x274   :  { %v1724_v39 = vpack.c.bf16 %v11662_v18, %v11661_v47  ;;  %v4754_v49 = vsel %vm2009_vm4, 1.0, %v11099_v30  ;;  %v1729_v6 = vpack.c.bf16 %v4639_v22, %v4639_v22  ;;  %v2924_v10 = vpack.c.bf16 %v4864_v46, %v4859_v63  ;;  %v10411_v37 = vpop.f32.mrf.mxu0 }
 0x275   :  { %v1184_v2 = vadd.bf16 %v11660_v4, %v11657_v38  ;;  %v2389_v11 = vadd.bf16 %v2324_v26, %v1784_v9  ;;  %v4759_v1 = vsel %vm2014_vm5, 1.0, %v11099_v30  ;;  %vm2604_vm2 = vcmp.eq.s32.totalorder %v11215_v51, %v11570_v24 }
 0x276   :  { %v2329_v3 = vpack.c.bf16 %v4759_v1, %v4754_v49  ;;  %vm2609_vm0 = vcmp.eq.s32.totalorder %v11215_v51, %v11571_v59  ;;  %v1189_v27 = vadd.bf16 %v1124_v35, %v584_v33  ;;  %v4764_v21 = vsel %vm2019_vm14, 1.0, %v11099_v30  ;;  %v10415_v22 = vpop.f32.mrf.mxu0 }
 0x277   :  { %v1789_v16 = vadd.bf16 %v1724_v39, %v1184_v2  ;;  %v2334_v25 = vpack.c.bf16 %v4764_v21, %v4764_v21  ;;  %v2989_v54 = vadd.bf16 %v2924_v10, %v2384_v58  ;;  %v4869_v20 = vsel %vm2604_vm2, 1.0, %v11099_v30  ;;  %v10434_v58 = vpop.f32.mrf.mxu1 }
 0x278   :  { %v1794_v17 = vadd.bf16 %v1729_v6, %v1189_v27  ;;  %v4874_v53 = vsel %vm2609_vm0, 1.0, %v11099_v30  ;;  %vm2614_vm11 = vcmp.eq.s32.totalorder %v11215_v51, %v11598_v42  ;;  %vm2619_vm13 = vcmp.eq.s32.totalorder %v11215_v51, %v11599_v19  ;;  %v10422_v50 = vpop.f32.mrf.mxu0 }
 0x279   :  { %v2394_v40 = vadd.bf16 %v2329_v3, %v1789_v16  ;;  %v2929_v59 = vpack.c.bf16 %v4874_v53, %v4869_v20  ;;  %v4879_v61 = vsel %vm2614_vm11, 1.0, %v11099_v30  ;;  %v4884_v52 = vsel %vm2619_vm13, 1.0, %v11099_v30  ;;  %v10438_v26 = vpop.f32.mrf.mxu1 }
 0x27a   :  { %5252 = vmatmul.mubr.bf16.gmra.mxu0 %v2989_v54  ;;  %v2399_v24 = vadd.bf16 %v2334_v25, %v1794_v17  ;;  %v2934_v63 = vpack.c.bf16 %v4884_v52, %v4879_v61  ;;  %v4988_v46 = vpop.f32.mrf.mxu0  ;;  %vm2624_vm12 = vcmp.eq.s32.totalorder %v11215_v51, %v11620_v14 }
 0x27b   :  { %5255 = vmatprep.mubr.msk.bf16.mxu0 %vm5604_vm6, %v11099_v30  ;;  %v2994_v62 = vadd.bf16 %v2929_v59, %v2389_v11  ;;  %v4889_v19 = vsel %vm2624_vm12, 1.0, %v11099_v30 }
 0x27c   :  { %v4989_v9 = vpop.f32.mrf.mxu0  ;;  %v2999_v42 = vadd.bf16 %v2934_v63, %v2394_v40  ;;  %v2939_v33 = vpack.c.bf16 %v4889_v19, %v4889_v19 }
 0x27d   :  { %v10427_v28 = vadd.f32 %v4989_v9, %v4988_v46 }
 0x27e   :  { %v3004_v35 = vadd.bf16 %v2939_v33, %v2399_v24  ;;  %v10444_v13 = vpop.f32.mrf.mxu0  ;;  %v5536_v33 = vld [vmem:[%s10768_s4 + $0x38] sm:$0xff]  }
 0x27f   :  { %5336 = vmatpush3.bf16.msra.mxu0 %v5536_v33 }
 0x280   :  { %v5030_v45 = vpop.f32.mrf.mxu1  ;;  %v10446_v2 = vpop.f32.mrf.mxu0  ;;  %5337 = vmatprep.subr.bf16.mxu0 %v11099_v30 }
 0x282   :  { %5256 = vmatmul.mubr.bf16.gmra.mxu0 %v2994_v62  ;;  %v5031_v34 = vpop.f32.mrf.mxu1 }
 0x283   :  { %5259 = vmatprep.mubr.msk.bf16.mxu0 %vm5604_vm6, %v11099_v30  ;;  %v10440_v38 = vadd.f32 %v5031_v34, %v5030_v45 }
 0x284   :  { %v5033_v51 = vpop.f32.mrf.mxu1 }
 0x286   :  { %v5034_v14 = vpop.f32.mrf.mxu1 }
 0x287   :  { %v10442_v0 = vadd.f32 %v5034_v14, %v5033_v51  ;;  %v5537_v51 = vld [vmem:[%s10768_s4 + $0x30] sm:$0xff]  }
 0x288   :  { %5338 = vmatpush3.bf16.msra.mxu0 %v5537_v51 }
 0x289   :  { %5339 = vmatprep.subr.bf16.mxu0 %v11099_v30 }
 0x28a   :  { %5260 = vmatmul.mubr.bf16.gmra.mxu0 %v2999_v42 }
 0x28b   :  { %5263 = vmatprep.mubr.msk.bf16.mxu0 %vm5604_vm6, %v11099_v30 }
 0x292   :  { %5264 = vmatmul.mubr.bf16.gmra.mxu0 %v3004_v35 }
 0x293   :  { %5351 = vmatprep.mubr.msk.bf16.mxu0 %vm5604_vm6, %v11099_v30 }
 0x29e   :  { %v5036_v4 = vpop.f32.mrf.mxu1 }
 0x2a0   :  { %v5037_v47 = vpop.f32.mrf.mxu1 }
 0x2a1   :  { %v10448_v18 = vadd.f32 %v5037_v47, %v5036_v4  ;;  %v4994_v39 = vpop.f32.mrf.mxu0  ;;  %v4966_v47 = vadd.f32 %v10052_v48, %v10018_v44 }
 0x2a2   :  { %v5039_v49 = vpop.f32.mrf.mxu1 }
 0x2a3   :  { %v4995_v6 = vpop.f32.mrf.mxu0 }
 0x2a4   :  { %v10450_v10 = vadd.f32 %v4995_v6, %v4994_v39  ;;  %v5040_v11 = vpop.f32.mrf.mxu1 }
 0x2a5   :  { %v10458_v24 = vpop.f32.mrf.mxu0 }
 0x2a6   :  { %v5058_v1 = vpop.f32.mrf.mxu1 }
 0x2a7   :  { %v10464_v61 = vpop.f32.mrf.mxu0 }
 0x2a8   :  { %v5059_v16 = vpop.f32.mrf.mxu1 }
 0x2a9   :  { %v5060_v34 = vadd.f32 %v5059_v16, %v5058_v1  ;;  %v4969_v1 = vadd.f32 %v10130_v12, %v10084_v43  ;;  %v5539_v43 = vld [vmem:[%s10768_s4 + $0x20] sm:$0xff]  }
 0x2aa   :  { %v5061_v3 = vpop.f32.mrf.mxu1 }
 0x2ab   :  { %v3496_v16 = vadd.f32 %v5060_v34, %v4966_v47 }
 0x2ac   :  { %v5062_v27 = vpop.f32.mrf.mxu1 }
 0x2ad   :  { %v5063_v39 = vadd.f32 %v5062_v27, %v5061_v3 }
 0x2ae   :  { %v5064_v21 = vpop.f32.mrf.mxu1 }
 0x2af   :  { %v3499_v48 = vadd.f32 %v5063_v39, %v4969_v1  ;;  %v4972_v39 = vadd.f32 %v10204_v29, %v10172_v8 }
 0x2b0   :  { %v5065_v40 = vpop.f32.mrf.mxu1 }
 0x2b1   :  { %v5066_v12 = vadd.f32 %v5065_v40, %v5064_v21  ;;  %v5540_v21 = vld [vmem:[%s10768_s4 + $0x18] sm:$0xff]   ;;  %v4975_v40 = vadd.f32 %v10282_v31, %v10242_v5  ;;  %v5541_v5 = vld [vmem:[%s10768_s4 + $0x10] sm:$0xff]  }
 0x2b2   :  { %v5067_v25 = vpop.f32.mrf.mxu1 }
 0x2b4   :  { %v5068_v54 = vpop.f32.mrf.mxu1 }
 0x2b6   :  { %v10452_v17 = vpop.f32.mrf.mxu1 }
 0x2b8   :  { %v10454_v20 = vpop.f32.mrf.mxu1 }
 0x2ba   :  { %v10456_v53 = vpop.f32.mrf.mxu1 }
 0x2bc   :  { %v10460_v59 = vpop.f32.mrf.mxu1 }
 0x2be   :  { %v10462_v62 = vpop.f32.mrf.mxu1 }
 0x2c0   :  { %v10466_v52 = vpop.f32.mrf.mxu1 }
 0x2c2   :  { %v10468_v46 = vpop.f32.mrf.mxu1 }
 0x2c4   :  { %v5000_v63 = vpop.f32.mrf.mxu0  ;;  %v10470_v42 = vpop.f32.mrf.mxu1 }
 0x2c6   :  { %v5001_v9 = vpop.f32.mrf.mxu0  ;;  %v10477_v45 = vpop.f32.mrf.mxu1 }
 0x2c7   :  { %v10472_v19 = vadd.f32 %v5001_v9, %v5000_v63  ;;  %v5538_v63 = vld [vmem:[%s10768_s4 + $0x28] sm:$0xff]  }
 0x2c8   :  { %v5003_v35 = vpop.f32.mrf.mxu0  ;;  %v10482_v4 = vpop.f32.mrf.mxu1  ;;  %5340 = vmatpush3.bf16.msra.mxu0 %v5538_v63 }
 0x2c9   :  { %5341 = vmatprep.subr.bf16.mxu0 %v11099_v30 }
 0x2ca   :  { %v5004_v14 = vpop.f32.mrf.mxu0  ;;  %v10489_v6 = vpop.f32.mrf.mxu1 }
 0x2cb   :  { %v10487_v49 = vadd.f32 %v5004_v14, %v5003_v35 }
 0x2cc   :  { %v3631_v11 = vpop.f32.mrf.mxu0  ;;  %v10496_v9 = vpop.f32.mrf.mxu1  ;;  %5342 = vmatpush3.bf16.msra.mxu0 %v5539_v43 }
 0x2cd   :  { %v3632_v44 = vadd.f32 %v3631_v11, %v3496_v16  ;;  %v5069_v11 = vadd.f32 %v5068_v54, %v5067_v25  ;;  %5343 = vmatprep.subr.bf16.mxu0 %v11099_v30 }
 0x2ce   :  { %v5217_v33 = vpop.f32.mrf.mxu0 }
 0x2cf   :  { %v3733_v14 = vmax.f32 %v3632_v44, 0.0  ;;  %v3504_v33 = vadd.f32 %v5066_v12, %v4972_v39  ;;  %v3507_v25 = vadd.f32 %v5069_v11, %v4975_v40  ;;  %v4978_v11 = vadd.f32 %v10323_v57, %v10294_v23  ;;  %v5543_v40 = vld [vmem:[%s10768_s4] sm:$0xff]  }
 0x2d0   :  { %v3634_v27 = vpop.f32.mrf.mxu0  ;;  %5344 = vmatpush3.bf16.msra.mxu0 %v5540_v21 }
 0x2d1   :  { %v10499_v3 = vpop.f32.mrf.mxu1  ;;  %v3635_v35 = vadd.f32 %v3634_v27, %v3499_v48  ;;  %5345 = vmatprep.subr.bf16.mxu0 %v11099_v30 }
 0x2d2   :  { %v5218_v51 = vpop.f32.mrf.mxu0 }
 0x2d3   :  { %v10504_v34 = vpop.f32.mrf.mxu1  ;;  %v3734_v47 = vmax.f32 %v3635_v35, 0.0 }
 0x2d4   :  { %5346 = vmatpush3.bf16.msra.mxu0 %v5541_v5 }
 0x2d5   :  { %v10509_v1 = vpop.f32.mrf.mxu1  ;;  %v3758_v16 = vpack.c.bf16 %v3734_v47, %v3733_v14  ;;  %v5072_v14 = vadd.f32 %v10454_v20, %v10452_v17  ;;  %v5542_v47 = vld [vmem:[%s10768_s4 + $0x8] sm:$0xff]   ;;  %5347 = vmatprep.subr.bf16.mxu0 %v11099_v30  ;;  %v4981_v17 = vadd.f32 %v10393_v41, %v10365_v56 }
 0x2d7   :  { %v10516_v48 = vpop.f32.mrf.mxu1  ;;  %5284 = vmatmul.mubr.bf16.vlgmr.msra.gmra.mxu1 %v3758_v16  ;;  %v5075_v16 = vadd.f32 %v10460_v59, %v10456_v53  ;;  %v3512_v20 = vadd.f32 %v5072_v14, %v4978_v11  ;;  %v4987_v14 = vadd.f32 %v10422_v50, %v10415_v22  ;;  %v5084_v22 = vadd.f32 %v10482_v4, %v10477_v45 }
 0x2d8   :  { %5287 = vmatprep.mubr.msk.bf16.mxu1 %vm5604_vm6, %v11099_v30  ;;  %5348 = vmatpush3.bf16.msra.mxu0 %v5542_v47 }
 0x2d9   :  { %5349 = vmatprep.subr.bf16.mxu0 %v11099_v30  ;;  %v3515_v53 = vadd.f32 %v5075_v16, %v4981_v17 }
 0x2da   :  { %v3639_v63 = vpop.f32.mrf.mxu0 }
 0x2db   :  { %v3640_v8 = vadd.f32 %v3639_v63, %v3504_v33 }
 0x2dc   :  { %v5221_v44 = vpop.f32.mrf.mxu0  ;;  %v10519_v29 = vpop.f32.mrf.mxu1  ;;  %5350 = vmatpush3.bf16.msra.mxu0 %v5543_v40  ;;  %v5087_v40 = vadd.f32 %v10496_v9, %v10489_v6 }
 0x2dd   :  { %v3735_v43 = vmax.f32 %v3640_v8, 0.0 }
 0x2de   :  { %v3642_v54 = vpop.f32.mrf.mxu0  ;;  %v10526_v27 = vpop.f32.mrf.mxu1 }
 0x2df   :  { %v3643_v31 = vadd.f32 %v3642_v54, %v3507_v25  ;;  %v5078_v54 = vadd.f32 %v10466_v52, %v10462_v62 }
 0x2e0   :  { %v5222_v35 = vpop.f32.mrf.mxu0  ;;  %v10529_v51 = vpop.f32.mrf.mxu1 }
 0x2e1   :  { %v3736_v12 = vmax.f32 %v3643_v31, 0.0  ;;  %v4984_v35 = vadd.f32 %v10411_v37, %v10399_v7 }
 0x2e2   :  { %v10541_v21 = vpop.f32.mrf.mxu1 }
 0x2e3   :  { %v3759_v39 = vpack.c.bf16 %v3736_v12, %v3735_v43  ;;  %v5081_v43 = vadd.f32 %v10470_v42, %v10468_v46  ;;  %v3520_v47 = vadd.f32 %v5078_v54, %v4984_v35  ;;  %v5093_v35 = vadd.f32 %v10516_v48, %v10509_v1 }
 0x2e5   :  { %5288 = vmatmul.mubr.bf16.gmra.mxu1 %v3759_v39  ;;  %v3523_v11 = vadd.f32 %v5081_v43, %v4987_v14  ;;  %v4999_v14 = vadd.f32 %v10464_v61, %v10458_v24 }
 0x2e6   :  { %5291 = vmatprep.mubr.msk.bf16.mxu1 %vm5604_vm6, %v11099_v30 }
 0x2e7   :  { %v3647_v63 = vpop.f32.mrf.mxu0 }
 0x2e8   :  { %v3648_v57 = vadd.f32 %v3647_v63, %v3512_v20 }
 0x2e9   :  { %v5225_v23 = vpop.f32.mrf.mxu0 }
 0x2ea   :  { %v3737_v8 = vmax.f32 %v3648_v57, 0.0  ;;  %v4993_v57 = vadd.f32 %v10446_v2, %v10444_v13 }
 0x2eb   :  { %v3650_v33 = vpop.f32.mrf.mxu0 }
 0x2ec   :  { %v3651_v44 = vadd.f32 %v3650_v33, %v3515_v53  ;;  %v3528_v53 = vadd.f32 %v5084_v22, %v10427_v28  ;;  %v3531_v4 = vadd.f32 %v5087_v40, %v4993_v57  ;;  %v5090_v28 = vadd.f32 %v10504_v34, %v10499_v3 }
 0x2ed   :  { %v10551_v59 = vpop.f32.mrf.mxu1  ;;  %v5226_v41 = vpop.f32.mrf.mxu0 }
 0x2ee   :  { %v3738_v25 = vmax.f32 %v3651_v44, 0.0 }
 0x2ef   :  { %v10553_v56 = vpop.f32.mrf.mxu1 }
 0x2f0   :  { %v3760_v31 = vpack.c.bf16 %v3738_v25, %v3737_v8 }
 0x2f1   :  { %v10557_v5 = vpop.f32.mrf.mxu1 }
 0x2f2   :  { %5292 = vmatmul.mubr.bf16.gmra.mxu1 %v3760_v31 }
 0x2f3   :  { %v10565_v39 = vpop.f32.mrf.mxu1  ;;  %5295 = vmatprep.mubr.msk.bf16.mxu1 %vm5604_vm6, %v11099_v30 }
 0x2f4   :  { %v3655_v12 = vpop.f32.mrf.mxu0 }
 0x2f5   :  { %v3656_v52 = vadd.f32 %v3655_v12, %v3520_v47  ;;  %v3536_v47 = vadd.f32 %v5090_v28, %v10450_v10  ;;  %v5099_v10 = vadd.f32 %v10541_v21, %v10529_v51  ;;  %v5102_v21 = vadd.f32 %v10553_v56, %v10551_v59 }
 0x2f6   :  { %v5229_v62 = vpop.f32.mrf.mxu0 }
 0x2f7   :  { %v3739_v46 = vmax.f32 %v3656_v52, 0.0  ;;  %v3539_v52 = vadd.f32 %v5093_v35, %v4999_v14 }
 0x2f8   :  { %v3658_v16 = vpop.f32.mrf.mxu0 }
 0x2f9   :  { %v3659_v7 = vadd.f32 %v3658_v16, %v3523_v11 }
 0x2fa   :  { %v10569_v63 = vpop.f32.mrf.mxu1  ;;  %v5230_v37 = vpop.f32.mrf.mxu0 }
 0x2fb   :  { %v3740_v42 = vmax.f32 %v3659_v7, 0.0  ;;  %v5096_v7 = vadd.f32 %v10526_v27, %v10519_v29  ;;  %v3547_v27 = vadd.f32 %v5099_v10, %v10487_v49  ;;  %v11663_v49 = vld [vmem:[#allocation62_spill] sm:$0xff] }
 0x2fc   :  { %v10571_v17 = vpop.f32.mrf.mxu1 }
 0x2fd   :  { %v3761_v50 = vpack.c.bf16 %v3740_v42, %v3739_v46 }
 0x2fe   :  { %v10575_v20 = vpop.f32.mrf.mxu1 }
 0x2ff   :  { %5296 = vmatmul.mubr.bf16.gmra.mxu1 %v3761_v50  ;;  %v3544_v50 = vadd.f32 %v5096_v7, %v10472_v19 }
 0x300   :  { %v10582_v33 = vpop.f32.mrf.mxu1  ;;  %5299 = vmatprep.mubr.msk.bf16.mxu1 %vm5604_vm6, %v11099_v30 }
 0x303   :  { %v3663_v23 = vpop.f32.mrf.mxu0 }
 0x304   :  { %v3664_v45 = vadd.f32 %v3663_v23, %v3528_v53 }
 0x305   :  { %v5233_v44 = vpop.f32.mrf.mxu0 }
 0x306   :  { %v3741_v9 = vmax.f32 %v3664_v45, 0.0 }
 0x307   :  { %v3666_v41 = vpop.f32.mrf.mxu0 }
 0x308   :  { %v10586_v8 = vpop.f32.mrf.mxu1  ;;  %v3667_v25 = vadd.f32 %v3666_v41, %v3531_v4  ;;  %v5105_v41 = vadd.f32 %v10565_v39, %v10557_v5  ;;  %v5108_v5 = vadd.f32 %v10571_v17, %v10569_v63 }
 0x309   :  { %v5234_v6 = vpop.f32.mrf.mxu0 }
 0x30a   :  { %v3742_v54 = vmax.f32 %v3667_v25, 0.0  ;;  %v10588_v31 = vpop.f32.mrf.mxu1  ;;  %v3560_v10 = vadd.f32 %v5108_v5, %v9499_v15 }
 0x30c   :  { %v3762_v13 = vpack.c.bf16 %v3742_v54, %v3741_v9  ;;  %v10592_v2 = vpop.f32.mrf.mxu1  ;;  %v11664_v54 = vld [vmem:[#allocation123_spill] sm:$0xff] }
 0x30d   :  { %v5011_v28 = vadd.f32 %v11664_v54, %v11663_v49  ;;  %v5029_v54 = vadd.f32 %v10438_v26, %v10434_v58 }
 0x30e   :  { %v10596_v12 = vpop.f32.mrf.mxu1  ;;  %5300 = vmatmul.mubr.bf16.gmra.mxu1 %v3762_v13  ;;  %v11665_v13 = vld [vmem:[#allocation57_spill] sm:$0xff] }
 0x30f   :  { %5303 = vmatprep.mubr.msk.bf16.mxu1 %vm5604_vm6, %v11099_v30  ;;  %v3552_v35 = vadd.f32 %v5102_v21, %v11665_v13  ;;  %v3555_v14 = vadd.f32 %v5105_v41, %v5011_v28  ;;  %v11667_v21 = vld [vmem:[#allocation156_spill] sm:$0xff] }
 0x310   :  { %v3671_v43 = vpop.f32.mrf.mxu0 }
 0x311   :  { %v3672_v3 = vadd.f32 %v3671_v43, %v3536_v47 }
 0x312   :  { %v5237_v62 = vpop.f32.mrf.mxu0 }
 0x313   :  { %v3743_v37 = vmax.f32 %v3672_v3, 0.0 }
 0x314   :  { %v10603_v34 = vpop.f32.mrf.mxu1  ;;  %v3674_v11 = vpop.f32.mrf.mxu0 }
 0x315   :  { %v3675_v16 = vadd.f32 %v3674_v11, %v3539_v52  ;;  %v5111_v52 = vadd.f32 %v10582_v33, %v10575_v20  ;;  %v5114_v20 = vadd.f32 %v10588_v31, %v10586_v8 }
 0x316   :  { %v10605_v1 = vpop.f32.mrf.mxu1  ;;  %v5238_v48 = vpop.f32.mrf.mxu0 }
 0x317   :  { %v3744_v24 = vmax.f32 %v3675_v16, 0.0  ;;  %v5120_v8 = vadd.f32 %v10605_v1, %v10603_v34 }
 0x318   :  { %v10609_v61 = vpop.f32.mrf.mxu1 }
 0x319   :  { %v3763_v46 = vpack.c.bf16 %v3744_v24, %v3743_v37  ;;  %v5017_v37 = vadd.f32 %v9716_v60, %v9671_v32  ;;  %v5117_v32 = vadd.f32 %v10596_v12, %v10592_v2  ;;  %v3576_v13 = vadd.f32 %v5120_v8, %v10258_v36 }
 0x31a   :  { %v10613_v42 = vpop.f32.mrf.mxu1 }
 0x31b   :  { %5304 = vmatmul.mubr.bf16.gmra.mxu1 %v3763_v46  ;;  %v3563_v63 = vadd.f32 %v5111_v52, %v5017_v37  ;;  %v5123_v12 = vadd.f32 %v10613_v42, %v10609_v61 }
 0x31c   :  { %5307 = vmatprep.mubr.msk.bf16.mxu1 %vm5604_vm6, %v11099_v30 }
 0x31d   :  { %v3679_v22 = vpop.f32.mrf.mxu0 }
 0x31e   :  { %v3680_v29 = vadd.f32 %v3679_v22, %v3544_v50 }
 0x31f   :  { %v5241_v40 = vpop.f32.mrf.mxu0 }
 0x320   :  { %v10616_v23 = vpop.f32.mrf.mxu1  ;;  %v3745_v19 = vmax.f32 %v3680_v29, 0.0 }
 0x321   :  { %v3682_v57 = vpop.f32.mrf.mxu0 }
 0x322   :  { %v10621_v53 = vpop.f32.mrf.mxu1  ;;  %v3683_v51 = vadd.f32 %v3682_v57, %v3547_v27  ;;  %v11666_v27 = vld [vmem:[#allocation157_spill] sm:$0xff] }
 0x323   :  { %v5242_v44 = vpop.f32.mrf.mxu0  ;;  %v5023_v57 = vadd.f32 %v10174_v55, %v11666_v27  ;;  %v5126_v34 = vadd.f32 %v10621_v53, %v10616_v23 }
 0x324   :  { %v10625_v45 = vpop.f32.mrf.mxu1  ;;  %v3746_v4 = vmax.f32 %v3683_v51, 0.0  ;;  %v3568_v44 = vadd.f32 %v5114_v20, %v11667_v21 }
 0x325   :  { %v3571_v41 = vadd.f32 %v5117_v32, %v5023_v57  ;;  %v3584_v5 = vadd.f32 %v5126_v34, %v10440_v38 }
 0x326   :  { %v10629_v25 = vpop.f32.mrf.mxu1  ;;  %v3764_v6 = vpack.c.bf16 %v3746_v4, %v3745_v19 }
 0x327   :  { %v5129_v42 = vadd.f32 %v10629_v25, %v10625_v45 }
 0x328   :  { %5308 = vmatmul.mubr.bf16.gmra.mxu1 %v3764_v6 }
 0x329   :  { %v3687_v9 = vpop.f32.mrf.mxu0  ;;  %5311 = vmatprep.mubr.msk.bf16.mxu1 %vm5604_vm6, %v11099_v30 }
 0x32a   :  { %v3688_v59 = vadd.f32 %v3687_v9, %v3552_v35 }
 0x32b   :  { %v5245_v43 = vpop.f32.mrf.mxu0 }
 0x32c   :  { %v3747_v11 = vmax.f32 %v3688_v59, 0.0  ;;  %v3579_v59 = vadd.f32 %v5123_v12, %v5029_v54 }
 0x32d   :  { %v3690_v47 = vpop.f32.mrf.mxu0 }
 0x32e   :  { %v10634_v56 = vpop.f32.mrf.mxu1  ;;  %v3691_v39 = vadd.f32 %v3690_v47, %v3555_v14 }
 0x32f   :  { %v5246_v3 = vpop.f32.mrf.mxu0 }
 0x330   :  { %v5131_v62 = vpop.f32.mrf.mxu1  ;;  %v3748_v16 = vmax.f32 %v3691_v39, 0.0 }
 0x331   :  { %v5132_v3 = vadd.f32 %v5131_v62, %v10634_v56 }
 0x332   :  { %v5133_v48 = vpop.f32.mrf.mxu1  ;;  %v3695_v7 = vpop.f32.mrf.mxu0  ;;  %v3765_v24 = vpack.c.bf16 %v3748_v16, %v3747_v11  ;;  %v3587_v11 = vadd.f32 %v5129_v42, %v10442_v0 }
 0x333   :  { %v3696_v50 = vadd.f32 %v3695_v7, %v3560_v10  ;;  %v3592_v48 = vadd.f32 %v5132_v3, %v10448_v18 }
 0x334   :  { %v5134_v46 = vpop.f32.mrf.mxu1  ;;  %v5249_v22 = vpop.f32.mrf.mxu0  ;;  %5312 = vmatmul.mubr.bf16.gmra.mxu1 %v3765_v24 }
 0x335   :  { %5315 = vmatprep.mubr.msk.bf16.mxu1 %vm5604_vm6, %v11099_v30  ;;  %v3749_v60 = vmax.f32 %v3696_v50, 0.0  ;;  %v10680_v46 = vld [vmem:[%s10767_s3] ss:$0 sm:$0xff] }
 0x336   :  { %v3698_v17 = vpop.f32.mrf.mxu0 }
 0x337   :  { %v3699_v33 = vadd.f32 %v3698_v17, %v3563_v63 }
 0x338   :  { %v5250_v40 = vpop.f32.mrf.mxu0 }
 0x339   :  { %v3750_v29 = vmax.f32 %v3699_v33, 0.0 }
 0x33a   :  { %v3703_v15 = vpop.f32.mrf.mxu0 }
 0x33b   :  { %v3766_v51 = vpack.c.bf16 %v3750_v29, %v3749_v60  ;;  %v3704_v4 = vadd.f32 %v3703_v15, %v3568_v44 }
 0x33c   :  { %v5253_v19 = vpop.f32.mrf.mxu0 }
 0x33d   :  { %5316 = vmatmul.mubr.bf16.gmra.mxu1 %v3766_v51  ;;  %v3751_v55 = vmax.f32 %v3704_v4, 0.0 }
 0x33e   :  { %v3706_v6 = vpop.f32.mrf.mxu0  ;;  %5319 = vmatprep.mubr.msk.bf16.mxu1 %vm5604_vm6, %v11099_v30 }
 0x33f   :  { %v3707_v31 = vadd.f32 %v3706_v6, %v3571_v41 }
 0x340   :  { %v5254_v2 = vpop.f32.mrf.mxu0 }
 0x341   :  { %v3752_v9 = vmax.f32 %v3707_v31, 0.0 }
 0x342   :  { %v3711_v49 = vpop.f32.mrf.mxu0 }
 0x343   :  { %v3767_v28 = vpack.c.bf16 %v3752_v9, %v3751_v55  ;;  %v3712_v43 = vadd.f32 %v3711_v49, %v3576_v13 }
 0x344   :  { %v5257_v35 = vpop.f32.mrf.mxu0 }
 0x345   :  { %5320 = vmatmul.mubr.bf16.gmra.mxu1 %v3767_v28  ;;  %v3753_v58 = vmax.f32 %v3712_v43, 0.0 }
 0x346   :  { %v3714_v14 = vpop.f32.mrf.mxu0  ;;  %5323 = vmatprep.mubr.msk.bf16.mxu1 %vm5604_vm6, %v11099_v30 }
 0x347   :  { %v3715_v1 = vadd.f32 %v3714_v14, %v3579_v59 }
 0x348   :  { %v5258_v61 = vpop.f32.mrf.mxu0 }
 0x349   :  { %v3754_v26 = vmax.f32 %v3715_v1, 0.0 }
 0x34a   :  { %v3719_v47 = vpop.f32.mrf.mxu0 }
 0x34b   :  { %v3768_v36 = vpack.c.bf16 %v3754_v26, %v3753_v58  ;;  %v3720_v52 = vadd.f32 %v3719_v47, %v3584_v5 }
 0x34c   :  { %v5261_v39 = vpop.f32.mrf.mxu0 }
 0x34d   :  { %5324 = vmatmul.mubr.bf16.gmra.mxu1 %v3768_v36  ;;  %v3755_v45 = vmax.f32 %v3720_v52, 0.0 }
 0x34e   :  { %v3722_v16 = vpop.f32.mrf.mxu0  ;;  %5327 = vmatprep.mubr.msk.bf16.mxu1 %vm5604_vm6, %v11099_v30 }
 0x34f   :  { %v3723_v23 = vadd.f32 %v3722_v16, %v3587_v11 }
 0x350   :  { %v5262_v53 = vpop.f32.mrf.mxu0 }
 0x351   :  { %v3756_v25 = vmax.f32 %v3723_v23, 0.0 }
 0x352   :  { %v3727_v7 = vpop.f32.mrf.mxu0 }
 0x353   :  { %v3769_v37 = vpack.c.bf16 %v3756_v25, %v3755_v45  ;;  %v3728_v38 = vadd.f32 %v3727_v7, %v3592_v48 }
 0x354   :  { %v5265_v24 = vpop.f32.mrf.mxu0 }
 0x355   :  { %5328 = vmatmul.mubr.bf16.gmra.mxu1 %v3769_v37  ;;  %v3757_v0 = vmax.f32 %v3728_v38, 0.0 }
 0x356   :  { %v3730_v56 = vpop.f32.mrf.mxu0  ;;  %5331 = vmatprep.mubr.msk.bf16.mxu1 %vm5604_vm6, %v11099_v30 }
 0x357   :  { %v3770_v10 = vpack.c.bf16 %v3757_v0, %v3757_v0 }
 0x358   :  { %v5266_v62 = vpop.f32.mrf.mxu0 }
 0x35d   :  { %5332 = vmatmul.mubr.bf16.gmra.mxu1 %v3770_v10 }
 0x397   :  { %v3876_v22 = vpop.f32.mrf.mxu1 }
 0x398   :  { %v3877_v50 = vadd.f32 %v10680_v46, %v3876_v22 }
 0x399   :  { %v5285_v18 = vpop.f32.mrf.mxu1 }
 0x39a   :  { %v3978_v33 = vmax.f32 %v3877_v50, 0.0 }
 0x39b   :  { %v3879_v63 = vpop.f32.mrf.mxu1 }
 0x39c   :  { %v3880_v17 = vadd.f32 %v10680_v46, %v3879_v63 }
 0x39d   :  { %v5286_v20 = vpop.f32.mrf.mxu1 }
 0x39e   :  { %v3979_v40 = vmax.f32 %v3880_v17, 0.0 }
 0x3a0   :  { %v4003_v32 = vpack.c.bf16 %v3979_v40, %v3978_v33 }
 0x3a2   :  { %5352 = vmatmul.mubr.bf16.vlgmr.msra.gmra.mxu0 %v4003_v32 }
 0x3a3   :  { %5355 = vmatprep.mubr.msk.bf16.mxu0 %vm5604_vm6, %v11099_v30 }
 0x3a5   :  { %v3884_v60 = vpop.f32.mrf.mxu1 }
 0x3a6   :  { %v3885_v15 = vadd.f32 %v10680_v46, %v3884_v60 }
 0x3a7   :  { %v5289_v29 = vpop.f32.mrf.mxu1 }
 0x3a8   :  { %v3980_v21 = vmax.f32 %v3885_v15, 0.0 }
 0x3a9   :  { %v3887_v27 = vpop.f32.mrf.mxu1 }
 0x3aa   :  { %v3888_v57 = vadd.f32 %v10680_v46, %v3887_v27 }
 0x3ab   :  { %v5290_v51 = vpop.f32.mrf.mxu1 }
 0x3ac   :  { %v3981_v44 = vmax.f32 %v3888_v57, 0.0 }
 0x3ae   :  { %v4004_v19 = vpack.c.bf16 %v3981_v44, %v3980_v21 }
 0x3b0   :  { %5356 = vmatmul.mubr.bf16.gmra.mxu0 %v4004_v19 }
 0x3b1   :  { %5359 = vmatprep.mubr.msk.bf16.mxu0 %vm5604_vm6, %v11099_v30 }
 0x3b2   :  { %v3892_v4 = vpop.f32.mrf.mxu1 }
 0x3b3   :  { %v3893_v6 = vadd.f32 %v10680_v46, %v3892_v4 }
 0x3b4   :  { %v5293_v41 = vpop.f32.mrf.mxu1 }
 0x3b5   :  { %v3982_v12 = vmax.f32 %v3893_v6, 0.0 }
 0x3b6   :  { %v3895_v8 = vpop.f32.mrf.mxu1 }
 0x3b7   :  { %v3896_v31 = vadd.f32 %v10680_v46, %v3895_v8 }
 0x3b8   :  { %v5294_v2 = vpop.f32.mrf.mxu1 }
 0x3b9   :  { %v3983_v55 = vmax.f32 %v3896_v31, 0.0 }
 0x3bb   :  { %v4005_v9 = vpack.c.bf16 %v3983_v55, %v3982_v12 }
 0x3bd   :  { %5360 = vmatmul.mubr.bf16.gmra.mxu0 %v4005_v9 }
 0x3be   :  { %5363 = vmatprep.mubr.msk.bf16.mxu0 %vm5604_vm6, %v11099_v30 }
 0x3bf   :  { %v3900_v49 = vpop.f32.mrf.mxu1 }
 0x3c0   :  { %v3901_v28 = vadd.f32 %v10680_v46, %v3900_v49 }
 0x3c1   :  { %v5297_v54 = vpop.f32.mrf.mxu1 }
 0x3c2   :  { %v3984_v59 = vmax.f32 %v3901_v28, 0.0 }
 0x3c3   :  { %v3903_v13 = vpop.f32.mrf.mxu1 }
 0x3c4   :  { %v3904_v35 = vadd.f32 %v10680_v46, %v3903_v13 }
 0x3c5   :  { %v5298_v43 = vpop.f32.mrf.mxu1 }
 0x3c6   :  { %v3985_v14 = vmax.f32 %v3904_v35, 0.0 }
 0x3c8   :  { %v4006_v34 = vpack.c.bf16 %v3985_v14, %v3984_v59 }
 0x3ca   :  { %5364 = vmatmul.mubr.bf16.gmra.mxu0 %v4006_v34 }
 0x3cb   :  { %5367 = vmatprep.mubr.msk.bf16.mxu0 %vm5604_vm6, %v11099_v30 }
 0x3ce   :  { %v3908_v1 = vpop.f32.mrf.mxu1 }
 0x3cf   :  { %v3909_v42 = vadd.f32 %v10680_v46, %v3908_v1 }
 0x3d0   :  { %v5301_v61 = vpop.f32.mrf.mxu1 }
 0x3d1   :  { %v3986_v36 = vmax.f32 %v3909_v42, 0.0 }
 0x3d2   :  { %v3911_v58 = vpop.f32.mrf.mxu1 }
 0x3d3   :  { %v3912_v26 = vadd.f32 %v10680_v46, %v3911_v58 }
 0x3d4   :  { %v5302_v47 = vpop.f32.mrf.mxu1 }
 0x3d5   :  { %v3987_v5 = vmax.f32 %v3912_v26, 0.0 }
 0x3d7   :  { %v4007_v39 = vpack.c.bf16 %v3987_v5, %v3986_v36 }
 0x3d9   :  { %5368 = vmatmul.mubr.bf16.gmra.mxu0 %v4007_v39 }
 0x3da   :  { %5371 = vmatprep.mubr.msk.bf16.mxu0 %vm5604_vm6, %v11099_v30 }
 0x3db   :  { %v3916_v3 = vpop.f32.mrf.mxu1 }
 0x3dc   :  { %v3917_v11 = vadd.f32 %v10680_v46, %v3916_v3 }
 0x3dd   :  { %v5305_v52 = vpop.f32.mrf.mxu1 }
 0x3de   :  { %v3988_v45 = vmax.f32 %v3917_v11, 0.0 }
 0x3df   :  { %v3919_v16 = vpop.f32.mrf.mxu1 }
 0x3e0   :  { %v3920_v23 = vadd.f32 %v10680_v46, %v3919_v16 }
 0x3e1   :  { %v5306_v53 = vpop.f32.mrf.mxu1 }
 0x3e2   :  { %v3989_v25 = vmax.f32 %v3920_v23, 0.0 }
 0x3e4   :  { %v4008_v48 = vpack.c.bf16 %v3989_v25, %v3988_v45 }
 0x3e6   :  { %5372 = vmatmul.mubr.bf16.gmra.mxu0 %v4008_v48  ;;  %v10734_v48 = vld [vmem:[%s10769_s5] ss:$0 sm:$0xff]  ;;  %s5605_s5 = smov [#allocation5]  }
 0x3e7   :  { %5375 = vmatprep.mubr.msk.bf16.mxu0 %vm5604_vm6, %v11099_v30  ;;  %s4253_s23 = sshll.u32 %s5605_s5, 4  ;;  %s4254_s23 = int_to_ptr.vmem [resolvable:$true] %s4253_s23 }
 0x3e8   :  { %v3924_v7 = vpop.f32.mrf.mxu1  ;;  %s5571_s24 = scalar_lea.vmem %s4254_s23, 3200  ;;  %p5576_p6 = scmp.lt.s32.totalorder %s4254_s23, %s4254_s23 }
 0x3e9   :  { %v3925_v38 = vadd.f32 %v10680_v46, %v3924_v7  ;;  %p5572_p5 = scmp.ne.s32.totalorder %s4254_s23, %s5571_s24  ;;  %p5577_p7 = scmp.lt.s32.totalorder %s5571_s24, %s5571_s24 }
 0x3ea   :  { %v5309_v37 = vpop.f32.mrf.mxu1 }
 0x3eb   :  { %v3990_v62 = vmax.f32 %v3925_v38, 0.0  ;;  %p5578_p8 = por %p5577_p7, %p5576_p6 }
 0x3ec   :  { %v3927_v24 = vpop.f32.mrf.mxu1 }
 0x3ed   :  { %v3928_v56 = vadd.f32 %v10680_v46, %v3927_v24  ;;  %p5579_p9 = pnand %p5578_p8, %p5572_p5 }
 0x3ee   :  { %v5310_v0 = vpop.f32.mrf.mxu1 }
 0x3ef   :  { %v3991_v10 = vmax.f32 %v3928_v56, 0.0 }
 0x3f1   :  { %v4009_v22 = vpack.c.bf16 %v3991_v10, %v3990_v62 }
 0x3f3   :  { %5376 = vmatmul.mubr.bf16.gmra.mxu0 %v4009_v22 }
 0x3f4   :  { %v3932_v18 = vpop.f32.mrf.mxu1  ;;  %5379 = vmatprep.mubr.msk.bf16.mxu0 %vm5604_vm6, %v11099_v30 }
 0x3f5   :  { %v3933_v63 = vadd.f32 %v10680_v46, %v3932_v18 }
 0x3f6   :  { %v5313_v50 = vpop.f32.mrf.mxu1 }
 0x3f7   :  { %v3992_v40 = vmax.f32 %v3933_v63, 0.0 }
 0x3f8   :  { %v3935_v17 = vpop.f32.mrf.mxu1 }
 0x3f9   :  { %v3936_v20 = vadd.f32 %v10680_v46, %v3935_v17 }
 0x3fa   :  { %v5314_v33 = vpop.f32.mrf.mxu1 }
 0x3fb   :  { %v3993_v32 = vmax.f32 %v3936_v20, 0.0 }
 0x3fd   :  { %v3940_v60 = vpop.f32.mrf.mxu1  ;;  %v4010_v29 = vpack.c.bf16 %v3993_v32, %v3992_v40 }
 0x3fe   :  { %v3941_v27 = vadd.f32 %v10680_v46, %v3940_v60 }
 0x3ff   :  { %v5317_v15 = vpop.f32.mrf.mxu1  ;;  %5380 = vmatmul.mubr.bf16.gmra.mxu0 %v4010_v29 }
 0x400   :  { %5383 = vmatprep.mubr.msk.bf16.mxu0 %vm5604_vm6, %v11099_v30  ;;  %v3994_v44 = vmax.f32 %v3941_v27, 0.0 }
 0x401   :  { %v3943_v57 = vpop.f32.mrf.mxu1 }
 0x402   :  { %v3944_v51 = vadd.f32 %v10680_v46, %v3943_v57 }
 0x403   :  { %v5318_v21 = vpop.f32.mrf.mxu1 }
 0x404   :  { %v3995_v19 = vmax.f32 %v3944_v51, 0.0 }
 0x405   :  { %v3948_v4 = vpop.f32.mrf.mxu1 }
 0x406   :  { %v4011_v41 = vpack.c.bf16 %v3995_v19, %v3994_v44  ;;  %v3949_v8 = vadd.f32 %v10680_v46, %v3948_v4 }
 0x407   :  { %v5321_v6 = vpop.f32.mrf.mxu1 }
 0x408   :  { %5384 = vmatmul.mubr.bf16.gmra.mxu0 %v4011_v41  ;;  %v3996_v55 = vmax.f32 %v3949_v8, 0.0 }
 0x409   :  { %v3951_v31 = vpop.f32.mrf.mxu1  ;;  %5387 = vmatprep.mubr.msk.bf16.mxu0 %vm5604_vm6, %v11099_v30 }
 0x40a   :  { %v3952_v2 = vadd.f32 %v10680_v46, %v3951_v31 }
 0x40b   :  { %v5322_v12 = vpop.f32.mrf.mxu1 }
 0x40c   :  { %v3997_v9 = vmax.f32 %v3952_v2, 0.0 }
 0x40d   :  { %v3956_v49 = vpop.f32.mrf.mxu1 }
 0x40e   :  { %v4012_v54 = vpack.c.bf16 %v3997_v9, %v3996_v55  ;;  %v3957_v13 = vadd.f32 %v10680_v46, %v3956_v49 }
 0x40f   :  { %v5325_v28 = vpop.f32.mrf.mxu1 }
 0x410   :  { %5388 = vmatmul.mubr.bf16.gmra.mxu0 %v4012_v54  ;;  %v3998_v14 = vmax.f32 %v3957_v13, 0.0 }
 0x411   :  { %v3959_v35 = vpop.f32.mrf.mxu1  ;;  %5391 = vmatprep.mubr.msk.bf16.mxu0 %vm5604_vm6, %v11099_v30 }
 0x412   :  { %v3960_v43 = vadd.f32 %v10680_v46, %v3959_v35 }
 0x413   :  { %v5326_v59 = vpop.f32.mrf.mxu1 }
 0x414   :  { %v3999_v34 = vmax.f32 %v3960_v43, 0.0 }
 0x415   :  { %v3964_v1 = vpop.f32.mrf.mxu1 }
 0x416   :  { %v4013_v61 = vpack.c.bf16 %v3999_v34, %v3998_v14  ;;  %v3965_v58 = vadd.f32 %v10680_v46, %v3964_v1 }
 0x417   :  { %v5329_v42 = vpop.f32.mrf.mxu1 }
 0x418   :  { %5392 = vmatmul.mubr.bf16.gmra.mxu0 %v4013_v61  ;;  %v4000_v5 = vmax.f32 %v3965_v58, 0.0 }
 0x419   :  { %v3967_v26 = vpop.f32.mrf.mxu1  ;;  %5395 = vmatprep.mubr.msk.bf16.mxu0 %vm5604_vm6, %v11099_v30 }
 0x41a   :  { %v3968_v47 = vadd.f32 %v10680_v46, %v3967_v26 }
 0x41b   :  { %v5330_v36 = vpop.f32.mrf.mxu1 }
 0x41c   :  { %v4001_v39 = vmax.f32 %v3968_v47, 0.0 }
 0x41d   :  { %v3972_v3 = vpop.f32.mrf.mxu1 }
 0x41e   :  { %v4014_v52 = vpack.c.bf16 %v4001_v39, %v4000_v5  ;;  %v3973_v11 = vadd.f32 %v10680_v46, %v3972_v3 }
 0x41f   :  { %v5333_v16 = vpop.f32.mrf.mxu1 }
 0x420   :  { %5396 = vmatmul.mubr.bf16.gmra.mxu0 %v4014_v52  ;;  %v4002_v53 = vmax.f32 %v3973_v11, 0.0 }
 0x421   :  { %v3975_v23 = vpop.f32.mrf.mxu1  ;;  %5399 = vmatprep.mubr.msk.bf16.mxu0 %vm5604_vm6, %v11099_v30 }
 0x422   :  { %v4015_v25 = vpack.c.bf16 %v4002_v53, %v4002_v53 }
 0x423   :  { %v5334_v45 = vpop.f32.mrf.mxu1 }
 0x428   :  { %5400 = vmatmul.mubr.bf16.gmra.mxu0 %v4015_v25 }
 0x462   :  { %v4121_v7 = vpop.f32.mrf.mxu0 }
 0x463   :  { %v4122_v37 = vadd.f32 %v10734_v48, %v4121_v7 }
 0x464   :  { %v5353_v38 = vpop.f32.mrf.mxu0 }
 0x465   :  { %4223 = vst [vmem:[#allocation5] sm:$0xff] %v4122_v37 }
 0x466   :  { %v4124_v46 = vpop.f32.mrf.mxu0 }
 0x467   :  { %v4125_v24 = vadd.f32 %v10734_v48, %v4124_v46 }
 0x468   :  { %v5354_v56 = vpop.f32.mrf.mxu0 }
 0x469   :  { %4224 = vst [vmem:[#allocation5 + $0x8] sm:$0xff] %v4125_v24 }
 0x470   :  { %v4129_v30 = vpop.f32.mrf.mxu0 }
 0x471   :  { %v4130_v0 = vadd.f32 %v10734_v48, %v4129_v30 }
 0x472   :  { %v5357_v62 = vpop.f32.mrf.mxu0 }
 0x473   :  { %4225 = vst [vmem:[#allocation5 + $0x10] sm:$0xff] %v4130_v0 }
 0x474   :  { %v4132_v10 = vpop.f32.mrf.mxu0 }
 0x475   :  { %v4133_v22 = vadd.f32 %v10734_v48, %v4132_v10 }
 0x476   :  { %v5358_v18 = vpop.f32.mrf.mxu0 }
 0x477   :  { %4226 = vst [vmem:[#allocation5 + $0x18] sm:$0xff] %v4133_v22 }
 0x47d   :  { %v4137_v50 = vpop.f32.mrf.mxu0 }
 0x47e   :  { %v4138_v63 = vadd.f32 %v10734_v48, %v4137_v50 }
 0x47f   :  { %v5361_v17 = vpop.f32.mrf.mxu0 }
 0x480   :  { %4227 = vst [vmem:[#allocation5 + $0x20] sm:$0xff] %v4138_v63 }
 0x481   :  { %v4140_v20 = vpop.f32.mrf.mxu0 }
 0x482   :  { %v4141_v33 = vadd.f32 %v10734_v48, %v4140_v20 }
 0x483   :  { %v5362_v40 = vpop.f32.mrf.mxu0 }
 0x484   :  { %4228 = vst [vmem:[#allocation5 + $0x28] sm:$0xff] %v4141_v33 }
 0x48a   :  { %v4145_v32 = vpop.f32.mrf.mxu0 }
 0x48b   :  { %v4146_v60 = vadd.f32 %v10734_v48, %v4145_v32 }
 0x48c   :  { %v5365_v29 = vpop.f32.mrf.mxu0 }
 0x48d   :  { %4229 = vst [vmem:[#allocation5 + $0x30] sm:$0xff] %v4146_v60 }
 0x48e   :  { %v4148_v15 = vpop.f32.mrf.mxu0 }
 0x48f   :  { %v4149_v27 = vadd.f32 %v10734_v48, %v4148_v15 }
 0x490   :  { %v5366_v57 = vpop.f32.mrf.mxu0 }
 0x491   :  { %4230 = vst [vmem:[#allocation5 + $0x38] sm:$0xff] %v4149_v27 }
 0x499   :  { %v4153_v51 = vpop.f32.mrf.mxu0 }
 0x49a   :  { %v4154_v21 = vadd.f32 %v10734_v48, %v4153_v51 }
 0x49b   :  { %v5369_v44 = vpop.f32.mrf.mxu0 }
 0x49c   :  { %4231 = vst [vmem:[#allocation5 + $0x40] sm:$0xff] %v4154_v21 }
 0x49d   :  { %v4156_v19 = vpop.f32.mrf.mxu0 }
 0x49e   :  { %v4157_v4 = vadd.f32 %v10734_v48, %v4156_v19 }
 0x49f   :  { %v5370_v41 = vpop.f32.mrf.mxu0 }
 0x4a0   :  { %4232 = vst [vmem:[#allocation5 + $0x48] sm:$0xff] %v4157_v4 }
 0x4a6   :  { %v4161_v6 = vpop.f32.mrf.mxu0 }
 0x4a7   :  { %v4162_v8 = vadd.f32 %v10734_v48, %v4161_v6 }
 0x4a8   :  { %v5373_v31 = vpop.f32.mrf.mxu0 }
 0x4a9   :  { %4233 = vst [vmem:[#allocation5 + $0x50] sm:$0xff] %v4162_v8 }
 0x4aa   :  { %v4164_v2 = vpop.f32.mrf.mxu0 }
 0x4ab   :  { %v4165_v12 = vadd.f32 %v10734_v48, %v4164_v2 }
 0x4ac   :  { %v5374_v55 = vpop.f32.mrf.mxu0 }
 0x4ad   :  { %4234 = vst [vmem:[#allocation5 + $0x58] sm:$0xff] %v4165_v12 }
 0x4b3   :  { %v4169_v9 = vpop.f32.mrf.mxu0 }
 0x4b4   :  { %v4170_v49 = vadd.f32 %v10734_v48, %v4169_v9 }
 0x4b5   :  { %v5377_v54 = vpop.f32.mrf.mxu0 }
 0x4b6   :  { %4235 = vst [vmem:[#allocation5 + $0x60] sm:$0xff] %v4170_v49 }
 0x4b7   :  { %v4172_v28 = vpop.f32.mrf.mxu0 }
 0x4b8   :  { %v4173_v13 = vadd.f32 %v10734_v48, %v4172_v28 }
 0x4b9   :  { %v5378_v35 = vpop.f32.mrf.mxu0 }
 0x4ba   :  { %4236 = vst [vmem:[#allocation5 + $0x68] sm:$0xff] %v4173_v13 }
 0x4bf   :  { %v4177_v43 = vpop.f32.mrf.mxu0 }
 0x4c0   :  { %v4178_v59 = vadd.f32 %v10734_v48, %v4177_v43 }
 0x4c1   :  { %v5381_v14 = vpop.f32.mrf.mxu0 }
 0x4c2   :  { %4237 = vst [vmem:[#allocation5 + $0x70] sm:$0xff] %v4178_v59 }
 0x4c3   :  { %v4180_v34 = vpop.f32.mrf.mxu0 }
 0x4c4   :  { %v4181_v1 = vadd.f32 %v10734_v48, %v4180_v34 }
 0x4c5   :  { %v5382_v61 = vpop.f32.mrf.mxu0 }
 0x4c6   :  { %4238 = vst [vmem:[#allocation5 + $0x78] sm:$0xff] %v4181_v1 }
 0x4c8   :  { %v4185_v42 = vpop.f32.mrf.mxu0 }
 0x4c9   :  { %v4186_v58 = vadd.f32 %v10734_v48, %v4185_v42 }
 0x4ca   :  { %v5385_v26 = vpop.f32.mrf.mxu0 }
 0x4cb   :  { %4239 = vst [vmem:[#allocation5 + $0x80] sm:$0xff] %v4186_v58 }
 0x4cc   :  { %v4188_v47 = vpop.f32.mrf.mxu0 }
 0x4cd   :  { %v4189_v36 = vadd.f32 %v10734_v48, %v4188_v47 }
 0x4ce   :  { %v5386_v5 = vpop.f32.mrf.mxu0 }
 0x4cf   :  { %4240 = vst [vmem:[#allocation5 + $0x88] sm:$0xff] %v4189_v36 }
 0x4d0   :  { %v4193_v39 = vpop.f32.mrf.mxu0 }
 0x4d1   :  { %v4194_v3 = vadd.f32 %v10734_v48, %v4193_v39 }
 0x4d2   :  { %v5389_v52 = vpop.f32.mrf.mxu0 }
 0x4d3   :  { %4241 = vst [vmem:[#allocation5 + $0x90] sm:$0xff] %v4194_v3 }
 0x4d4   :  { %v4196_v11 = vpop.f32.mrf.mxu0 }
 0x4d5   :  { %v4197_v16 = vadd.f32 %v10734_v48, %v4196_v11 }
 0x4d6   :  { %v5390_v23 = vpop.f32.mrf.mxu0 }
 0x4d7   :  { %4242 = vst [vmem:[#allocation5 + $0x98] sm:$0xff] %v4197_v16 }
 0x4d8   :  { %v4201_v53 = vpop.f32.mrf.mxu0 }
 0x4d9   :  { %v4202_v45 = vadd.f32 %v10734_v48, %v4201_v53 }
 0x4da   :  { %v5393_v25 = vpop.f32.mrf.mxu0 }
 0x4db   :  { %4243 = vst [vmem:[#allocation5 + $0xa0] sm:$0xff] %v4202_v45 }
 0x4dc   :  { %v4204_v7 = vpop.f32.mrf.mxu0 }
 0x4dd   :  { %v4205_v37 = vadd.f32 %v10734_v48, %v4204_v7 }
 0x4de   :  { %v5394_v38 = vpop.f32.mrf.mxu0 }
 0x4df   :  { %4244 = vst [vmem:[#allocation5 + $0xa8] sm:$0xff] %v4205_v37 }
 0x4e0   :  { %v4209_v46 = vpop.f32.mrf.mxu0 }
 0x4e1   :  { %v4210_v24 = vadd.f32 %v10734_v48, %v4209_v46 }
 0x4e2   :  { %v5397_v56 = vpop.f32.mrf.mxu0 }
 0x4e3   :  { %4245 = vst [vmem:[#allocation5 + $0xb0] sm:$0xff] %v4210_v24 }
 0x4e4   :  { %v4212_v30 = vpop.f32.mrf.mxu0 }
 0x4e5   :  { %v4213_v0 = vadd.f32 %v10734_v48, %v4212_v30 }
 0x4e6   :  { %v5398_v62 = vpop.f32.mrf.mxu0 }
 0x4e7   :  { %4246 = vst [vmem:[#allocation5 + $0xb8] sm:$0xff] %v4213_v0 }
 0x4e8   :  { %v4217_v10 = vpop.f32.mrf.mxu0 }
 0x4e9   :  { %v4218_v22 = vadd.f32 %v10734_v48, %v4217_v10 }
 0x4ea   :  { %v5401_v18 = vpop.f32.mrf.mxu0 }
 0x4eb   :  { %4247 = vst [vmem:[#allocation5 + $0xc0] sm:$0xff] %v4218_v22 }
 0x4ec   :  { %v4220_v50 = vpop.f32.mrf.mxu0 }
 0x4ed   :  { %5582 = shalt.err (!%p5579_p9)
}
 0x4ee   :  { %s5606_s25 = smov 128   ;;  %s5607_s26 = smov 8   ;;  %v5402_v63 = vpop.f32.mrf.mxu0 }
 0x4ef   :  { %4259 = dma.vmem_to_hbm [thread:$0]  %s4254_s23, 3200, %s10770_s6, [#allocation4], %s5606_s25, %s5606_s25, %s5607_s26  }
 0x4f0   :  { %5593 = dma.done.wait [#allocation4], 3200  }
 0x4f1   :  { %5594 = vsyncadd [#allocation4], 4294964096 }
 0x4f2   :  { %4263 = vsyncpa [#allocation3], 1 }
 0x4f3   :  { %4264 = vsyncpa [#allocation4], 1 }

</bundles_post_ra>
